<compile_context>
chip_gen: v5e
topology: v5e:2x2
jax: 0.10.0
libtpu: 0.0.40
codegen_flags: <defaults>
</compile_context>

<pallas_src>
import numpy as np
import jax
import jax.numpy as jnp
from jax import lax
from jax.experimental import pallas as pl
from jax.experimental.pallas import tpu as pltpu

# ----------------------- module-consistent (scaled-down) config -----------------------
B = 8                            # batch
BT = 4                           # samples per grid step  -> 4*64 = 256 tokens/step
IN_DIM = 32                      # in_dim   (PyTorch default 1280, scaled down)
H = W = 8
N_TOK = H * W                    # 64 tokens per sample
HIDDEN_DIM = 64                  # hidden_dim (PyTorch default 512, scaled down)
NUM_HEADS = 4
NUM_CLASSES = 10
HEAD_DIM = HIDDEN_DIM // NUM_HEADS        # 16
NUM_PAIRS = NUM_HEADS - 1                 # 3 'near' pairs == downblock conv channels
O1 = (HEAD_DIM - 3) // 2 + 1              # 7  spatial after Conv2d(3,3,k=3,s=2,p=0)
O2 = (O1 - 3) // 2 + 1                    # 3  spatial after second conv
FLAT_DIM = NUM_PAIRS * O2 * O2            # 27 classifier2 in_features
NC_PAD = 128                              # classes padded to one full lane register

assert B % BT == 0


# --------------------------------- in-kernel helpers ------------------------------------

def _erf_approx(v):
    """Abramowitz & Stegun 7.1.26 erf, |err| <= 1.5e-7 (exp/mul/div/where only)."""
    a1, a2, a3, a4, a5 = (0.254829592, -0.284496736, 1.421413741,
                          -1.453152027, 1.061405429)
    p = 0.3275911
    ax = jnp.abs(v)
    t = 1.0 / (1.0 + p * ax)
    poly = ((((a5 * t + a4) * t + a3) * t + a2) * t + a1) * t
    y = 1.0 - poly * jnp.exp(-ax * ax)
    return jnp.where(v >= 0, y, -y)


def _gelu_exact(v):
    return 0.5 * v * (1.0 + _erf_approx(v * 0.7071067811865476))


# --------------------------------- fused Pallas kernel ----------------------------------

def fused_kernel(x_ref,                           # (C, BT*N)  bf16, lane = (sample, token)
                 pool_ref,                        # (BT*N, BT) bf16  per-sample avg-pool
                 cls_g_ref, cls_b_ref,            # (C, 1) f32
                 cls_wt_ref, cls_bias_ref,        # (C, NC_PAD) bf16, (1, NC_PAD) f32
                 proj_w_ref, proj_b_ref,          # (HID, C) bf16 (head-grouped rows), (HID,1) f32
                 ln_g_ref, ln_b_ref,              # (HEAD_DIM, 1) f32
                 e1_ref, m1_ref,                  # (3*O1*BT, BT*d) bf16, (3, 3d, 3*O1) bf16
                 e2_ref, m2_ref,                  # (3*O2*BT, O1*BT) bf16, (3, 3*O1, 3*O2) bf16
                 cls2_w_ref, cls2_bias_ref,       # (O2, 3*O2, NC_PAD) bf16, (1, NC_PAD) f32
                 out_ref):                        # (1, BT, NC_PAD) f32
    f32 = jnp.float32
    bf16 = jnp.bfloat16
    n = N_TOK
    d = HEAD_DIM

    x = x_ref[...]                                               # (C, BT*N) bf16

    # ---- cls_head: per-sample avg pool (MXU) -> LayerNorm2d(eps=1e-6) -> Linear (MXU) --
    pooled = jnp.dot(x, pool_ref[...], preferred_element_type=f32)        # (C, BT)
    mu = jnp.mean(pooled, axis=0, keepdims=True)
    var = jnp.mean((pooled - mu) ** 2, axis=0, keepdims=True)
    normed = (pooled - mu) * lax.rsqrt(var + 1e-6)
    normed = normed * cls_g_ref[...] + cls_b_ref[...]                     # (C, BT)
    cls_logits = lax.dot_general(normed.astype(bf16), cls_wt_ref[...],
                                 (((0,), (0,)), ((), ())),
                                 preferred_element_type=f32)              # (BT, NC_PAD)
    cls_logits = cls_logits + cls_bias_ref[...]

    # ---- proj (1x1 conv) as one lane-dense matmul; heads are contiguous row blocks -----
    xp = (jnp.dot(proj_w_ref[...], x, preferred_element_type=f32)
          + proj_b_ref[...])                                              # (HID, BT*N) f32

    # ---- per-head LayerNorm(head_dim, eps=1e-5), batched over all BT*N tokens ----------
    g = ln_g_ref[...]
    beta = ln_b_ref[...]
    heads = []
    for j in range(NUM_HEADS):
        hj = xp[j * d:(j + 1) * d, :]                                     # (d, BT*N)
        mu_t = jnp.mean(hj, axis=0, keepdims=True)
        var_t = jnp.mean((hj - mu_t) ** 2, axis=0, keepdims=True)
        heads.append((hj - mu_t) * lax.rsqrt(var_t + 1e-5) * g + beta)

    # ---- per-sample: scalar remove_mean -> 'near' cross-covariance -> l2-normalize -----
    # (F.normalize(dim=2) on the (B,1,d,d) cov == normalize over the ROW index per column)
    inv_n = 1.0 / float(n)
    cov_rows = []
    for s in range(BT):
        ys = []
        for j in range(NUM_HEADS):
            hs = heads[j][:, s * n:(s + 1) * n]                           # (d, N)
            ys.append(hs - jnp.mean(hs, keepdims=True))                   # scalar per (s, head)
        pair = []
        for p in range(NUM_PAIRS):
            cov = lax.dot_general(ys[p].astype(bf16), ys[p + 1].astype(bf16),
                                  (((1,), (1,)), ((), ())),
                                  preferred_element_type=f32) * inv_n     # (d, d)
            ssq = jnp.sum(cov * cov, axis=0, keepdims=True)               # (1, d)
            pair.append(cov * lax.rsqrt(jnp.maximum(ssq, 1e-24)))         # == x/max(||x||,1e-12)
        cov_rows.append(jnp.concatenate(pair, axis=1))                    # (d, 3d)
    # samples stacked along sublanes, planes along lanes -> one slab for the downblock
    covall = jnp.concatenate(cov_rows, axis=0).astype(bf16)               # (BT*d, 3d)

    # ---- downblock conv1 (k3,s2,p0,no bias): 1 selector + 3 tap matmuls for ALL samples
    t1 = jnp.dot(e1_ref[...], covall, preferred_element_type=f32)         # (3*O1*BT, 3d)
    t1 = t1.astype(bf16)
    midc = jnp.zeros((O1 * BT, NUM_PAIRS * O1), f32)                      # rows (r, s)
    for ki in range(3):
        midc = midc + jnp.dot(t1[ki * O1 * BT:(ki + 1) * O1 * BT, :], m1_ref[ki],
                              preferred_element_type=f32)
    midc = _gelu_exact(midc)                                              # nn.GELU() (exact erf)

    # ---- downblock conv2: same folded structure -----------------------------------------
    t2 = jnp.dot(e2_ref[...], midc.astype(bf16), preferred_element_type=f32)  # (3*O2*BT, 3*O1)
    t2 = t2.astype(bf16)
    outc = jnp.zeros((O2 * BT, NUM_PAIRS * O2), f32)                      # rows (r2, s)
    for ki in range(3):
        outc = outc + jnp.dot(t2[ki * O2 * BT:(ki + 1) * O2 * BT, :], m2_ref[ki],
                              preferred_element_type=f32)

    # ---- classifier2 on NCHW-flattened maps: O2 lane-dense matmuls for ALL samples ------
    acc2 = jnp.zeros((BT, NC_PAD), f32)
    for r2 in range(O2):
        acc2 = acc2 + jnp.dot(outc[r2 * BT:(r2 + 1) * BT, :].astype(bf16),
                              cls2_w_ref[r2], preferred_element_type=f32)
    logits2 = acc2 + cls2_bias_ref[...]                                   # (BT, NC_PAD)

    out_ref[0] = (cls_logits + logits2) * 0.5                             # lane-dense store


# --------------------- one-time weight-side preprocessing (host, numpy) -----------------

def _conv_row_selector(in_rows, out_rows, bt, cols_sample_major):
    """Row-gather matrix for a stride-2, pad-0, k=3 conv, batched over bt samples.

    rows ordered (ki, r, sample); cols ordered (sample, m) if cols_sample_major else (m, sample).
    """
    e = np.zeros((3 * out_rows * bt, bt * in_rows), np.float32)
    for ki in range(3):
        for r in range(out_rows):
            for s in range(bt):
                m = 2 * r + ki
                col = s * in_rows + m if cols_sample_major else m * bt + s
                e[ki * out_rows * bt + r * bt + s, col] = 1.0
    return e


def _stacked_tap_matrix(w_oihw, s_in, o_out):
    """M[ki, ci*s_in + m, co*o_out + c] = sum_kj W[co,ci,ki,kj] * [m == 2c + kj]."""
    co_n, ci_n = w_oihw.shape[0], w_oihw.shape[1]
    m = np.zeros((3, ci_n * s_in, co_n * o_out), np.float32)
    for ki in range(3):
        for ci in range(ci_n):
            for co in range(co_n):
                for c in range(o_out):
                    for kj in range(3):
                        m[ki, ci * s_in + 2 * c + kj, co * o_out + c] += w_oihw[co, ci, ki, kj]
    return m


def prepare_params(params):
    """Run ONCE: all parameter-only reshapes/permutations/padding (hoisted out of forward)."""
    d = HEAD_DIM
    f32 = np.float32
    bf16 = jnp.bfloat16

    # proj rows grouped by head: new row j*d + q <- old row q*NUM_HEADS + j, matching
    # x.reshape(B, C//nh, nh, N).permute(2,0,3,1) in the PyTorch module.
    perm = np.arange(HIDDEN_DIM).reshape(d, NUM_HEADS).T.reshape(-1)
    proj_w = np.asarray(params["proj_w"])[perm, :]
    proj_b = np.asarray(params["proj_b"])[perm].reshape(HIDDEN_DIM, 1)

    cls_g = np.asarray(params["cls_ln_g"]).reshape(IN_DIM, 1).astype(f32)
    cls_b = np.asarray(params["cls_ln_b"]).reshape(IN_DIM, 1).astype(f32)
    cls_wt = np.zeros((IN_DIM, NC_PAD), f32)
    cls_wt[:, :NUM_CLASSES] = np.asarray(params["cls_fc_w"]).T
    cls_bias = np.zeros((1, NC_PAD), f32)
    cls_bias[0, :NUM_CLASSES] = np.asarray(params["cls_fc_b"])

    ln_g = np.asarray(params["ln_g"]).reshape(d, 1).astype(f32)
    ln_b = np.asarray(params["ln_b"]).reshape(d, 1).astype(f32)

    # per-sample average pool over the lane-concatenated token axis (1/64 is exact in bf16)
    pool = np.zeros((BT * N_TOK, BT), f32)
    for s in range(BT):
        pool[s * N_TOK:(s + 1) * N_TOK, s] = 1.0 / N_TOK

    e1 = _conv_row_selector(d, O1, BT, cols_sample_major=True)      # (3*O1*BT, BT*d)
    m1 = _stacked_tap_matrix(np.asarray(params["conv1_w"]), d, O1)  # (3, 3d, 3*O1)
    e2 = _conv_row_selector(O1, O2, BT, cols_sample_major=False)    # (3*O2*BT, O1*BT)
    m2 = _stacked_tap_matrix(np.asarray(params["conv2_w"]), O1, O2) # (3, 3*O1, 3*O2)

    # classifier2 weight rows reordered to the kernel's (row r2, [co, c2]) layout
    cls2_w = np.asarray(params["cls2_w"])                           # (NC, FLAT) NCHW order
    w2c = np.zeros((O2, NUM_PAIRS * O2, NC_PAD), f32)
    for r in range(O2):
        for co in range(NUM_PAIRS):
            for c in range(O2):
                w2c[r, co * O2 + c, :NUM_CLASSES] = cls2_w[:, co * O2 * O2 + r * O2 + c]
    cls2_bias = np.zeros((1, NC_PAD), f32)
    cls2_bias[0, :NUM_CLASSES] = np.asarray(params["cls2_b"])

    # bf16 only for MXU operands; LN / bias / scale params stay f32.
    return dict(
        pool=jnp.asarray(pool, bf16),
        cls_g=jnp.asarray(cls_g), cls_b=jnp.asarray(cls_b),
        cls_wt=jnp.asarray(cls_wt, bf16), cls_bias=jnp.asarray(cls_bias),
        proj_w=jnp.asarray(proj_w, bf16), proj_b=jnp.asarray(proj_b, jnp.float32),
        ln_g=jnp.asarray(ln_g), ln_b=jnp.asarray(ln_b),
        e1=jnp.asarray(e1, bf16), m1=jnp.asarray(m1, bf16),
        e2=jnp.asarray(e2, bf16), m2=jnp.asarray(m2, bf16),
        cls2_w=jnp.asarray(w2c, bf16), cls2_bias=jnp.asarray(cls2_bias),
    )


def _const_spec(shape):
    nd = len(shape)
    return pl.BlockSpec(shape, lambda i, _nd=nd: (0,) * _nd)


# ----------------------------------- forward wrapper ------------------------------------

@jax.jit
def moment_probing_forward(x, prepped):
    b, c, h, w = x.shape
    n = h * w
    d = HEAD_DIM
    # (B,C,H,W) -> (C, B*N) with lanes ordered (sample, token); cast MXU operand to bf16.
    x_t = jnp.transpose(x.reshape(b, c, n), (1, 0, 2)).reshape(c, b * n).astype(jnp.bfloat16)

    out3 = pl.pallas_call(
        fused_kernel,
        out_shape=jax.ShapeDtypeStruct((b // BT, BT, NC_PAD), jnp.float32),
        grid=(b // BT,),
        in_specs=[
            pl.BlockSpec((c, BT * N_TOK), lambda i: (0, i)),        # x: BT samples / step
            _const_spec((BT * N_TOK, BT)),
            _const_spec((c, 1)), _const_spec((c, 1)),
            _const_spec((c, NC_PAD)), _const_spec((1, NC_PAD)),
            _const_spec((HIDDEN_DIM, c)), _const_spec((HIDDEN_DIM, 1)),
            _const_spec((d, 1)), _const_spec((d, 1)),
            _const_spec((3 * O1 * BT, BT * d)),
            _const_spec((3, NUM_PAIRS * d, NUM_PAIRS * O1)),
            _const_spec((3 * O2 * BT, O1 * BT)),
            _const_spec((3, NUM_PAIRS * O1, NUM_PAIRS * O2)),
            _const_spec((O2, NUM_PAIRS * O2, NC_PAD)), _const_spec((1, NC_PAD)),
        ],
        out_specs=pl.BlockSpec((1, BT, NC_PAD), lambda i: (i, 0, 0)),
        compiler_params=pltpu.CompilerParams(
            dimension_semantics=("parallel",)),      # batch axis; shardable across TCs
    )(x_t, prepped["pool"], prepped["cls_g"], prepped["cls_b"],
      prepped["cls_wt"], prepped["cls_bias"], prepped["proj_w"], prepped["proj_b"],
      prepped["ln_g"], prepped["ln_b"], prepped["e1"], prepped["m1"],
      prepped["e2"], prepped["m2"], prepped["cls2_w"], prepped["cls2_bias"])

    return out3.reshape(b, NC_PAD)[:, :NUM_CLASSES]


# -------------------------------- params & JAX reference --------------------------------

def init_params(key):
    keys = jax.random.split(key, 12)
    nrm = lambda k, shape, s=0.05: s * jax.random.normal(k, shape, jnp.float32)
    return {
        "proj_w": nrm(keys[0], (HIDDEN_DIM, IN_DIM)),          # Conv2d(in,hidden,1) weight
        "proj_b": nrm(keys[1], (HIDDEN_DIM,)),
        "ln_g": 1.0 + nrm(keys[2], (HEAD_DIM,), 0.1),          # nn.LayerNorm(head_dim)
        "ln_b": nrm(keys[3], (HEAD_DIM,), 0.1),
        "cls_ln_g": 1.0 + nrm(keys[4], (IN_DIM,), 0.1),        # LayerNorm2d(in_dim)
        "cls_ln_b": nrm(keys[5], (IN_DIM,), 0.1),
        "cls_fc_w": nrm(keys[6], (NUM_CLASSES, IN_DIM)),       # cls_head fc
        "cls_fc_b": nrm(keys[7], (NUM_CLASSES,)),
        "conv1_w": nrm(keys[8], (3, 3, 3, 3), 0.2),            # downblock conv1 (OIHW)
        "conv2_w": nrm(keys[9], (3, 3, 3, 3), 0.2),            # downblock conv2 (OIHW)
        "cls2_w": nrm(keys[10], (NUM_CLASSES, FLAT_DIM)),      # classifier2
        "cls2_b": nrm(keys[11], (NUM_CLASSES,)),
    }


def reference_forward(x, params):
    """Pure-JAX mirror of the PyTorch module (numerical check only)."""
    hp = lax.Precision.HIGHEST
    b, c, h, w = x.shape
    n = h * w
    d = HEAD_DIM
    x3 = x.reshape(b, c, n)

    pooled = jnp.mean(x3, axis=2)
    mu = jnp.mean(pooled, axis=1, keepdims=True)
    var = jnp.mean((pooled - mu) ** 2, axis=1, keepdims=True)
    normed = (pooled - mu) * lax.rsqrt(var + 1e-6)
    normed = normed * params["cls_ln_g"][None, :] + params["cls_ln_b"][None, :]
    cls_token = jnp.dot(normed, params["cls_fc_w"].T, precision=hp) + params["cls_fc_b"][None, :]

    xp = (jnp.einsum('oc,bcn->bon', params["proj_w"], x3, precision=hp)
          + params["proj_b"][None, :, None])
    heads = xp.reshape(b, d, NUM_HEADS, n).transpose(2, 0, 3, 1)     # (nh, B, N, d)

    def ln(t):
        m = jnp.mean(t, axis=-1, keepdims=True)
        v = jnp.mean((t - m) ** 2, axis=-1, keepdims=True)
        return (t - m) * lax.rsqrt(v + 1e-5) * params["ln_g"] + params["ln_b"]

    covs = []
    for p in range(NUM_PAIRS):
        a = ln(heads[p])
        cc = ln(heads[p + 1])
        a = a - jnp.mean(a, axis=(1, 2), keepdims=True)
        cc = cc - jnp.mean(cc, axis=(1, 2), keepdims=True)
        cov = jnp.einsum('bnd,bne->bde', a, cc, precision=hp) / n
        nrm = jnp.sqrt(jnp.sum(cov * cov, axis=1, keepdims=True))
        covs.append(cov / jnp.maximum(nrm, 1e-12))
    cov_list = jnp.stack(covs, axis=1)                               # (B, 3, d, d)

    y = lax.conv_general_dilated(cov_list, params["conv1_w"], (2, 2), 'VALID',
                                 dimension_numbers=('NCHW', 'OIHW', 'NCHW'), precision=hp)
    y = jax.nn.gelu(y, approximate=False)
    y = lax.conv_general_dilated(y, params["conv2_w"], (2, 2), 'VALID',
                                 dimension_numbers=('NCHW', 'OIHW', 'NCHW'), precision=hp)
    flat = y.reshape(b, -1)
    logits2 = jnp.dot(flat, params["cls2_w"].T, precision=hp) + params["cls2_b"][None, :]
    return (cls_token + logits2) * 0.5


if __name__ == "__main__":
    key = jax.random.PRNGKey(0)
    kx, kp = jax.random.split(key)
    x = jax.random.normal(kx, (B, IN_DIM, H, W), jnp.float32)
    params = init_params(kp)
    prepped = prepare_params(params)     # one-time weight-side preprocessing (hoisted)

    out = moment_probing_forward(x, prepped)
    jax.block_until_ready(out)
    assert out.shape == (B, NUM_CLASSES), out.shape
    assert bool(jnp.all(jnp.isfinite(out)))

    ref = reference_forward(x, params)
    max_err = float(jnp.max(jnp.abs(out - ref)))
    assert max_err < 3e-2, f"mismatch vs reference: max abs err {max_err}"
    print("KERNEL_OK")
</pallas_src>

<mosaic_0001>
module attributes {stable_mosaic.version = 11 : i64} {
  func.func @fused_kernel(%arg0: i32, %arg1: memref<32x256xbf16, #tpu.memory_space<vmem>>, %arg2: memref<256x4xbf16, #tpu.memory_space<vmem>>, %arg3: memref<32x1xf32, #tpu.memory_space<vmem>>, %arg4: memref<32x1xf32, #tpu.memory_space<vmem>>, %arg5: memref<32x128xbf16, #tpu.memory_space<vmem>>, %arg6: memref<1x128xf32, #tpu.memory_space<vmem>>, %arg7: memref<64x32xbf16, #tpu.memory_space<vmem>>, %arg8: memref<64x1xf32, #tpu.memory_space<vmem>>, %arg9: memref<16x1xf32, #tpu.memory_space<vmem>>, %arg10: memref<16x1xf32, #tpu.memory_space<vmem>>, %arg11: memref<84x64xbf16, #tpu.memory_space<vmem>>, %arg12: memref<3x48x21xbf16, #tpu.memory_space<vmem>>, %arg13: memref<36x28xbf16, #tpu.memory_space<vmem>>, %arg14: memref<3x21x9xbf16, #tpu.memory_space<vmem>>, %arg15: memref<3x9x128xbf16, #tpu.memory_space<vmem>>, %arg16: memref<1x128xf32, #tpu.memory_space<vmem>>, %arg17: memref<1x4x128xf32, #tpu.memory_space<vmem>>) attributes {dimension_semantics = [#tpu.dimension_semantics<parallel>], iteration_bounds = array<i64: 2>, scalar_prefetch = 0 : i64, scratch_operands = 0 : i64, tpu.core_type = #tpu.core_type<tc>, window_params = [{transform_indices = @transform_0, window_bounds = array<i64: 32, 256>}, {pipeline_mode = #tpu.pipeline_mode<synchronous>, transform_indices = @transform_1, window_bounds = array<i64: 256, 4>}, {pipeline_mode = #tpu.pipeline_mode<synchronous>, transform_indices = @transform_2, window_bounds = array<i64: 32, 1>}, {pipeline_mode = #tpu.pipeline_mode<synchronous>, transform_indices = @transform_3, window_bounds = array<i64: 32, 1>}, {pipeline_mode = #tpu.pipeline_mode<synchronous>, transform_indices = @transform_4, window_bounds = array<i64: 32, 128>}, {pipeline_mode = #tpu.pipeline_mode<synchronous>, transform_indices = @transform_5, window_bounds = array<i64: 1, 128>}, {pipeline_mode = #tpu.pipeline_mode<synchronous>, transform_indices = @transform_6, window_bounds = array<i64: 64, 32>}, {pipeline_mode = #tpu.pipeline_mode<synchronous>, transform_indices = @transform_7, window_bounds = array<i64: 64, 1>}, {pipeline_mode = #tpu.pipeline_mode<synchronous>, transform_indices = @transform_8, window_bounds = array<i64: 16, 1>}, {pipeline_mode = #tpu.pipeline_mode<synchronous>, transform_indices = @transform_9, window_bounds = array<i64: 16, 1>}, {pipeline_mode = #tpu.pipeline_mode<synchronous>, transform_indices = @transform_10, window_bounds = array<i64: 84, 64>}, {pipeline_mode = #tpu.pipeline_mode<synchronous>, transform_indices = @transform_11, window_bounds = array<i64: 3, 48, 21>}, {pipeline_mode = #tpu.pipeline_mode<synchronous>, transform_indices = @transform_12, window_bounds = array<i64: 36, 28>}, {pipeline_mode = #tpu.pipeline_mode<synchronous>, transform_indices = @transform_13, window_bounds = array<i64: 3, 21, 9>}, {pipeline_mode = #tpu.pipeline_mode<synchronous>, transform_indices = @transform_14, window_bounds = array<i64: 3, 9, 128>}, {pipeline_mode = #tpu.pipeline_mode<synchronous>, transform_indices = @transform_15, window_bounds = array<i64: 1, 128>}, {transform_indices = @transform_16, window_bounds = array<i64: 1, 4, 128>}]} {
    %c0 = arith.constant 0 : index
    %c0_0 = arith.constant 0 : index
    %0 = vector.load %arg1[%c0, %c0_0] : memref<32x256xbf16, #tpu.memory_space<vmem>>, vector<32x256xbf16>
    %c0_1 = arith.constant 0 : index
    %c0_2 = arith.constant 0 : index
    %1 = vector.load %arg2[%c0_1, %c0_2] : memref<256x4xbf16, #tpu.memory_space<vmem>>, vector<256x4xbf16>
    %cst = arith.constant dense<0.000000e+00> : vector<32x4xf32>
    %2 = tpu.matmul %0, %1, %cst {dimension_numbers = #tpu.dot_dimension_numbers<[1], [0], [0], [1], [0, 0, 1, 1], [], []>} : vector<32x256xbf16>, vector<256x4xbf16>, vector<32x4xf32> -> vector<32x4xf32>
    %cst_3 = arith.constant dense<0.000000e+00> : vector<4xf32>
    %3 = vector.multi_reduction <add>, %2, %cst_3 [0] : vector<32x4xf32> to vector<4xf32>
    %4 = vector.shape_cast %3 : vector<4xf32> to vector<1x4xf32>
    %cst_4 = arith.constant 3.200000e+01 : f32
    %5 = vector.broadcast %cst_4 : f32 to vector<1x4xf32>
    %6 = arith.divf %4, %5 : vector<1x4xf32>
    %7 = vector.broadcast %6 : vector<1x4xf32> to vector<32x4xf32>
    %8 = arith.subf %2, %7 : vector<32x4xf32>
    %9 = arith.mulf %8, %8 : vector<32x4xf32>
    %cst_5 = arith.constant dense<0.000000e+00> : vector<4xf32>
    %10 = vector.multi_reduction <add>, %9, %cst_5 [0] : vector<32x4xf32> to vector<4xf32>
    %11 = vector.shape_cast %10 : vector<4xf32> to vector<1x4xf32>
    %cst_6 = arith.constant 3.200000e+01 : f32
    %12 = vector.broadcast %cst_6 : f32 to vector<1x4xf32>
    %13 = arith.divf %11, %12 : vector<1x4xf32>
    %14 = vector.broadcast %6 : vector<1x4xf32> to vector<32x4xf32>
    %15 = arith.subf %2, %14 : vector<32x4xf32>
    %cst_7 = arith.constant 9.99999997E-7 : f32
    %16 = vector.broadcast %cst_7 : f32 to vector<1x4xf32>
    %17 = arith.addf %13, %16 : vector<1x4xf32>
    %18 = math.rsqrt %17 : vector<1x4xf32>
    %19 = vector.broadcast %18 : vector<1x4xf32> to vector<32x4xf32>
    %20 = arith.mulf %15, %19 : vector<32x4xf32>
    %c0_8 = arith.constant 0 : index
    %c0_9 = arith.constant 0 : index
    %21 = vector.load %arg3[%c0_8, %c0_9] : memref<32x1xf32, #tpu.memory_space<vmem>>, vector<32x1xf32>
    %22 = vector.broadcast %21 : vector<32x1xf32> to vector<32x4xf32>
    %23 = arith.mulf %20, %22 : vector<32x4xf32>
    %c0_10 = arith.constant 0 : index
    %c0_11 = arith.constant 0 : index
    %24 = vector.load %arg4[%c0_10, %c0_11] : memref<32x1xf32, #tpu.memory_space<vmem>>, vector<32x1xf32>
    %25 = vector.broadcast %24 : vector<32x1xf32> to vector<32x4xf32>
    %26 = arith.addf %23, %25 : vector<32x4xf32>
    %27 = arith.truncf %26 : vector<32x4xf32> to vector<32x4xbf16>
    %c0_12 = arith.constant 0 : index
    %c0_13 = arith.constant 0 : index
    %28 = vector.load %arg5[%c0_12, %c0_13] : memref<32x128xbf16, #tpu.memory_space<vmem>>, vector<32x128xbf16>
    %cst_14 = arith.constant dense<0.000000e+00> : vector<4x128xf32>
    %29 = tpu.matmul %27, %28, %cst_14 {dimension_numbers = #tpu.dot_dimension_numbers<[0], [0], [1], [1], [0, 1, 1, 1], [], []>} : vector<32x4xbf16>, vector<32x128xbf16>, vector<4x128xf32> -> vector<4x128xf32>
    %c0_15 = arith.constant 0 : index
    %c0_16 = arith.constant 0 : index
    %30 = vector.load %arg6[%c0_15, %c0_16] : memref<1x128xf32, #tpu.memory_space<vmem>>, vector<1x128xf32>
    %31 = vector.broadcast %30 : vector<1x128xf32> to vector<4x128xf32>
    %32 = arith.addf %29, %31 : vector<4x128xf32>
    %c0_17 = arith.constant 0 : index
    %c0_18 = arith.constant 0 : index
    %33 = vector.load %arg7[%c0_17, %c0_18] : memref<64x32xbf16, #tpu.memory_space<vmem>>, vector<64x32xbf16>
    %cst_19 = arith.constant dense<0.000000e+00> : vector<64x256xf32>
    %34 = tpu.matmul %33, %0, %cst_19 {dimension_numbers = #tpu.dot_dimension_numbers<[1], [0], [0], [1], [0, 0, 1, 1], [], []>} : vector<64x32xbf16>, vector<32x256xbf16>, vector<64x256xf32> -> vector<64x256xf32>
    %c0_20 = arith.constant 0 : index
    %c0_21 = arith.constant 0 : index
    %35 = vector.load %arg8[%c0_20, %c0_21] : memref<64x1xf32, #tpu.memory_space<vmem>>, vector<64x1xf32>
    %36 = vector.broadcast %35 : vector<64x1xf32> to vector<64x256xf32>
    %37 = arith.addf %34, %36 : vector<64x256xf32>
    %c0_22 = arith.constant 0 : index
    %c0_23 = arith.constant 0 : index
    %38 = vector.load %arg9[%c0_22, %c0_23] : memref<16x1xf32, #tpu.memory_space<vmem>>, vector<16x1xf32>
    %c0_24 = arith.constant 0 : index
    %c0_25 = arith.constant 0 : index
    %39 = vector.load %arg10[%c0_24, %c0_25] : memref<16x1xf32, #tpu.memory_space<vmem>>, vector<16x1xf32>
    %40 = vector.extract_strided_slice %37 {offsets = [0, 0], sizes = [16, 256], strides = [1, 1]} : vector<64x256xf32> to vector<16x256xf32>
    %cst_26 = arith.constant dense<0.000000e+00> : vector<256xf32>
    %41 = vector.multi_reduction <add>, %40, %cst_26 [0] : vector<16x256xf32> to vector<256xf32>
    %42 = vector.shape_cast %41 : vector<256xf32> to vector<1x256xf32>
    %cst_27 = arith.constant 1.600000e+01 : f32
    %43 = vector.broadcast %cst_27 : f32 to vector<1x256xf32>
    %44 = arith.divf %42, %43 : vector<1x256xf32>
    %45 = vector.broadcast %44 : vector<1x256xf32> to vector<16x256xf32>
    %46 = arith.subf %40, %45 : vector<16x256xf32>
    %47 = arith.mulf %46, %46 : vector<16x256xf32>
    %cst_28 = arith.constant dense<0.000000e+00> : vector<256xf32>
    %48 = vector.multi_reduction <add>, %47, %cst_28 [0] : vector<16x256xf32> to vector<256xf32>
    %49 = vector.shape_cast %48 : vector<256xf32> to vector<1x256xf32>
    %cst_29 = arith.constant 1.600000e+01 : f32
    %50 = vector.broadcast %cst_29 : f32 to vector<1x256xf32>
    %51 = arith.divf %49, %50 : vector<1x256xf32>
    %52 = vector.broadcast %44 : vector<1x256xf32> to vector<16x256xf32>
    %53 = arith.subf %40, %52 : vector<16x256xf32>
    %cst_30 = arith.constant 9.99999974E-6 : f32
    %54 = vector.broadcast %cst_30 : f32 to vector<1x256xf32>
    %55 = arith.addf %51, %54 : vector<1x256xf32>
    %56 = math.rsqrt %55 : vector<1x256xf32>
    %57 = vector.broadcast %56 : vector<1x256xf32> to vector<16x256xf32>
    %58 = arith.mulf %53, %57 : vector<16x256xf32>
    %59 = vector.broadcast %38 : vector<16x1xf32> to vector<16x256xf32>
    %60 = arith.mulf %58, %59 : vector<16x256xf32>
    %61 = vector.broadcast %39 : vector<16x1xf32> to vector<16x256xf32>
    %62 = arith.addf %60, %61 : vector<16x256xf32>
    %63 = vector.extract_strided_slice %37 {offsets = [16, 0], sizes = [16, 256], strides = [1, 1]} : vector<64x256xf32> to vector<16x256xf32>
    %cst_31 = arith.constant dense<0.000000e+00> : vector<256xf32>
    %64 = vector.multi_reduction <add>, %63, %cst_31 [0] : vector<16x256xf32> to vector<256xf32>
    %65 = vector.shape_cast %64 : vector<256xf32> to vector<1x256xf32>
    %cst_32 = arith.constant 1.600000e+01 : f32
    %66 = vector.broadcast %cst_32 : f32 to vector<1x256xf32>
    %67 = arith.divf %65, %66 : vector<1x256xf32>
    %68 = vector.broadcast %67 : vector<1x256xf32> to vector<16x256xf32>
    %69 = arith.subf %63, %68 : vector<16x256xf32>
    %70 = arith.mulf %69, %69 : vector<16x256xf32>
    %cst_33 = arith.constant dense<0.000000e+00> : vector<256xf32>
    %71 = vector.multi_reduction <add>, %70, %cst_33 [0] : vector<16x256xf32> to vector<256xf32>
    %72 = vector.shape_cast %71 : vector<256xf32> to vector<1x256xf32>
    %cst_34 = arith.constant 1.600000e+01 : f32
    %73 = vector.broadcast %cst_34 : f32 to vector<1x256xf32>
    %74 = arith.divf %72, %73 : vector<1x256xf32>
    %75 = vector.broadcast %67 : vector<1x256xf32> to vector<16x256xf32>
    %76 = arith.subf %63, %75 : vector<16x256xf32>
    %cst_35 = arith.constant 9.99999974E-6 : f32
    %77 = vector.broadcast %cst_35 : f32 to vector<1x256xf32>
    %78 = arith.addf %74, %77 : vector<1x256xf32>
    %79 = math.rsqrt %78 : vector<1x256xf32>
    %80 = vector.broadcast %79 : vector<1x256xf32> to vector<16x256xf32>
    %81 = arith.mulf %76, %80 : vector<16x256xf32>
    %82 = vector.broadcast %38 : vector<16x1xf32> to vector<16x256xf32>
    %83 = arith.mulf %81, %82 : vector<16x256xf32>
    %84 = vector.broadcast %39 : vector<16x1xf32> to vector<16x256xf32>
    %85 = arith.addf %83, %84 : vector<16x256xf32>
    %86 = vector.extract_strided_slice %37 {offsets = [32, 0], sizes = [16, 256], strides = [1, 1]} : vector<64x256xf32> to vector<16x256xf32>
    %cst_36 = arith.constant dense<0.000000e+00> : vector<256xf32>
    %87 = vector.multi_reduction <add>, %86, %cst_36 [0] : vector<16x256xf32> to vector<256xf32>
    %88 = vector.shape_cast %87 : vector<256xf32> to vector<1x256xf32>
    %cst_37 = arith.constant 1.600000e+01 : f32
    %89 = vector.broadcast %cst_37 : f32 to vector<1x256xf32>
    %90 = arith.divf %88, %89 : vector<1x256xf32>
    %91 = vector.broadcast %90 : vector<1x256xf32> to vector<16x256xf32>
    %92 = arith.subf %86, %91 : vector<16x256xf32>
    %93 = arith.mulf %92, %92 : vector<16x256xf32>
    %cst_38 = arith.constant dense<0.000000e+00> : vector<256xf32>
    %94 = vector.multi_reduction <add>, %93, %cst_38 [0] : vector<16x256xf32> to vector<256xf32>
    %95 = vector.shape_cast %94 : vector<256xf32> to vector<1x256xf32>
    %cst_39 = arith.constant 1.600000e+01 : f32
    %96 = vector.broadcast %cst_39 : f32 to vector<1x256xf32>
    %97 = arith.divf %95, %96 : vector<1x256xf32>
    %98 = vector.broadcast %90 : vector<1x256xf32> to vector<16x256xf32>
    %99 = arith.subf %86, %98 : vector<16x256xf32>
    %cst_40 = arith.constant 9.99999974E-6 : f32
    %100 = vector.broadcast %cst_40 : f32 to vector<1x256xf32>
    %101 = arith.addf %97, %100 : vector<1x256xf32>
    %102 = math.rsqrt %101 : vector<1x256xf32>
    %103 = vector.broadcast %102 : vector<1x256xf32> to vector<16x256xf32>
    %104 = arith.mulf %99, %103 : vector<16x256xf32>
    %105 = vector.broadcast %38 : vector<16x1xf32> to vector<16x256xf32>
    %106 = arith.mulf %104, %105 : vector<16x256xf32>
    %107 = vector.broadcast %39 : vector<16x1xf32> to vector<16x256xf32>
    %108 = arith.addf %106, %107 : vector<16x256xf32>
    %109 = vector.extract_strided_slice %37 {offsets = [48, 0], sizes = [16, 256], strides = [1, 1]} : vector<64x256xf32> to vector<16x256xf32>
    %cst_41 = arith.constant dense<0.000000e+00> : vector<256xf32>
    %110 = vector.multi_reduction <add>, %109, %cst_41 [0] : vector<16x256xf32> to vector<256xf32>
    %111 = vector.shape_cast %110 : vector<256xf32> to vector<1x256xf32>
    %cst_42 = arith.constant 1.600000e+01 : f32
    %112 = vector.broadcast %cst_42 : f32 to vector<1x256xf32>
    %113 = arith.divf %111, %112 : vector<1x256xf32>
    %114 = vector.broadcast %113 : vector<1x256xf32> to vector<16x256xf32>
    %115 = arith.subf %109, %114 : vector<16x256xf32>
    %116 = arith.mulf %115, %115 : vector<16x256xf32>
    %cst_43 = arith.constant dense<0.000000e+00> : vector<256xf32>
    %117 = vector.multi_reduction <add>, %116, %cst_43 [0] : vector<16x256xf32> to vector<256xf32>
    %118 = vector.shape_cast %117 : vector<256xf32> to vector<1x256xf32>
    %cst_44 = arith.constant 1.600000e+01 : f32
    %119 = vector.broadcast %cst_44 : f32 to vector<1x256xf32>
    %120 = arith.divf %118, %119 : vector<1x256xf32>
    %121 = vector.broadcast %113 : vector<1x256xf32> to vector<16x256xf32>
    %122 = arith.subf %109, %121 : vector<16x256xf32>
    %cst_45 = arith.constant 9.99999974E-6 : f32
    %123 = vector.broadcast %cst_45 : f32 to vector<1x256xf32>
    %124 = arith.addf %120, %123 : vector<1x256xf32>
    %125 = math.rsqrt %124 : vector<1x256xf32>
    %126 = vector.broadcast %125 : vector<1x256xf32> to vector<16x256xf32>
    %127 = arith.mulf %122, %126 : vector<16x256xf32>
    %128 = vector.broadcast %38 : vector<16x1xf32> to vector<16x256xf32>
    %129 = arith.mulf %127, %128 : vector<16x256xf32>
    %130 = vector.broadcast %39 : vector<16x1xf32> to vector<16x256xf32>
    %131 = arith.addf %129, %130 : vector<16x256xf32>
    %132 = vector.extract_strided_slice %62 {offsets = [0, 0], sizes = [16, 64], strides = [1, 1]} : vector<16x256xf32> to vector<16x64xf32>
    %133 = vector.shape_cast %132 : vector<16x64xf32> to vector<1x16x64xf32>
    %cst_46 = arith.constant dense<0.000000e+00> : vector<1xf32>
    %134 = vector.multi_reduction <add>, %133, %cst_46 [1, 2] : vector<1x16x64xf32> to vector<1xf32>
    %135 = vector.shape_cast %134 : vector<1xf32> to vector<1x1x1xf32>
    %136 = vector.extract %135[0, 0, 0] : f32 from vector<1x1x1xf32>
    %137 = vector.broadcast %136 : f32 to vector<1x1xf32>
    %cst_47 = arith.constant 1.024000e+03 : f32
    %138 = vector.broadcast %cst_47 : f32 to vector<1x1xf32>
    %139 = arith.divf %137, %138 : vector<1x1xf32>
    %140 = vector.broadcast %139 : vector<1x1xf32> to vector<16x64xf32>
    %141 = arith.subf %132, %140 : vector<16x64xf32>
    %142 = vector.extract_strided_slice %85 {offsets = [0, 0], sizes = [16, 64], strides = [1, 1]} : vector<16x256xf32> to vector<16x64xf32>
    %143 = vector.shape_cast %142 : vector<16x64xf32> to vector<1x16x64xf32>
    %cst_48 = arith.constant dense<0.000000e+00> : vector<1xf32>
    %144 = vector.multi_reduction <add>, %143, %cst_48 [1, 2] : vector<1x16x64xf32> to vector<1xf32>
    %145 = vector.shape_cast %144 : vector<1xf32> to vector<1x1x1xf32>
    %146 = vector.extract %145[0, 0, 0] : f32 from vector<1x1x1xf32>
    %147 = vector.broadcast %146 : f32 to vector<1x1xf32>
    %cst_49 = arith.constant 1.024000e+03 : f32
    %148 = vector.broadcast %cst_49 : f32 to vector<1x1xf32>
    %149 = arith.divf %147, %148 : vector<1x1xf32>
    %150 = vector.broadcast %149 : vector<1x1xf32> to vector<16x64xf32>
    %151 = arith.subf %142, %150 : vector<16x64xf32>
    %152 = vector.extract_strided_slice %108 {offsets = [0, 0], sizes = [16, 64], strides = [1, 1]} : vector<16x256xf32> to vector<16x64xf32>
    %153 = vector.shape_cast %152 : vector<16x64xf32> to vector<1x16x64xf32>
    %cst_50 = arith.constant dense<0.000000e+00> : vector<1xf32>
    %154 = vector.multi_reduction <add>, %153, %cst_50 [1, 2] : vector<1x16x64xf32> to vector<1xf32>
    %155 = vector.shape_cast %154 : vector<1xf32> to vector<1x1x1xf32>
    %156 = vector.extract %155[0, 0, 0] : f32 from vector<1x1x1xf32>
    %157 = vector.broadcast %156 : f32 to vector<1x1xf32>
    %cst_51 = arith.constant 1.024000e+03 : f32
    %158 = vector.broadcast %cst_51 : f32 to vector<1x1xf32>
    %159 = arith.divf %157, %158 : vector<1x1xf32>
    %160 = vector.broadcast %159 : vector<1x1xf32> to vector<16x64xf32>
    %161 = arith.subf %152, %160 : vector<16x64xf32>
    %162 = vector.extract_strided_slice %131 {offsets = [0, 0], sizes = [16, 64], strides = [1, 1]} : vector<16x256xf32> to vector<16x64xf32>
    %163 = vector.shape_cast %162 : vector<16x64xf32> to vector<1x16x64xf32>
    %cst_52 = arith.constant dense<0.000000e+00> : vector<1xf32>
    %164 = vector.multi_reduction <add>, %163, %cst_52 [1, 2] : vector<1x16x64xf32> to vector<1xf32>
    %165 = vector.shape_cast %164 : vector<1xf32> to vector<1x1x1xf32>
    %166 = vector.extract %165[0, 0, 0] : f32 from vector<1x1x1xf32>
    %167 = vector.broadcast %166 : f32 to vector<1x1xf32>
    %cst_53 = arith.constant 1.024000e+03 : f32
    %168 = vector.broadcast %cst_53 : f32 to vector<1x1xf32>
    %169 = arith.divf %167, %168 : vector<1x1xf32>
    %170 = vector.broadcast %169 : vector<1x1xf32> to vector<16x64xf32>
    %171 = arith.subf %162, %170 : vector<16x64xf32>
    %172 = arith.truncf %141 : vector<16x64xf32> to vector<16x64xbf16>
    %173 = arith.truncf %151 : vector<16x64xf32> to vector<16x64xbf16>
    %cst_54 = arith.constant dense<0.000000e+00> : vector<16x16xf32>
    %174 = tpu.matmul %172, %173, %cst_54 {dimension_numbers = #tpu.dot_dimension_numbers<[1], [1], [0], [0], [0, 0, 1, 0], [], []>} : vector<16x64xbf16>, vector<16x64xbf16>, vector<16x16xf32> -> vector<16x16xf32>
    %cst_55 = arith.constant 1.562500e-02 : f32
    %175 = vector.broadcast %cst_55 : f32 to vector<16x16xf32>
    %176 = arith.mulf %174, %175 : vector<16x16xf32>
    %177 = arith.mulf %176, %176 : vector<16x16xf32>
    %cst_56 = arith.constant dense<0.000000e+00> : vector<16xf32>
    %178 = vector.multi_reduction <add>, %177, %cst_56 [0] : vector<16x16xf32> to vector<16xf32>
    %179 = vector.shape_cast %178 : vector<16xf32> to vector<1x16xf32>
    %cst_57 = arith.constant 1.000000e-24 : f32
    %180 = vector.broadcast %cst_57 : f32 to vector<1x16xf32>
    %181 = arith.maximumf %179, %180 : vector<1x16xf32>
    %182 = math.rsqrt %181 : vector<1x16xf32>
    %183 = vector.broadcast %182 : vector<1x16xf32> to vector<16x16xf32>
    %184 = arith.mulf %176, %183 : vector<16x16xf32>
    %185 = arith.truncf %151 : vector<16x64xf32> to vector<16x64xbf16>
    %186 = arith.truncf %161 : vector<16x64xf32> to vector<16x64xbf16>
    %cst_58 = arith.constant dense<0.000000e+00> : vector<16x16xf32>
    %187 = tpu.matmul %185, %186, %cst_58 {dimension_numbers = #tpu.dot_dimension_numbers<[1], [1], [0], [0], [0, 0, 1, 0], [], []>} : vector<16x64xbf16>, vector<16x64xbf16>, vector<16x16xf32> -> vector<16x16xf32>
    %cst_59 = arith.constant 1.562500e-02 : f32
    %188 = vector.broadcast %cst_59 : f32 to vector<16x16xf32>
    %189 = arith.mulf %187, %188 : vector<16x16xf32>
    %190 = arith.mulf %189, %189 : vector<16x16xf32>
    %cst_60 = arith.constant dense<0.000000e+00> : vector<16xf32>
    %191 = vector.multi_reduction <add>, %190, %cst_60 [0] : vector<16x16xf32> to vector<16xf32>
    %192 = vector.shape_cast %191 : vector<16xf32> to vector<1x16xf32>
    %cst_61 = arith.constant 1.000000e-24 : f32
    %193 = vector.broadcast %cst_61 : f32 to vector<1x16xf32>
    %194 = arith.maximumf %192, %193 : vector<1x16xf32>
    %195 = math.rsqrt %194 : vector<1x16xf32>
    %196 = vector.broadcast %195 : vector<1x16xf32> to vector<16x16xf32>
    %197 = arith.mulf %189, %196 : vector<16x16xf32>
    %198 = arith.truncf %161 : vector<16x64xf32> to vector<16x64xbf16>
    %199 = arith.truncf %171 : vector<16x64xf32> to vector<16x64xbf16>
    %cst_62 = arith.constant dense<0.000000e+00> : vector<16x16xf32>
    %200 = tpu.matmul %198, %199, %cst_62 {dimension_numbers = #tpu.dot_dimension_numbers<[1], [1], [0], [0], [0, 0, 1, 0], [], []>} : vector<16x64xbf16>, vector<16x64xbf16>, vector<16x16xf32> -> vector<16x16xf32>
    %cst_63 = arith.constant 1.562500e-02 : f32
    %201 = vector.broadcast %cst_63 : f32 to vector<16x16xf32>
    %202 = arith.mulf %200, %201 : vector<16x16xf32>
    %203 = arith.mulf %202, %202 : vector<16x16xf32>
    %cst_64 = arith.constant dense<0.000000e+00> : vector<16xf32>
    %204 = vector.multi_reduction <add>, %203, %cst_64 [0] : vector<16x16xf32> to vector<16xf32>
    %205 = vector.shape_cast %204 : vector<16xf32> to vector<1x16xf32>
    %cst_65 = arith.constant 1.000000e-24 : f32
    %206 = vector.broadcast %cst_65 : f32 to vector<1x16xf32>
    %207 = arith.maximumf %205, %206 : vector<1x16xf32>
    %208 = math.rsqrt %207 : vector<1x16xf32>
    %209 = vector.broadcast %208 : vector<1x16xf32> to vector<16x16xf32>
    %210 = arith.mulf %202, %209 : vector<16x16xf32>
    %211 = tpu.concatenate %184, %197, %210 in 1 : vector<16x16xf32>, vector<16x16xf32>, vector<16x16xf32> -> vector<16x48xf32>
    %212 = vector.extract_strided_slice %62 {offsets = [0, 64], sizes = [16, 64], strides = [1, 1]} : vector<16x256xf32> to vector<16x64xf32>
    %213 = vector.shape_cast %212 : vector<16x64xf32> to vector<1x16x64xf32>
    %cst_66 = arith.constant dense<0.000000e+00> : vector<1xf32>
    %214 = vector.multi_reduction <add>, %213, %cst_66 [1, 2] : vector<1x16x64xf32> to vector<1xf32>
    %215 = vector.shape_cast %214 : vector<1xf32> to vector<1x1x1xf32>
    %216 = vector.extract %215[0, 0, 0] : f32 from vector<1x1x1xf32>
    %217 = vector.broadcast %216 : f32 to vector<1x1xf32>
    %cst_67 = arith.constant 1.024000e+03 : f32
    %218 = vector.broadcast %cst_67 : f32 to vector<1x1xf32>
    %219 = arith.divf %217, %218 : vector<1x1xf32>
    %220 = vector.broadcast %219 : vector<1x1xf32> to vector<16x64xf32>
    %221 = arith.subf %212, %220 : vector<16x64xf32>
    %222 = vector.extract_strided_slice %85 {offsets = [0, 64], sizes = [16, 64], strides = [1, 1]} : vector<16x256xf32> to vector<16x64xf32>
    %223 = vector.shape_cast %222 : vector<16x64xf32> to vector<1x16x64xf32>
    %cst_68 = arith.constant dense<0.000000e+00> : vector<1xf32>
    %224 = vector.multi_reduction <add>, %223, %cst_68 [1, 2] : vector<1x16x64xf32> to vector<1xf32>
    %225 = vector.shape_cast %224 : vector<1xf32> to vector<1x1x1xf32>
    %226 = vector.extract %225[0, 0, 0] : f32 from vector<1x1x1xf32>
    %227 = vector.broadcast %226 : f32 to vector<1x1xf32>
    %cst_69 = arith.constant 1.024000e+03 : f32
    %228 = vector.broadcast %cst_69 : f32 to vector<1x1xf32>
    %229 = arith.divf %227, %228 : vector<1x1xf32>
    %230 = vector.broadcast %229 : vector<1x1xf32> to vector<16x64xf32>
    %231 = arith.subf %222, %230 : vector<16x64xf32>
    %232 = vector.extract_strided_slice %108 {offsets = [0, 64], sizes = [16, 64], strides = [1, 1]} : vector<16x256xf32> to vector<16x64xf32>
    %233 = vector.shape_cast %232 : vector<16x64xf32> to vector<1x16x64xf32>
    %cst_70 = arith.constant dense<0.000000e+00> : vector<1xf32>
    %234 = vector.multi_reduction <add>, %233, %cst_70 [1, 2] : vector<1x16x64xf32> to vector<1xf32>
    %235 = vector.shape_cast %234 : vector<1xf32> to vector<1x1x1xf32>
    %236 = vector.extract %235[0, 0, 0] : f32 from vector<1x1x1xf32>
    %237 = vector.broadcast %236 : f32 to vector<1x1xf32>
    %cst_71 = arith.constant 1.024000e+03 : f32
    %238 = vector.broadcast %cst_71 : f32 to vector<1x1xf32>
    %239 = arith.divf %237, %238 : vector<1x1xf32>
    %240 = vector.broadcast %239 : vector<1x1xf32> to vector<16x64xf32>
    %241 = arith.subf %232, %240 : vector<16x64xf32>
    %242 = vector.extract_strided_slice %131 {offsets = [0, 64], sizes = [16, 64], strides = [1, 1]} : vector<16x256xf32> to vector<16x64xf32>
    %243 = vector.shape_cast %242 : vector<16x64xf32> to vector<1x16x64xf32>
    %cst_72 = arith.constant dense<0.000000e+00> : vector<1xf32>
    %244 = vector.multi_reduction <add>, %243, %cst_72 [1, 2] : vector<1x16x64xf32> to vector<1xf32>
    %245 = vector.shape_cast %244 : vector<1xf32> to vector<1x1x1xf32>
    %246 = vector.extract %245[0, 0, 0] : f32 from vector<1x1x1xf32>
    %247 = vector.broadcast %246 : f32 to vector<1x1xf32>
    %cst_73 = arith.constant 1.024000e+03 : f32
    %248 = vector.broadcast %cst_73 : f32 to vector<1x1xf32>
    %249 = arith.divf %247, %248 : vector<1x1xf32>
    %250 = vector.broadcast %249 : vector<1x1xf32> to vector<16x64xf32>
    %251 = arith.subf %242, %250 : vector<16x64xf32>
    %252 = arith.truncf %221 : vector<16x64xf32> to vector<16x64xbf16>
    %253 = arith.truncf %231 : vector<16x64xf32> to vector<16x64xbf16>
    %cst_74 = arith.constant dense<0.000000e+00> : vector<16x16xf32>
    %254 = tpu.matmul %252, %253, %cst_74 {dimension_numbers = #tpu.dot_dimension_numbers<[1], [1], [0], [0], [0, 0, 1, 0], [], []>} : vector<16x64xbf16>, vector<16x64xbf16>, vector<16x16xf32> -> vector<16x16xf32>
    %cst_75 = arith.constant 1.562500e-02 : f32
    %255 = vector.broadcast %cst_75 : f32 to vector<16x16xf32>
    %256 = arith.mulf %254, %255 : vector<16x16xf32>
    %257 = arith.mulf %256, %256 : vector<16x16xf32>
    %cst_76 = arith.constant dense<0.000000e+00> : vector<16xf32>
    %258 = vector.multi_reduction <add>, %257, %cst_76 [0] : vector<16x16xf32> to vector<16xf32>
    %259 = vector.shape_cast %258 : vector<16xf32> to vector<1x16xf32>
    %cst_77 = arith.constant 1.000000e-24 : f32
    %260 = vector.broadcast %cst_77 : f32 to vector<1x16xf32>
    %261 = arith.maximumf %259, %260 : vector<1x16xf32>
    %262 = math.rsqrt %261 : vector<1x16xf32>
    %263 = vector.broadcast %262 : vector<1x16xf32> to vector<16x16xf32>
    %264 = arith.mulf %256, %263 : vector<16x16xf32>
    %265 = arith.truncf %231 : vector<16x64xf32> to vector<16x64xbf16>
    %266 = arith.truncf %241 : vector<16x64xf32> to vector<16x64xbf16>
    %cst_78 = arith.constant dense<0.000000e+00> : vector<16x16xf32>
    %267 = tpu.matmul %265, %266, %cst_78 {dimension_numbers = #tpu.dot_dimension_numbers<[1], [1], [0], [0], [0, 0, 1, 0], [], []>} : vector<16x64xbf16>, vector<16x64xbf16>, vector<16x16xf32> -> vector<16x16xf32>
    %cst_79 = arith.constant 1.562500e-02 : f32
    %268 = vector.broadcast %cst_79 : f32 to vector<16x16xf32>
    %269 = arith.mulf %267, %268 : vector<16x16xf32>
    %270 = arith.mulf %269, %269 : vector<16x16xf32>
    %cst_80 = arith.constant dense<0.000000e+00> : vector<16xf32>
    %271 = vector.multi_reduction <add>, %270, %cst_80 [0] : vector<16x16xf32> to vector<16xf32>
    %272 = vector.shape_cast %271 : vector<16xf32> to vector<1x16xf32>
    %cst_81 = arith.constant 1.000000e-24 : f32
    %273 = vector.broadcast %cst_81 : f32 to vector<1x16xf32>
    %274 = arith.maximumf %272, %273 : vector<1x16xf32>
    %275 = math.rsqrt %274 : vector<1x16xf32>
    %276 = vector.broadcast %275 : vector<1x16xf32> to vector<16x16xf32>
    %277 = arith.mulf %269, %276 : vector<16x16xf32>
    %278 = arith.truncf %241 : vector<16x64xf32> to vector<16x64xbf16>
    %279 = arith.truncf %251 : vector<16x64xf32> to vector<16x64xbf16>
    %cst_82 = arith.constant dense<0.000000e+00> : vector<16x16xf32>
    %280 = tpu.matmul %278, %279, %cst_82 {dimension_numbers = #tpu.dot_dimension_numbers<[1], [1], [0], [0], [0, 0, 1, 0], [], []>} : vector<16x64xbf16>, vector<16x64xbf16>, vector<16x16xf32> -> vector<16x16xf32>
    %cst_83 = arith.constant 1.562500e-02 : f32
    %281 = vector.broadcast %cst_83 : f32 to vector<16x16xf32>
    %282 = arith.mulf %280, %281 : vector<16x16xf32>
    %283 = arith.mulf %282, %282 : vector<16x16xf32>
    %cst_84 = arith.constant dense<0.000000e+00> : vector<16xf32>
    %284 = vector.multi_reduction <add>, %283, %cst_84 [0] : vector<16x16xf32> to vector<16xf32>
    %285 = vector.shape_cast %284 : vector<16xf32> to vector<1x16xf32>
    %cst_85 = arith.constant 1.000000e-24 : f32
    %286 = vector.broadcast %cst_85 : f32 to vector<1x16xf32>
    %287 = arith.maximumf %285, %286 : vector<1x16xf32>
    %288 = math.rsqrt %287 : vector<1x16xf32>
    %289 = vector.broadcast %288 : vector<1x16xf32> to vector<16x16xf32>
    %290 = arith.mulf %282, %289 : vector<16x16xf32>
    %291 = tpu.concatenate %264, %277, %290 in 1 : vector<16x16xf32>, vector<16x16xf32>, vector<16x16xf32> -> vector<16x48xf32>
    %292 = vector.extract_strided_slice %62 {offsets = [0, 128], sizes = [16, 64], strides = [1, 1]} : vector<16x256xf32> to vector<16x64xf32>
    %293 = vector.shape_cast %292 : vector<16x64xf32> to vector<1x16x64xf32>
    %cst_86 = arith.constant dense<0.000000e+00> : vector<1xf32>
    %294 = vector.multi_reduction <add>, %293, %cst_86 [1, 2] : vector<1x16x64xf32> to vector<1xf32>
    %295 = vector.shape_cast %294 : vector<1xf32> to vector<1x1x1xf32>
    %296 = vector.extract %295[0, 0, 0] : f32 from vector<1x1x1xf32>
    %297 = vector.broadcast %296 : f32 to vector<1x1xf32>
    %cst_87 = arith.constant 1.024000e+03 : f32
    %298 = vector.broadcast %cst_87 : f32 to vector<1x1xf32>
    %299 = arith.divf %297, %298 : vector<1x1xf32>
    %300 = vector.broadcast %299 : vector<1x1xf32> to vector<16x64xf32>
    %301 = arith.subf %292, %300 : vector<16x64xf32>
    %302 = vector.extract_strided_slice %85 {offsets = [0, 128], sizes = [16, 64], strides = [1, 1]} : vector<16x256xf32> to vector<16x64xf32>
    %303 = vector.shape_cast %302 : vector<16x64xf32> to vector<1x16x64xf32>
    %cst_88 = arith.constant dense<0.000000e+00> : vector<1xf32>
    %304 = vector.multi_reduction <add>, %303, %cst_88 [1, 2] : vector<1x16x64xf32> to vector<1xf32>
    %305 = vector.shape_cast %304 : vector<1xf32> to vector<1x1x1xf32>
    %306 = vector.extract %305[0, 0, 0] : f32 from vector<1x1x1xf32>
    %307 = vector.broadcast %306 : f32 to vector<1x1xf32>
    %cst_89 = arith.constant 1.024000e+03 : f32
    %308 = vector.broadcast %cst_89 : f32 to vector<1x1xf32>
    %309 = arith.divf %307, %308 : vector<1x1xf32>
    %310 = vector.broadcast %309 : vector<1x1xf32> to vector<16x64xf32>
    %311 = arith.subf %302, %310 : vector<16x64xf32>
    %312 = vector.extract_strided_slice %108 {offsets = [0, 128], sizes = [16, 64], strides = [1, 1]} : vector<16x256xf32> to vector<16x64xf32>
    %313 = vector.shape_cast %312 : vector<16x64xf32> to vector<1x16x64xf32>
    %cst_90 = arith.constant dense<0.000000e+00> : vector<1xf32>
    %314 = vector.multi_reduction <add>, %313, %cst_90 [1, 2] : vector<1x16x64xf32> to vector<1xf32>
    %315 = vector.shape_cast %314 : vector<1xf32> to vector<1x1x1xf32>
    %316 = vector.extract %315[0, 0, 0] : f32 from vector<1x1x1xf32>
    %317 = vector.broadcast %316 : f32 to vector<1x1xf32>
    %cst_91 = arith.constant 1.024000e+03 : f32
    %318 = vector.broadcast %cst_91 : f32 to vector<1x1xf32>
    %319 = arith.divf %317, %318 : vector<1x1xf32>
    %320 = vector.broadcast %319 : vector<1x1xf32> to vector<16x64xf32>
    %321 = arith.subf %312, %320 : vector<16x64xf32>
    %322 = vector.extract_strided_slice %131 {offsets = [0, 128], sizes = [16, 64], strides = [1, 1]} : vector<16x256xf32> to vector<16x64xf32>
    %323 = vector.shape_cast %322 : vector<16x64xf32> to vector<1x16x64xf32>
    %cst_92 = arith.constant dense<0.000000e+00> : vector<1xf32>
    %324 = vector.multi_reduction <add>, %323, %cst_92 [1, 2] : vector<1x16x64xf32> to vector<1xf32>
    %325 = vector.shape_cast %324 : vector<1xf32> to vector<1x1x1xf32>
    %326 = vector.extract %325[0, 0, 0] : f32 from vector<1x1x1xf32>
    %327 = vector.broadcast %326 : f32 to vector<1x1xf32>
    %cst_93 = arith.constant 1.024000e+03 : f32
    %328 = vector.broadcast %cst_93 : f32 to vector<1x1xf32>
    %329 = arith.divf %327, %328 : vector<1x1xf32>
    %330 = vector.broadcast %329 : vector<1x1xf32> to vector<16x64xf32>
    %331 = arith.subf %322, %330 : vector<16x64xf32>
    %332 = arith.truncf %301 : vector<16x64xf32> to vector<16x64xbf16>
    %333 = arith.truncf %311 : vector<16x64xf32> to vector<16x64xbf16>
    %cst_94 = arith.constant dense<0.000000e+00> : vector<16x16xf32>
    %334 = tpu.matmul %332, %333, %cst_94 {dimension_numbers = #tpu.dot_dimension_numbers<[1], [1], [0], [0], [0, 0, 1, 0], [], []>} : vector<16x64xbf16>, vector<16x64xbf16>, vector<16x16xf32> -> vector<16x16xf32>
    %cst_95 = arith.constant 1.562500e-02 : f32
    %335 = vector.broadcast %cst_95 : f32 to vector<16x16xf32>
    %336 = arith.mulf %334, %335 : vector<16x16xf32>
    %337 = arith.mulf %336, %336 : vector<16x16xf32>
    %cst_96 = arith.constant dense<0.000000e+00> : vector<16xf32>
    %338 = vector.multi_reduction <add>, %337, %cst_96 [0] : vector<16x16xf32> to vector<16xf32>
    %339 = vector.shape_cast %338 : vector<16xf32> to vector<1x16xf32>
    %cst_97 = arith.constant 1.000000e-24 : f32
    %340 = vector.broadcast %cst_97 : f32 to vector<1x16xf32>
    %341 = arith.maximumf %339, %340 : vector<1x16xf32>
    %342 = math.rsqrt %341 : vector<1x16xf32>
    %343 = vector.broadcast %342 : vector<1x16xf32> to vector<16x16xf32>
    %344 = arith.mulf %336, %343 : vector<16x16xf32>
    %345 = arith.truncf %311 : vector<16x64xf32> to vector<16x64xbf16>
    %346 = arith.truncf %321 : vector<16x64xf32> to vector<16x64xbf16>
    %cst_98 = arith.constant dense<0.000000e+00> : vector<16x16xf32>
    %347 = tpu.matmul %345, %346, %cst_98 {dimension_numbers = #tpu.dot_dimension_numbers<[1], [1], [0], [0], [0, 0, 1, 0], [], []>} : vector<16x64xbf16>, vector<16x64xbf16>, vector<16x16xf32> -> vector<16x16xf32>
    %cst_99 = arith.constant 1.562500e-02 : f32
    %348 = vector.broadcast %cst_99 : f32 to vector<16x16xf32>
    %349 = arith.mulf %347, %348 : vector<16x16xf32>
    %350 = arith.mulf %349, %349 : vector<16x16xf32>
    %cst_100 = arith.constant dense<0.000000e+00> : vector<16xf32>
    %351 = vector.multi_reduction <add>, %350, %cst_100 [0] : vector<16x16xf32> to vector<16xf32>
    %352 = vector.shape_cast %351 : vector<16xf32> to vector<1x16xf32>
    %cst_101 = arith.constant 1.000000e-24 : f32
    %353 = vector.broadcast %cst_101 : f32 to vector<1x16xf32>
    %354 = arith.maximumf %352, %353 : vector<1x16xf32>
    %355 = math.rsqrt %354 : vector<1x16xf32>
    %356 = vector.broadcast %355 : vector<1x16xf32> to vector<16x16xf32>
    %357 = arith.mulf %349, %356 : vector<16x16xf32>
    %358 = arith.truncf %321 : vector<16x64xf32> to vector<16x64xbf16>
    %359 = arith.truncf %331 : vector<16x64xf32> to vector<16x64xbf16>
    %cst_102 = arith.constant dense<0.000000e+00> : vector<16x16xf32>
    %360 = tpu.matmul %358, %359, %cst_102 {dimension_numbers = #tpu.dot_dimension_numbers<[1], [1], [0], [0], [0, 0, 1, 0], [], []>} : vector<16x64xbf16>, vector<16x64xbf16>, vector<16x16xf32> -> vector<16x16xf32>
    %cst_103 = arith.constant 1.562500e-02 : f32
    %361 = vector.broadcast %cst_103 : f32 to vector<16x16xf32>
    %362 = arith.mulf %360, %361 : vector<16x16xf32>
    %363 = arith.mulf %362, %362 : vector<16x16xf32>
    %cst_104 = arith.constant dense<0.000000e+00> : vector<16xf32>
    %364 = vector.multi_reduction <add>, %363, %cst_104 [0] : vector<16x16xf32> to vector<16xf32>
    %365 = vector.shape_cast %364 : vector<16xf32> to vector<1x16xf32>
    %cst_105 = arith.constant 1.000000e-24 : f32
    %366 = vector.broadcast %cst_105 : f32 to vector<1x16xf32>
    %367 = arith.maximumf %365, %366 : vector<1x16xf32>
    %368 = math.rsqrt %367 : vector<1x16xf32>
    %369 = vector.broadcast %368 : vector<1x16xf32> to vector<16x16xf32>
    %370 = arith.mulf %362, %369 : vector<16x16xf32>
    %371 = tpu.concatenate %344, %357, %370 in 1 : vector<16x16xf32>, vector<16x16xf32>, vector<16x16xf32> -> vector<16x48xf32>
    %372 = vector.extract_strided_slice %62 {offsets = [0, 192], sizes = [16, 64], strides = [1, 1]} : vector<16x256xf32> to vector<16x64xf32>
    %373 = vector.shape_cast %372 : vector<16x64xf32> to vector<1x16x64xf32>
    %cst_106 = arith.constant dense<0.000000e+00> : vector<1xf32>
    %374 = vector.multi_reduction <add>, %373, %cst_106 [1, 2] : vector<1x16x64xf32> to vector<1xf32>
    %375 = vector.shape_cast %374 : vector<1xf32> to vector<1x1x1xf32>
    %376 = vector.extract %375[0, 0, 0] : f32 from vector<1x1x1xf32>
    %377 = vector.broadcast %376 : f32 to vector<1x1xf32>
    %cst_107 = arith.constant 1.024000e+03 : f32
    %378 = vector.broadcast %cst_107 : f32 to vector<1x1xf32>
    %379 = arith.divf %377, %378 : vector<1x1xf32>
    %380 = vector.broadcast %379 : vector<1x1xf32> to vector<16x64xf32>
    %381 = arith.subf %372, %380 : vector<16x64xf32>
    %382 = vector.extract_strided_slice %85 {offsets = [0, 192], sizes = [16, 64], strides = [1, 1]} : vector<16x256xf32> to vector<16x64xf32>
    %383 = vector.shape_cast %382 : vector<16x64xf32> to vector<1x16x64xf32>
    %cst_108 = arith.constant dense<0.000000e+00> : vector<1xf32>
    %384 = vector.multi_reduction <add>, %383, %cst_108 [1, 2] : vector<1x16x64xf32> to vector<1xf32>
    %385 = vector.shape_cast %384 : vector<1xf32> to vector<1x1x1xf32>
    %386 = vector.extract %385[0, 0, 0] : f32 from vector<1x1x1xf32>
    %387 = vector.broadcast %386 : f32 to vector<1x1xf32>
    %cst_109 = arith.constant 1.024000e+03 : f32
    %388 = vector.broadcast %cst_109 : f32 to vector<1x1xf32>
    %389 = arith.divf %387, %388 : vector<1x1xf32>
    %390 = vector.broadcast %389 : vector<1x1xf32> to vector<16x64xf32>
    %391 = arith.subf %382, %390 : vector<16x64xf32>
    %392 = vector.extract_strided_slice %108 {offsets = [0, 192], sizes = [16, 64], strides = [1, 1]} : vector<16x256xf32> to vector<16x64xf32>
    %393 = vector.shape_cast %392 : vector<16x64xf32> to vector<1x16x64xf32>
    %cst_110 = arith.constant dense<0.000000e+00> : vector<1xf32>
    %394 = vector.multi_reduction <add>, %393, %cst_110 [1, 2] : vector<1x16x64xf32> to vector<1xf32>
    %395 = vector.shape_cast %394 : vector<1xf32> to vector<1x1x1xf32>
    %396 = vector.extract %395[0, 0, 0] : f32 from vector<1x1x1xf32>
    %397 = vector.broadcast %396 : f32 to vector<1x1xf32>
    %cst_111 = arith.constant 1.024000e+03 : f32
    %398 = vector.broadcast %cst_111 : f32 to vector<1x1xf32>
    %399 = arith.divf %397, %398 : vector<1x1xf32>
    %400 = vector.broadcast %399 : vector<1x1xf32> to vector<16x64xf32>
    %401 = arith.subf %392, %400 : vector<16x64xf32>
    %402 = vector.extract_strided_slice %131 {offsets = [0, 192], sizes = [16, 64], strides = [1, 1]} : vector<16x256xf32> to vector<16x64xf32>
    %403 = vector.shape_cast %402 : vector<16x64xf32> to vector<1x16x64xf32>
    %cst_112 = arith.constant dense<0.000000e+00> : vector<1xf32>
    %404 = vector.multi_reduction <add>, %403, %cst_112 [1, 2] : vector<1x16x64xf32> to vector<1xf32>
    %405 = vector.shape_cast %404 : vector<1xf32> to vector<1x1x1xf32>
    %406 = vector.extract %405[0, 0, 0] : f32 from vector<1x1x1xf32>
    %407 = vector.broadcast %406 : f32 to vector<1x1xf32>
    %cst_113 = arith.constant 1.024000e+03 : f32
    %408 = vector.broadcast %cst_113 : f32 to vector<1x1xf32>
    %409 = arith.divf %407, %408 : vector<1x1xf32>
    %410 = vector.broadcast %409 : vector<1x1xf32> to vector<16x64xf32>
    %411 = arith.subf %402, %410 : vector<16x64xf32>
    %412 = arith.truncf %381 : vector<16x64xf32> to vector<16x64xbf16>
    %413 = arith.truncf %391 : vector<16x64xf32> to vector<16x64xbf16>
    %cst_114 = arith.constant dense<0.000000e+00> : vector<16x16xf32>
    %414 = tpu.matmul %412, %413, %cst_114 {dimension_numbers = #tpu.dot_dimension_numbers<[1], [1], [0], [0], [0, 0, 1, 0], [], []>} : vector<16x64xbf16>, vector<16x64xbf16>, vector<16x16xf32> -> vector<16x16xf32>
    %cst_115 = arith.constant 1.562500e-02 : f32
    %415 = vector.broadcast %cst_115 : f32 to vector<16x16xf32>
    %416 = arith.mulf %414, %415 : vector<16x16xf32>
    %417 = arith.mulf %416, %416 : vector<16x16xf32>
    %cst_116 = arith.constant dense<0.000000e+00> : vector<16xf32>
    %418 = vector.multi_reduction <add>, %417, %cst_116 [0] : vector<16x16xf32> to vector<16xf32>
    %419 = vector.shape_cast %418 : vector<16xf32> to vector<1x16xf32>
    %cst_117 = arith.constant 1.000000e-24 : f32
    %420 = vector.broadcast %cst_117 : f32 to vector<1x16xf32>
    %421 = arith.maximumf %419, %420 : vector<1x16xf32>
    %422 = math.rsqrt %421 : vector<1x16xf32>
    %423 = vector.broadcast %422 : vector<1x16xf32> to vector<16x16xf32>
    %424 = arith.mulf %416, %423 : vector<16x16xf32>
    %425 = arith.truncf %391 : vector<16x64xf32> to vector<16x64xbf16>
    %426 = arith.truncf %401 : vector<16x64xf32> to vector<16x64xbf16>
    %cst_118 = arith.constant dense<0.000000e+00> : vector<16x16xf32>
    %427 = tpu.matmul %425, %426, %cst_118 {dimension_numbers = #tpu.dot_dimension_numbers<[1], [1], [0], [0], [0, 0, 1, 0], [], []>} : vector<16x64xbf16>, vector<16x64xbf16>, vector<16x16xf32> -> vector<16x16xf32>
    %cst_119 = arith.constant 1.562500e-02 : f32
    %428 = vector.broadcast %cst_119 : f32 to vector<16x16xf32>
    %429 = arith.mulf %427, %428 : vector<16x16xf32>
    %430 = arith.mulf %429, %429 : vector<16x16xf32>
    %cst_120 = arith.constant dense<0.000000e+00> : vector<16xf32>
    %431 = vector.multi_reduction <add>, %430, %cst_120 [0] : vector<16x16xf32> to vector<16xf32>
    %432 = vector.shape_cast %431 : vector<16xf32> to vector<1x16xf32>
    %cst_121 = arith.constant 1.000000e-24 : f32
    %433 = vector.broadcast %cst_121 : f32 to vector<1x16xf32>
    %434 = arith.maximumf %432, %433 : vector<1x16xf32>
    %435 = math.rsqrt %434 : vector<1x16xf32>
    %436 = vector.broadcast %435 : vector<1x16xf32> to vector<16x16xf32>
    %437 = arith.mulf %429, %436 : vector<16x16xf32>
    %438 = arith.truncf %401 : vector<16x64xf32> to vector<16x64xbf16>
    %439 = arith.truncf %411 : vector<16x64xf32> to vector<16x64xbf16>
    %cst_122 = arith.constant dense<0.000000e+00> : vector<16x16xf32>
    %440 = tpu.matmul %438, %439, %cst_122 {dimension_numbers = #tpu.dot_dimension_numbers<[1], [1], [0], [0], [0, 0, 1, 0], [], []>} : vector<16x64xbf16>, vector<16x64xbf16>, vector<16x16xf32> -> vector<16x16xf32>
    %cst_123 = arith.constant 1.562500e-02 : f32
    %441 = vector.broadcast %cst_123 : f32 to vector<16x16xf32>
    %442 = arith.mulf %440, %441 : vector<16x16xf32>
    %443 = arith.mulf %442, %442 : vector<16x16xf32>
    %cst_124 = arith.constant dense<0.000000e+00> : vector<16xf32>
    %444 = vector.multi_reduction <add>, %443, %cst_124 [0] : vector<16x16xf32> to vector<16xf32>
    %445 = vector.shape_cast %444 : vector<16xf32> to vector<1x16xf32>
    %cst_125 = arith.constant 1.000000e-24 : f32
    %446 = vector.broadcast %cst_125 : f32 to vector<1x16xf32>
    %447 = arith.maximumf %445, %446 : vector<1x16xf32>
    %448 = math.rsqrt %447 : vector<1x16xf32>
    %449 = vector.broadcast %448 : vector<1x16xf32> to vector<16x16xf32>
    %450 = arith.mulf %442, %449 : vector<16x16xf32>
    %451 = tpu.concatenate %424, %437, %450 in 1 : vector<16x16xf32>, vector<16x16xf32>, vector<16x16xf32> -> vector<16x48xf32>
    %452 = tpu.concatenate %211, %291, %371, %451 in 0 : vector<16x48xf32>, vector<16x48xf32>, vector<16x48xf32>, vector<16x48xf32> -> vector<64x48xf32>
    %453 = arith.truncf %452 : vector<64x48xf32> to vector<64x48xbf16>
    %c0_126 = arith.constant 0 : index
    %c0_127 = arith.constant 0 : index
    %454 = vector.load %arg11[%c0_126, %c0_127] : memref<84x64xbf16, #tpu.memory_space<vmem>>, vector<84x64xbf16>
    %cst_128 = arith.constant dense<0.000000e+00> : vector<84x48xf32>
    %455 = tpu.matmul %454, %453, %cst_128 {dimension_numbers = #tpu.dot_dimension_numbers<[1], [0], [0], [1], [0, 0, 1, 1], [], []>} : vector<84x64xbf16>, vector<64x48xbf16>, vector<84x48xf32> -> vector<84x48xf32>
    %456 = arith.truncf %455 : vector<84x48xf32> to vector<84x48xbf16>
    %cst_129 = arith.constant 0.000000e+00 : f32
    %457 = vector.broadcast %cst_129 : f32 to vector<28x21xf32>
    %458 = vector.extract_strided_slice %456 {offsets = [0, 0], sizes = [28, 48], strides = [1, 1]} : vector<84x48xbf16> to vector<28x48xbf16>
    %c0_130 = arith.constant 0 : index
    %c0_131 = arith.constant 0 : index
    %c0_132 = arith.constant 0 : index
    %459 = vector.load %arg12[%c0_130, %c0_131, %c0_132] : memref<3x48x21xbf16, #tpu.memory_space<vmem>>, vector<1x48x21xbf16>
    %460 = vector.shape_cast %459 : vector<1x48x21xbf16> to vector<48x21xbf16>
    %cst_133 = arith.constant dense<0.000000e+00> : vector<28x21xf32>
    %461 = tpu.matmul %458, %460, %cst_133 {dimension_numbers = #tpu.dot_dimension_numbers<[1], [0], [0], [1], [0, 0, 1, 1], [], []>} : vector<28x48xbf16>, vector<48x21xbf16>, vector<28x21xf32> -> vector<28x21xf32>
    %462 = arith.addf %457, %461 : vector<28x21xf32>
    %463 = vector.extract_strided_slice %456 {offsets = [28, 0], sizes = [28, 48], strides = [1, 1]} : vector<84x48xbf16> to vector<28x48xbf16>
    %c1 = arith.constant 1 : index
    %c0_134 = arith.constant 0 : index
    %c0_135 = arith.constant 0 : index
    %464 = vector.load %arg12[%c1, %c0_134, %c0_135] : memref<3x48x21xbf16, #tpu.memory_space<vmem>>, vector<1x48x21xbf16>
    %465 = vector.shape_cast %464 : vector<1x48x21xbf16> to vector<48x21xbf16>
    %cst_136 = arith.constant dense<0.000000e+00> : vector<28x21xf32>
    %466 = tpu.matmul %463, %465, %cst_136 {dimension_numbers = #tpu.dot_dimension_numbers<[1], [0], [0], [1], [0, 0, 1, 1], [], []>} : vector<28x48xbf16>, vector<48x21xbf16>, vector<28x21xf32> -> vector<28x21xf32>
    %467 = arith.addf %462, %466 : vector<28x21xf32>
    %468 = vector.extract_strided_slice %456 {offsets = [56, 0], sizes = [28, 48], strides = [1, 1]} : vector<84x48xbf16> to vector<28x48xbf16>
    %c2 = arith.constant 2 : index
    %c0_137 = arith.constant 0 : index
    %c0_138 = arith.constant 0 : index
    %469 = vector.load %arg12[%c2, %c0_137, %c0_138] : memref<3x48x21xbf16, #tpu.memory_space<vmem>>, vector<1x48x21xbf16>
    %470 = vector.shape_cast %469 : vector<1x48x21xbf16> to vector<48x21xbf16>
    %cst_139 = arith.constant dense<0.000000e+00> : vector<28x21xf32>
    %471 = tpu.matmul %468, %470, %cst_139 {dimension_numbers = #tpu.dot_dimension_numbers<[1], [0], [0], [1], [0, 0, 1, 1], [], []>} : vector<28x48xbf16>, vector<48x21xbf16>, vector<28x21xf32> -> vector<28x21xf32>
    %472 = arith.addf %467, %471 : vector<28x21xf32>
    %cst_140 = arith.constant 5.000000e-01 : f32
    %473 = vector.broadcast %cst_140 : f32 to vector<28x21xf32>
    %474 = arith.mulf %473, %472 : vector<28x21xf32>
    %cst_141 = arith.constant 0.707106769 : f32
    %475 = vector.broadcast %cst_141 : f32 to vector<28x21xf32>
    %476 = arith.mulf %472, %475 : vector<28x21xf32>
    %477 = math.absf %476 : vector<28x21xf32>
    %cst_142 = arith.constant 0.327591091 : f32
    %478 = vector.broadcast %cst_142 : f32 to vector<28x21xf32>
    %479 = arith.mulf %478, %477 : vector<28x21xf32>
    %cst_143 = arith.constant 1.000000e+00 : f32
    %480 = vector.broadcast %cst_143 : f32 to vector<28x21xf32>
    %481 = arith.addf %480, %479 : vector<28x21xf32>
    %cst_144 = arith.constant 1.000000e+00 : f32
    %482 = vector.broadcast %cst_144 : f32 to vector<28x21xf32>
    %483 = arith.divf %482, %481 : vector<28x21xf32>
    %cst_145 = arith.constant 1.06140542 : f32
    %484 = vector.broadcast %cst_145 : f32 to vector<28x21xf32>
    %485 = arith.mulf %484, %483 : vector<28x21xf32>
    %cst_146 = arith.constant -1.45315206 : f32
    %486 = vector.broadcast %cst_146 : f32 to vector<28x21xf32>
    %487 = arith.addf %485, %486 : vector<28x21xf32>
    %488 = arith.mulf %487, %483 : vector<28x21xf32>
    %cst_147 = arith.constant 1.42141378 : f32
    %489 = vector.broadcast %cst_147 : f32 to vector<28x21xf32>
    %490 = arith.addf %488, %489 : vector<28x21xf32>
    %491 = arith.mulf %490, %483 : vector<28x21xf32>
    %cst_148 = arith.constant -0.284496725 : f32
    %492 = vector.broadcast %cst_148 : f32 to vector<28x21xf32>
    %493 = arith.addf %491, %492 : vector<28x21xf32>
    %494 = arith.mulf %493, %483 : vector<28x21xf32>
    %cst_149 = arith.constant 0.254829586 : f32
    %495 = vector.broadcast %cst_149 : f32 to vector<28x21xf32>
    %496 = arith.addf %494, %495 : vector<28x21xf32>
    %497 = arith.mulf %496, %483 : vector<28x21xf32>
    %cst_150 = arith.constant 0.000000e+00 : f32
    %498 = vector.broadcast %cst_150 : f32 to vector<28x21xf32>
    %499 = arith.subf %498, %477 : vector<28x21xf32>
    %500 = arith.mulf %499, %477 : vector<28x21xf32>
    %501 = math.exp %500 : vector<28x21xf32>
    %502 = arith.mulf %497, %501 : vector<28x21xf32>
    %cst_151 = arith.constant 1.000000e+00 : f32
    %503 = vector.broadcast %cst_151 : f32 to vector<28x21xf32>
    %504 = arith.subf %503, %502 : vector<28x21xf32>
    %cst_152 = arith.constant 0.000000e+00 : f32
    %505 = vector.broadcast %cst_152 : f32 to vector<28x21xf32>
    %506 = arith.cmpf oge, %476, %505 : vector<28x21xf32>
    %cst_153 = arith.constant 0.000000e+00 : f32
    %507 = vector.broadcast %cst_153 : f32 to vector<28x21xf32>
    %508 = arith.subf %507, %504 : vector<28x21xf32>
    %509 = arith.select %506, %504, %508 : vector<28x21xi1>, vector<28x21xf32>
    %cst_154 = arith.constant 1.000000e+00 : f32
    %510 = vector.broadcast %cst_154 : f32 to vector<28x21xf32>
    %511 = arith.addf %510, %509 : vector<28x21xf32>
    %512 = arith.mulf %474, %511 : vector<28x21xf32>
    %c0_155 = arith.constant 0 : index
    %c0_156 = arith.constant 0 : index
    %513 = vector.load %arg13[%c0_155, %c0_156] : memref<36x28xbf16, #tpu.memory_space<vmem>>, vector<36x28xbf16>
    %514 = arith.truncf %512 : vector<28x21xf32> to vector<28x21xbf16>
    %cst_157 = arith.constant dense<0.000000e+00> : vector<36x21xf32>
    %515 = tpu.matmul %513, %514, %cst_157 {dimension_numbers = #tpu.dot_dimension_numbers<[1], [0], [0], [1], [0, 0, 1, 1], [], []>} : vector<36x28xbf16>, vector<28x21xbf16>, vector<36x21xf32> -> vector<36x21xf32>
    %516 = arith.truncf %515 : vector<36x21xf32> to vector<36x21xbf16>
    %cst_158 = arith.constant 0.000000e+00 : f32
    %517 = vector.broadcast %cst_158 : f32 to vector<12x9xf32>
    %518 = vector.extract_strided_slice %516 {offsets = [0, 0], sizes = [12, 21], strides = [1, 1]} : vector<36x21xbf16> to vector<12x21xbf16>
    %c0_159 = arith.constant 0 : index
    %c0_160 = arith.constant 0 : index
    %c0_161 = arith.constant 0 : index
    %519 = vector.load %arg14[%c0_159, %c0_160, %c0_161] : memref<3x21x9xbf16, #tpu.memory_space<vmem>>, vector<1x21x9xbf16>
    %520 = vector.shape_cast %519 : vector<1x21x9xbf16> to vector<21x9xbf16>
    %cst_162 = arith.constant dense<0.000000e+00> : vector<12x9xf32>
    %521 = tpu.matmul %518, %520, %cst_162 {dimension_numbers = #tpu.dot_dimension_numbers<[1], [0], [0], [1], [0, 0, 1, 1], [], []>} : vector<12x21xbf16>, vector<21x9xbf16>, vector<12x9xf32> -> vector<12x9xf32>
    %522 = arith.addf %517, %521 : vector<12x9xf32>
    %523 = vector.extract_strided_slice %516 {offsets = [12, 0], sizes = [12, 21], strides = [1, 1]} : vector<36x21xbf16> to vector<12x21xbf16>
    %c1_163 = arith.constant 1 : index
    %c0_164 = arith.constant 0 : index
    %c0_165 = arith.constant 0 : index
    %524 = vector.load %arg14[%c1_163, %c0_164, %c0_165] : memref<3x21x9xbf16, #tpu.memory_space<vmem>>, vector<1x21x9xbf16>
    %525 = vector.shape_cast %524 : vector<1x21x9xbf16> to vector<21x9xbf16>
    %cst_166 = arith.constant dense<0.000000e+00> : vector<12x9xf32>
    %526 = tpu.matmul %523, %525, %cst_166 {dimension_numbers = #tpu.dot_dimension_numbers<[1], [0], [0], [1], [0, 0, 1, 1], [], []>} : vector<12x21xbf16>, vector<21x9xbf16>, vector<12x9xf32> -> vector<12x9xf32>
    %527 = arith.addf %522, %526 : vector<12x9xf32>
    %528 = vector.extract_strided_slice %516 {offsets = [24, 0], sizes = [12, 21], strides = [1, 1]} : vector<36x21xbf16> to vector<12x21xbf16>
    %c2_167 = arith.constant 2 : index
    %c0_168 = arith.constant 0 : index
    %c0_169 = arith.constant 0 : index
    %529 = vector.load %arg14[%c2_167, %c0_168, %c0_169] : memref<3x21x9xbf16, #tpu.memory_space<vmem>>, vector<1x21x9xbf16>
    %530 = vector.shape_cast %529 : vector<1x21x9xbf16> to vector<21x9xbf16>
    %cst_170 = arith.constant dense<0.000000e+00> : vector<12x9xf32>
    %531 = tpu.matmul %528, %530, %cst_170 {dimension_numbers = #tpu.dot_dimension_numbers<[1], [0], [0], [1], [0, 0, 1, 1], [], []>} : vector<12x21xbf16>, vector<21x9xbf16>, vector<12x9xf32> -> vector<12x9xf32>
    %532 = arith.addf %527, %531 : vector<12x9xf32>
    %cst_171 = arith.constant 0.000000e+00 : f32
    %533 = vector.broadcast %cst_171 : f32 to vector<4x128xf32>
    %534 = vector.extract_strided_slice %532 {offsets = [0, 0], sizes = [4, 9], strides = [1, 1]} : vector<12x9xf32> to vector<4x9xf32>
    %535 = arith.truncf %534 : vector<4x9xf32> to vector<4x9xbf16>
    %c0_172 = arith.constant 0 : index
    %c0_173 = arith.constant 0 : index
    %c0_174 = arith.constant 0 : index
    %536 = vector.load %arg15[%c0_172, %c0_173, %c0_174] : memref<3x9x128xbf16, #tpu.memory_space<vmem>>, vector<1x9x128xbf16>
    %537 = vector.shape_cast %536 : vector<1x9x128xbf16> to vector<9x128xbf16>
    %cst_175 = arith.constant dense<0.000000e+00> : vector<4x128xf32>
    %538 = tpu.matmul %535, %537, %cst_175 {dimension_numbers = #tpu.dot_dimension_numbers<[1], [0], [0], [1], [0, 0, 1, 1], [], []>} : vector<4x9xbf16>, vector<9x128xbf16>, vector<4x128xf32> -> vector<4x128xf32>
    %539 = arith.addf %533, %538 : vector<4x128xf32>
    %540 = vector.extract_strided_slice %532 {offsets = [4, 0], sizes = [4, 9], strides = [1, 1]} : vector<12x9xf32> to vector<4x9xf32>
    %541 = arith.truncf %540 : vector<4x9xf32> to vector<4x9xbf16>
    %c1_176 = arith.constant 1 : index
    %c0_177 = arith.constant 0 : index
    %c0_178 = arith.constant 0 : index
    %542 = vector.load %arg15[%c1_176, %c0_177, %c0_178] : memref<3x9x128xbf16, #tpu.memory_space<vmem>>, vector<1x9x128xbf16>
    %543 = vector.shape_cast %542 : vector<1x9x128xbf16> to vector<9x128xbf16>
    %cst_179 = arith.constant dense<0.000000e+00> : vector<4x128xf32>
    %544 = tpu.matmul %541, %543, %cst_179 {dimension_numbers = #tpu.dot_dimension_numbers<[1], [0], [0], [1], [0, 0, 1, 1], [], []>} : vector<4x9xbf16>, vector<9x128xbf16>, vector<4x128xf32> -> vector<4x128xf32>
    %545 = arith.addf %539, %544 : vector<4x128xf32>
    %546 = vector.extract_strided_slice %532 {offsets = [8, 0], sizes = [4, 9], strides = [1, 1]} : vector<12x9xf32> to vector<4x9xf32>
    %547 = arith.truncf %546 : vector<4x9xf32> to vector<4x9xbf16>
    %c2_180 = arith.constant 2 : index
    %c0_181 = arith.constant 0 : index
    %c0_182 = arith.constant 0 : index
    %548 = vector.load %arg15[%c2_180, %c0_181, %c0_182] : memref<3x9x128xbf16, #tpu.memory_space<vmem>>, vector<1x9x128xbf16>
    %549 = vector.shape_cast %548 : vector<1x9x128xbf16> to vector<9x128xbf16>
    %cst_183 = arith.constant dense<0.000000e+00> : vector<4x128xf32>
    %550 = tpu.matmul %547, %549, %cst_183 {dimension_numbers = #tpu.dot_dimension_numbers<[1], [0], [0], [1], [0, 0, 1, 1], [], []>} : vector<4x9xbf16>, vector<9x128xbf16>, vector<4x128xf32> -> vector<4x128xf32>
    %551 = arith.addf %545, %550 : vector<4x128xf32>
    %c0_184 = arith.constant 0 : index
    %c0_185 = arith.constant 0 : index
    %552 = vector.load %arg16[%c0_184, %c0_185] : memref<1x128xf32, #tpu.memory_space<vmem>>, vector<1x128xf32>
    %553 = vector.broadcast %552 : vector<1x128xf32> to vector<4x128xf32>
    %554 = arith.addf %551, %553 : vector<4x128xf32>
    %555 = arith.addf %32, %554 : vector<4x128xf32>
    %cst_186 = arith.constant 5.000000e-01 : f32
    %556 = vector.broadcast %cst_186 : f32 to vector<4x128xf32>
    %557 = arith.mulf %555, %556 : vector<4x128xf32>
    %c0_187 = arith.constant 0 : index
    %c0_188 = arith.constant 0 : index
    %c0_189 = arith.constant 0 : index
    %558 = vector.load %arg17[%c0_187, %c0_188, %c0_189] : memref<1x4x128xf32, #tpu.memory_space<vmem>>, vector<1x4x128xf32>
    %559 = vector.shape_cast %558 : vector<1x4x128xf32> to vector<4x128xf32>
    %560 = vector.shape_cast %557 : vector<4x128xf32> to vector<1x4x128xf32>
    tpu.vector_store %arg17[%c0_187, %c0_188, %c0_189], %560 {strides = array<i32>} : memref<1x4x128xf32, #tpu.memory_space<vmem>>, vector<1x4x128xf32>,
    return
  }
  func.func @transform_0(%arg0: i32) -> (i32, i32) {
    %c0_i32 = arith.constant 0 : i32
    %c0_i32_0 = arith.constant 0 : i32
    return %c0_i32, %arg0 : i32, i32
  }
  func.func @transform_1(%arg0: i32) -> (i32, i32) {
    %c0_i32 = arith.constant 0 : i32
    %c0_i32_0 = arith.constant 0 : i32
    %c0_i32_1 = arith.constant 0 : i32
    return %c0_i32, %c0_i32_0 : i32, i32
  }
  func.func @transform_2(%arg0: i32) -> (i32, i32) {
    %c0_i32 = arith.constant 0 : i32
    %c0_i32_0 = arith.constant 0 : i32
    %c0_i32_1 = arith.constant 0 : i32
    return %c0_i32, %c0_i32_0 : i32, i32
  }
  func.func @transform_3(%arg0: i32) -> (i32, i32) {
    %c0_i32 = arith.constant 0 : i32
    %c0_i32_0 = arith.constant 0 : i32
    %c0_i32_1 = arith.constant 0 : i32
    return %c0_i32, %c0_i32_0 : i32, i32
  }
  func.func @transform_4(%arg0: i32) -> (i32, i32) {
    %c0_i32 = arith.constant 0 : i32
    %c0_i32_0 = arith.constant 0 : i32
    %c0_i32_1 = arith.constant 0 : i32
    return %c0_i32, %c0_i32_0 : i32, i32
  }
  func.func @transform_5(%arg0: i32) -> (i32, i32) {
    %c0_i32 = arith.constant 0 : i32
    %c0_i32_0 = arith.constant 0 : i32
    %c0_i32_1 = arith.constant 0 : i32
    return %c0_i32, %c0_i32_0 : i32, i32
  }
  func.func @transform_6(%arg0: i32) -> (i32, i32) {
    %c0_i32 = arith.constant 0 : i32
    %c0_i32_0 = arith.constant 0 : i32
    %c0_i32_1 = arith.constant 0 : i32
    return %c0_i32, %c0_i32_0 : i32, i32
  }
  func.func @transform_7(%arg0: i32) -> (i32, i32) {
    %c0_i32 = arith.constant 0 : i32
    %c0_i32_0 = arith.constant 0 : i32
    %c0_i32_1 = arith.constant 0 : i32
    return %c0_i32, %c0_i32_0 : i32, i32
  }
  func.func @transform_8(%arg0: i32) -> (i32, i32) {
    %c0_i32 = arith.constant 0 : i32
    %c0_i32_0 = arith.constant 0 : i32
    %c0_i32_1 = arith.constant 0 : i32
    return %c0_i32, %c0_i32_0 : i32, i32
  }
  func.func @transform_9(%arg0: i32) -> (i32, i32) {
    %c0_i32 = arith.constant 0 : i32
    %c0_i32_0 = arith.constant 0 : i32
    %c0_i32_1 = arith.constant 0 : i32
    return %c0_i32, %c0_i32_0 : i32, i32
  }
  func.func @transform_10(%arg0: i32) -> (i32, i32) {
    %c0_i32 = arith.constant 0 : i32
    %c0_i32_0 = arith.constant 0 : i32
    %c0_i32_1 = arith.constant 0 : i32
    return %c0_i32, %c0_i32_0 : i32, i32
  }
  func.func @transform_11(%arg0: i32) -> (i32, i32, i32) {
    %c0_i32 = arith.constant 0 : i32
    %c0_i32_0 = arith.constant 0 : i32
    %c0_i32_1 = arith.constant 0 : i32
    %c0_i32_2 = arith.constant 0 : i32
    return %c0_i32, %c0_i32_0, %c0_i32_1 : i32, i32, i32
  }
  func.func @transform_12(%arg0: i32) -> (i32, i32) {
    %c0_i32 = arith.constant 0 : i32
    %c0_i32_0 = arith.constant 0 : i32
    %c0_i32_1 = arith.constant 0 : i32
    return %c0_i32, %c0_i32_0 : i32, i32
  }
  func.func @transform_13(%arg0: i32) -> (i32, i32, i32) {
    %c0_i32 = arith.constant 0 : i32
    %c0_i32_0 = arith.constant 0 : i32
    %c0_i32_1 = arith.constant 0 : i32
    %c0_i32_2 = arith.constant 0 : i32
    return %c0_i32, %c0_i32_0, %c0_i32_1 : i32, i32, i32
  }
  func.func @transform_14(%arg0: i32) -> (i32, i32, i32) {
    %c0_i32 = arith.constant 0 : i32
    %c0_i32_0 = arith.constant 0 : i32
    %c0_i32_1 = arith.constant 0 : i32
    %c0_i32_2 = arith.constant 0 : i32
    return %c0_i32, %c0_i32_0, %c0_i32_1 : i32, i32, i32
  }
  func.func @transform_15(%arg0: i32) -> (i32, i32) {
    %c0_i32 = arith.constant 0 : i32
    %c0_i32_0 = arith.constant 0 : i32
    %c0_i32_1 = arith.constant 0 : i32
    return %c0_i32, %c0_i32_0 : i32, i32
  }
  func.func @transform_16(%arg0: i32) -> (i32, i32, i32) {
    %c0_i32 = arith.constant 0 : i32
    %c0_i32_0 = arith.constant 0 : i32
    %c0_i32_1 = arith.constant 0 : i32
    return %arg0, %c0_i32, %c0_i32_0 : i32, i32, i32
  }
}

</mosaic_0001>

<bundles_post_ra>
// kernel: moment_probing_forward.1
= control target key start
LH: loop header
LB: loop body
LE: loop exit
PB: predicated region body
PF: predicated region fallthrough
CT: control target
= control target key end

     0   :  { %s4966_s0 = inlined_call_operand.vmem [shape: bf16[32,512], index: 0, kind: input, shape index: {}]   ;;  %s4967_s1 = inlined_call_operand.vmem [shape: bf16[256,4], index: 1, kind: input, shape index: {}]   ;;  %s4968_s2 = inlined_call_operand.vmem [shape: f32[32,1], index: 2, kind: input, shape index: {}]   ;;  %s4969_s3 = inlined_call_operand.vmem [shape: f32[32,1], index: 3, kind: input, shape index: {}]   ;;  %s4970_s4 = inlined_call_operand.vmem [shape: bf16[32,128], index: 4, kind: input, shape index: {}]   ;;  %s4971_s5 = inlined_call_operand.vmem [shape: f32[1,128], index: 5, kind: input, shape index: {}]   ;;  %s4972_s6 = inlined_call_operand.vmem [shape: bf16[64,32], index: 6, kind: input, shape index: {}]   ;;  %s4973_s7 = inlined_call_operand.vmem [shape: f32[64,1], index: 7, kind: input, shape index: {}]   ;;  %s4974_s8 = inlined_call_operand.vmem [shape: f32[16,1], index: 8, kind: input, shape index: {}]   ;;  %s4975_s9 = inlined_call_operand.vmem [shape: f32[16,1], index: 9, kind: input, shape index: {}]   ;;  %s4976_s10 = inlined_call_operand.vmem [shape: bf16[84,64], index: 10, kind: input, shape index: {}]   ;;  %s4977_s11 = inlined_call_operand.vmem [shape: bf16[3,48,21], index: 11, kind: input, shape index: {}]   ;;  %s4978_s12 = inlined_call_operand.vmem [shape: bf16[36,28], index: 12, kind: input, shape index: {}]   ;;  %s4979_s13 = inlined_call_operand.vmem [shape: bf16[3,21,9], index: 13, kind: input, shape index: {}]   ;;  %s4980_s14 = inlined_call_operand.vmem [shape: bf16[3,9,128], index: 14, kind: input, shape index: {}]   ;;  %s4981_s15 = inlined_call_operand.vmem [shape: f32[1,128], index: 15, kind: input, shape index: {}]   ;;  %s4982_s16 = inlined_call_operand.hbm [shape: f32[2,4,128], index: 16, kind: output, shape index: {}]  }
   0x1   :  { %4989 = sst [smem:[#allocation11_spill]] %s4966_s0 }
   0x2   :  { %21 = vsyncpa [#allocation4], 0 }
   0x3   :  { %23 = vsyncpa [#allocation4 + $0x1], 0  ;;  %s3859_s21 = smov 0   ;;  %s3861_s22 = smov 0  }
   0x4   :  { %s3863_s23 = smov 0   ;;  %s3865_s24 = smov 0  }
   0x5 LB: > { %4990 = sst [smem:[#allocation6_spill]] %s3756_s22  ;;  %s4983_s25 = sadd.s32 4294967295, %s3764_s24   ;;  %s3764_s24 = sphi %s3865_s24, %s5000_s24   ;;  %s3760_s23 = sphi %s3863_s23, %s5003_s23   ;;  %s3756_s22 = sphi %s3861_s22, %s5002_s22   ;;  %s3752_s21 = sphi %s3859_s21, %s5001_s21  }
   0x6   : > { %4991 = sst [smem:[#allocation7_spill]] %s3760_s23  ;;  %s3196_s26 = sadd.s32 4294967294, %s3764_s24  }
   0x7   : > { %s3882_s27 = sadd.s32 1, %s3764_s24   ;;  %s36_s28 = sadd.s32 1, %s3760_s23 }
   0x8   : > { %4992 = sst [smem:[#allocation8_spill]] %s3882_s27  ;;  %s33_s29 = ssub.s32 %s3764_s24, %s3882_s27 }
   0x9   : > { %p43_p0 = scmp.ne.s32.totalorder %s3760_s23, %s3756_s22  ;;  %p34_p1 = scmp.eq.s32.totalorder %s33_s29, 0 }
   0xa   : > { %p44_p2 = scmp.eq.s32.totalorder %s3764_s24, 0  ;;  %p388_p3 = scmp.eq.s32.totalorder %s4983_s25, 1 }
   0xb   : > { %p393_p4 = scmp.ne.s32.totalorder %s3756_s22, %s3752_s21  ;;  %p394_p7 = scmp.eq.s32.totalorder %s3196_s26, 1 }
   0xc   : > { %s3895_s30 = scalar_select %p34_p1, %s3760_s23, %s36_s28  }
   0xd   : > { %p45_p5 = por %p44_p2, %p43_p0  ;;  %p3897_p6 = por %p388_p3, %p43_p0 }
   0xe   : > { %4993 = sst [smem:[#allocation9_spill]] %s3895_s30  ;;  %p3901_p8 = por %p394_p7, %p393_p4 }
   0xf   : > { %p3198_p9 = scmp.ge.s32.totalorder %s3764_s24, 2 }
  0x10   : > { %s4995_s17 = scalar_select %p3901_p8, 1, 0 }
  0x11   : > { %455 = sbr.rel (%p3198_p9) target bundleno = 36 (0x24), region = 76 }
  0x12   : > { %4996 = sst [smem:[#allocation10_spill]] %s4995_s17 }
  0x16   : > { %458 = sbr.rel (!%p45_p5) target bundleno = 36 (0x24), region = 80  ;;  %s460_s18 = sand.u32 (%p45_p5), 1, %s3760_s23  }
  0x17   : > { %s3465_s19 = sshll.u32 (%p45_p5), %s3764_s24, 3  ;;  %s3199_s20 = sshll.u32 (%p45_p5), %s460_s18, 5 }
  0x18   : > { %s4997_s25 = sld [smem:[#allocation11_spill]] (%p45_p5)  ;;  %s462_s26 = scalar_lea.vmem (%p45_p5), [#allocation2], %s3199_s20 }
  0x1e   : > { %s465_s30 = scalar_lea.vmem %s4997_s25, %s3465_s19 }
  0x1f   : > { %v500_v0 = vld [vmem:[%s465_s30] sm:$0xff]  ;;  %v502_v1 = vld [vmem:[%s465_s30 + $0x10] sm:$0xff] }
  0x20   : > { %v504_v2 = vld [vmem:[%s465_s30 + $0x20] sm:$0xff]  ;;  %501 = vst [vmem:[%s462_s26] sm:$0xff] %v500_v0  ;;  %v506_v3 = vld [vmem:[%s465_s30 + $0x30] sm:$0xff] }
  0x21   : > { %503 = vst [vmem:[%s462_s26 + $0x8] sm:$0xff] %v502_v1 }
  0x22   : > { %505 = vst [vmem:[%s462_s26 + $0x10] sm:$0xff] %v504_v2 }
  0x23   : > { %507 = vst [vmem:[%s462_s26 + $0x18] sm:$0xff] %v506_v3 }
  0x24 PF: > { %p3202_p10 = scmp.ge.s32.totalorder %s3764_s24, 1  ;;  %p512_p11 = scmp.lt.s32.totalorder %s3764_s24, 3 }
  0x26   : > { %p513_p12 = pnand %p3202_p10, %p512_p11 }
  0x27   : > { %s3922_s30 = sand.u32 (!%p513_p12), 1, %s3756_s22   ;;  %s3769_s29 = smov (!%p513_p12), 64  }
  0x28   : > { %516 = sbr.rel (%p513_p12) target bundleno = 2348 (0x92c), region = 118  ;;  %s3203_s20 = sshll.u32 (!%p513_p12), %s3922_s30, 5 }
  0x29   : > { %s3931_s23 = scalar_lea.vmem (!%p513_p12), [#allocation2], %s3203_s20 }
  0x2d   : > { %v3477_v4 = vld [vmem:[%s4967_s1 + $0x38] sm:$0xff]  ;;  %v3766_v6 = vmov 0   ;;  %v3476_v7 = vld [vmem:[%s4967_s1 + $0x30] sm:$0xff]  ;;  %v3207_v11 = vld [vmem:[%s3931_s23] sm:$0xf]  ;;  %vm913_vm0 = vcmask 261120  }
  0x2e   : > { %v3485_v5 = vld [vmem:[%s4967_s1 + $0x78] sm:$0xff]  ;;  %3594 = vset.pattern.permute.xlu1 %v3766_v6  ;;  %3593 = vset.pattern.permute.xlu0 %v3766_v6  ;;  %v3484_v8 = vld [vmem:[%s4967_s1 + $0x70] sm:$0xff]  ;;  %v3467_v13 = vld [vmem:[%s3931_s23 + $0x4] sm:$0xf0]  ;;  %v3767_v63 = vmov 16.0   ;;  %vm760_vm2 = vcmask 31744  }
  0x2f   : > { %722 = vmatpush.bf16.msra.mxu0 %v3477_v4  ;;  %741 = vmatpush.bf16.msra.mxu1 %v3485_v5  ;;  %v3215_v9 = vld [vmem:[%s3931_s23 + $0x10] sm:$0xf]  ;;  %v3469_v10 = vld [vmem:[%s3931_s23 + $0x14] sm:$0xf0]  ;;  %v847_v14 = vld [vmem:[%s4969_s3] sm:$0xff]  ;;  %v3208_v15 = vor.u32 %v3467_v13, %v3207_v11  ;;  %3638 = vrcp.f32 %v3767_v63 }
  0x30   : > { %3595 = vset.pattern.permute.xlu2 %v3766_v6  ;;  %v3936_v12 = vor.u32 %v3469_v10, %v3215_v9  ;;  %v3475_v16 = vld [vmem:[%s4967_s1 + $0x28] sm:$0xff]  ;;  %v819_v17 = vld [vmem:[%s4968_s2] sm:$0xff]  ;;  %853 = vperm.xlu1 %3594, %v847_v14   ;;  %v3473_v24 = vld [vmem:[%s4967_s1 + $0x18] sm:$0xff] }
  0x31   : > { %v3483_v18 = vld [vmem:[%s4967_s1 + $0x68] sm:$0xff]  ;;  %825 = vperm.xlu0 %3593, %v819_v17   ;;  %v3955_v19 = vld [vmem:[%s4972_s6] sm:$0xff]  ;;  %v3481_v25 = vld [vmem:[%s4967_s1 + $0x58] sm:$0xff] }
  0x32   : > { %1024 = vmatpush.bf16.msra.mxu3 %v3936_v12  ;;  %v3474_v20 = vld [vmem:[%s4967_s1 + $0x20] sm:$0xff]  ;;  %v848_v22 = vld [vmem:[%s4969_s3 + $0x8] sm:$0xff]  ;;  %v3472_v26 = vld [vmem:[%s4967_s1 + $0x10] sm:$0xff] }
  0x33   : > { %723 = vmatpush.bf16.msra.mxu0 %v3476_v7  ;;  %742 = vmatpush.bf16.msra.mxu1 %v3484_v8  ;;  %v3482_v21 = vld [vmem:[%s4967_s1 + $0x60] sm:$0xff]  ;;  %v820_v23 = vld [vmem:[%s4968_s2 + $0x8] sm:$0xff]  ;;  %v3480_v27 = vld [vmem:[%s4967_s1 + $0x50] sm:$0xff] }
  0x34   : > { %v850_v28 = vld [vmem:[%s4969_s3 + $0x18] sm:$0xff]  ;;  %v849_v29 = vld [vmem:[%s4969_s3 + $0x10] sm:$0xff]  ;;  %v3471_v30 = vld [vmem:[%s4967_s1 + $0x8] sm:$0xff] }
  0x35   : > { %v3479_v31 = vld [vmem:[%s4967_s1 + $0x48] sm:$0xff]  ;;  %v3470_v33 = vld [vmem:[%s4967_s1] sm:$0xff]  ;;  %v941_v40 = vld [vmem:[%s4973_s7 + $0x18] sm:$0xff]  ;;  %v3639_v1 = vpop.eup %3638 }
  0x36   : > { %1025 = vmatpush.bf16.msra.mxu3 %v3208_v15  ;;  %v3998_v32 = vld [vmem:[%s4972_s6 + $0x8] sm:$0xff]  ;;  %v3478_v34 = vld [vmem:[%s4967_s1 + $0x40] sm:$0xff]  ;;  %v940_v41 = vld [vmem:[%s4973_s7 + $0x10] sm:$0xff]  ;;  %v1095_v4 = vmul.f32 16.0, %v3639_v1  ;;  %vm1099_vm1 = vweird.f32 %v3639_v1 }
  0x37   : > { %724 = vmatpush.bf16.msra.mxu0 %v3475_v16  ;;  %743 = vmatpush.bf16.msra.mxu1 %v3483_v18  ;;  %v3466_v35 = vld [vmem:[%s3931_s23 + $0x4] sm:$0xf]  ;;  %v3209_v36 = vld [vmem:[%s3931_s23 + $0x8] sm:$0xf0]  ;;  %v4028_v42 = vld [vmem:[%s4972_s6 + $0x10] sm:$0xff] }
  0x38   : > { %858 = vperm.xlu1 %3594, %v848_v22   ;;  %v939_v37 = vld [vmem:[%s4973_s7 + $0x8] sm:$0xff]  ;;  %v938_v38 = vld [vmem:[%s4973_s7] sm:$0xff]  ;;  %v4016_v39 = vor.u32 %v3466_v35, %v3209_v36  ;;  %v3468_v43 = vld [vmem:[%s3931_s23 + $0x14] sm:$0xf]  ;;  %v1096_v8 = vsub.f32 1.0, %v1095_v4 }
  0x39   : > { %3310 = vmatmul.msk.bf16.vlgmr.msra.gmra.mxu3 %vm913_vm0, %v3955_v19  ;;  %830 = vperm.xlu0 %3593, %v820_v23   ;;  %v3217_v44 = vld [vmem:[%s3931_s23 + $0x18] sm:$0xf0]  ;;  %v943_v45 = vld [vmem:[%s4973_s7 + $0x28] sm:$0xff]  ;;  %v942_v46 = vld [vmem:[%s4973_s7 + $0x20] sm:$0xff] }
  0x3a   : > { %v4040_v47 = vor.u32 %v3468_v43, %v3217_v44  ;;  %v945_v48 = vld [vmem:[%s4973_s7 + $0x38] sm:$0xff]  ;;  %v944_v49 = vld [vmem:[%s4973_s7 + $0x30] sm:$0xff]  ;;  %v1077_v51 = vld [vmem:[%s4974_s8 + $0x8] sm:$0xff] }
  0x3b   : > { %725 = vmatpush.bf16.msra.mxu0 %v3474_v20  ;;  %744 = vmatpush.bf16.msra.mxu1 %v3482_v21  ;;  %v4053_v50 = vld [vmem:[%s4972_s6 + $0x18] sm:$0xff]  ;;  %v1076_v52 = vld [vmem:[%s4974_s8] sm:$0xff]  ;;  %v1079_v53 = vld [vmem:[%s4975_s9 + $0x8] sm:$0xff] }
  0x3c   : > { %v1078_v54 = vld [vmem:[%s4975_s9] sm:$0xff]  ;;  %v821_v55 = vld [vmem:[%s4968_s2 + $0x10] sm:$0xff]  ;;  %v822_v56 = vld [vmem:[%s4968_s2 + $0x18] sm:$0xff] }
  0x3d   : > { %835 = vperm.xlu2 %3595, %v821_v55  }
  0x3f   : > { %726 = vmatpush.bf16.msra.mxu0 %v3473_v24  ;;  %745 = vmatpush.bf16.msra.mxu1 %v3481_v25 }
  0x40   : > { %868 = vperm.xlu1 %3594, %v850_v28  }
  0x41   : > { %863 = vperm.xlu0 %3593, %v849_v29  }
  0x43   : > { %727 = vmatpush.bf16.msra.mxu0 %v3472_v26  ;;  %746 = vmatpush.bf16.msra.mxu1 %v3480_v27 }
  0x45   : > { %840 = vperm.xlu2 %3595, %v822_v56  }
  0x47   : > { %728 = vmatpush.bf16.msra.mxu0 %v3471_v30  ;;  %747 = vmatpush.bf16.msra.mxu1 %v3479_v31 }
  0x48   : > { %953 = vperm.xlu1 %3594, %v939_v37  }
  0x49   : > { %3311 = vmatmul.msk.bf16.gmra.mxu3 %vm913_vm0, %v3998_v32  ;;  %948 = vperm.xlu0 %3593, %v938_v38   ;;  %v3768_v38 = vmov 32.0  }
  0x4a   : > { %3640 = vrcp.f32 %v3768_v38 }
  0x4b   : > { %729 = vmatpush.bf16.msra.mxu0 %v3470_v33  ;;  %748 = vmatpush.bf16.msra.mxu1 %v3478_v34 }
  0x4e   : > { %730 = vmatmul.bf16.vlgmr.msra.gmra.mxu0 %v3208_v15  ;;  %749 = vmatmul.bf16.vlgmr.msra.gmra.mxu1 %v4016_v39 }
  0x50   : > { %963 = vperm.xlu1 %3594, %v941_v40  }
  0x51   : > { %958 = vperm.xlu0 %3593, %v940_v41  }
  0x58   : > { %973 = vperm.xlu1 %3594, %v943_v45  }
  0x59   : > { %3312 = vmatmul.msk.bf16.gmra.mxu3 %vm913_vm0, %v4028_v42  ;;  %968 = vperm.xlu0 %3593, %v942_v46  }
  0x5e   : > { %735 = vmatmul.bf16.gmra.mxu0 %v3936_v12  ;;  %754 = vmatmul.bf16.gmra.mxu1 %v4040_v47  ;;  %v1097_v12 = vmul.f32 %v3639_v1, %v1096_v8 }
  0x60   : > { %983 = vperm.xlu1 %3594, %v945_v48   ;;  %v1098_v17 = vadd.f32 %v3639_v1, %v1097_v12 }
  0x61   : > { %978 = vperm.xlu0 %3593, %v944_v49  }
  0x62   : > { %v4095_v22 = vsel %vm1099_vm1, %v3639_v1, %v1098_v17 }
  0x68   : > { %1160 = vperm.xlu1 %3594, %v1077_v51  }
  0x69   : > { %3313 = vmatmul.msk.bf16.gmra.mxu3 %vm913_vm0, %v4053_v50  ;;  %1155 = vperm.xlu0 %3593, %v1076_v52  }
  0x70   : > { %1174 = vperm.xlu1 %3594, %v1079_v53   ;;  %v3641_v53 = vpop.eup %3640 }
  0x71   : > { %1169 = vperm.xlu0 %3593, %v1078_v54   ;;  %vm779_vm3 = vweird.f32 %v3641_v53 }
  0xa2   : > { %v4075_v57 = vpop.permute.xlu1 %853 }
  0xa3   : > { %v4077_v58 = vpop.permute.xlu0 %825 }
  0xaa   : > { %v4079_v59 = vpop.permute.xlu1 %858 }
  0xab   : > { %v4081_v60 = vpop.permute.xlu0 %830 }
  0xb2   : > { %v4085_v62 = vpop.permute.xlu1 %868 }
  0xb3   : > { %v4083_v61 = vpop.permute.xlu0 %863 }
  0xba   : > { %v4089_v3 = vpop.permute.xlu1 %953 }
  0xbb   : > { %v4087_v2 = vpop.permute.xlu0 %948 }
  0xbc   : > { %v1027_v0 = vpop.f32.mrf.mxu3 }
  0xbd   : > { %v1028_v5 = vadd.f32 %v1027_v0, %v4087_v2 }
  0xc2   : > { %v4097_v24 = vpop.permute.xlu1 %963 }
  0xc3   : > { %v4093_v20 = vpop.permute.xlu0 %958 }
  0xc4   : > { %v1029_v6 = vpop.f32.mrf.mxu3 }
  0xc5   : > { %v1030_v7 = vadd.f32 %v1029_v6, %v4089_v3 }
  0xc7   : > { %v1080_v9 = vadd.f32 %v1030_v7, %v1028_v5 }
  0xc9   : > { %v1081_v10 = vrot.slane %v1080_v9, 4 }
  0xca   : > { %v4124_v8 = vpop.permute.xlu1 %973 }
  0xcb   : > { %v731_v11 = vpop.f32.mrf.mxu0  ;;  %v750_v13 = vpop.f32.mrf.mxu1  ;;  %v1082_v14 = vadd.f32 %v1081_v10, %v1080_v9 }
  0xcc   : > { %v1032_v15 = vpop.f32.mrf.mxu3  ;;  %v4112_v51 = vadd.f32 %v750_v13, %v731_v11  ;;  %v4118_v1 = vpop.permute.xlu0 %968 }
  0xcd   : > { %v1083_v16 = vrot.slane %v1082_v14, 2  ;;  %v1033_v27 = vadd.f32 %v1032_v15, %v4093_v20 }
  0xce   : > { %v761_v4 = vsel %vm760_vm2, %v4112_v51, 0.0 }
  0xcf   : > { %v1084_v18 = vadd.f32 %v1083_v16, %v1082_v14 }
  0xd1   : > { %v1085_v21 = vrot.slane %v1084_v18, 1 }
  0xd3   : > { %v733_v23 = vpop.f32.mrf.mxu0  ;;  %v1086_v25 = vadd.f32 %v1085_v21, %v1084_v18  ;;  %v752_v26 = vpop.f32.mrf.mxu1 }
  0xd4   : > { %v1034_v28 = vpop.f32.mrf.mxu3  ;;  %v4110_v45 = vadd.f32 %v752_v26, %v733_v23 }
  0xd5   : > { %v1101_v29 = vmul.f32 %v4095_v22, %v1086_v25  ;;  %v1035_v30 = vadd.f32 %v1034_v28, %v4097_v24 }
  0xd6   : > { %v762_v56 = vsel %vm760_vm2, %v4110_v45, 0.0 }
  0xd7   : > { %v4102_v31 = vsub.f32 %v1028_v5, %v1101_v29  ;;  %v4104_v33 = vsub.f32 %v1030_v7, %v1101_v29  ;;  %v1181_v34 = vadd.f32 %v1035_v30, %v1033_v27  ;;  %v775_v7 = vmul.f32 32.0, %v3641_v53 }
  0xd8   : > { %v763_v10 = vadd.f32 %v762_v56, %v761_v4 }
  0xd9   : > { %v1107_v35 = vmul.f32 %v4102_v31, %v4102_v31  ;;  %v1109_v36 = vmul.f32 %v4104_v33, %v4104_v33  ;;  %v1182_v37 = vrot.slane %v1181_v34, 4  ;;  %v776_v25 = vsub.f32 1.0, %v775_v7 }
  0xdb   : > { %v736_v40 = vpop.f32.mrf.mxu0  ;;  %v1111_v41 = vadd.f32 %v1109_v36, %v1107_v35  ;;  %v1183_v43 = vadd.f32 %v1182_v37, %v1181_v34  ;;  %v755_v44 = vpop.f32.mrf.mxu1 }
  0xdc   : > { %v1037_v46 = vpop.f32.mrf.mxu3  ;;  %v4114_v52 = vadd.f32 %v755_v44, %v736_v40 }
  0xdd   : > { %v1112_v48 = vrot.slane %v1111_v41, 4  ;;  %v1184_v49 = vrot.slane %v1183_v43, 2  ;;  %v1038_v14 = vadd.f32 %v1037_v46, %v4118_v1 }
  0xde   : > { %v764_v5 = vsel %vm760_vm2, %v4114_v52, 0.0 }
  0xdf   : > { %v1113_v54 = vadd.f32 %v1112_v48, %v1111_v41  ;;  %v1185_v55 = vadd.f32 %v1184_v49, %v1183_v43  ;;  %v765_v18 = vadd.f32 %v764_v5, %v763_v10  ;;  %v777_v41 = vmul.f32 %v3641_v53, %v776_v25 }
  0xe1   : > { %v1114_v63 = vrot.slane %v1113_v54, 2  ;;  %v1186_v0 = vrot.slane %v1185_v55, 1 }
  0xe3   : > { %v738_v6 = vpop.f32.mrf.mxu0  ;;  %v1115_v9 = vadd.f32 %v1114_v63, %v1113_v54  ;;  %v1187_v11 = vadd.f32 %v1186_v0, %v1185_v55  ;;  %v757_v12 = vpop.f32.mrf.mxu1  ;;  %v778_v55 = vadd.f32 %v3641_v53, %v777_v41 }
  0xe4   : > { %v4126_v13 = vadd.f32 %v757_v12, %v738_v6  ;;  %v1039_v15 = vpop.f32.mrf.mxu3  ;;  %v4142_v63 = vpop.permute.xlu1 %983 }
  0xe5   : > { %v1116_v16 = vrot.slane %v1115_v9, 1  ;;  %v1195_v17 = vmul.f32 %v1187_v11, %v4095_v22  ;;  %v1040_v21 = vadd.f32 %v1039_v15, %v4124_v8  ;;  %v4144_v6 = vpop.permute.xlu0 %978  ;;  %v4146_v10 = vsel %vm779_vm3, %v3641_v53, %v778_v55 }
  0xe6   : > { %v766_v23 = vsel %vm760_vm2, %v4126_v13, 0.0 }
  0xe7   : > { %v1117_v26 = vadd.f32 %v1116_v16, %v1115_v9  ;;  %v4133_v28 = vsub.f32 %v1033_v27, %v1195_v17  ;;  %v4135_v29 = vsub.f32 %v1035_v30, %v1195_v17  ;;  %v767_v34 = vadd.f32 %v766_v23, %v765_v18 }
  0xe8   : > { %v1255_v35 = vadd.f32 %v1040_v21, %v1038_v14 }
  0xe9   : > { %v1125_v36 = vmul.f32 %v1117_v26, %v4095_v22  ;;  %v1201_v37 = vmul.f32 %v4133_v28, %v4133_v28  ;;  %v1203_v38 = vmul.f32 %v4135_v29, %v4135_v29  ;;  %v768_v40 = vrot.slane %v767_v34, 4 }
  0xea   : > { %v1256_v43 = vrot.slane %v1255_v35, 4 }
  0xeb   : > { %v1127_v44 = vadd.f32 1e-05, %v1125_v36  ;;  %v1205_v46 = vadd.f32 %v1203_v38, %v1201_v37  ;;  %v769_v48 = vadd.f32 %v768_v40, %v767_v34 }
  0xec   : > { %v1257_v27 = vadd.f32 %v1256_v43, %v1255_v35  ;;  %v1042_v49 = vpop.f32.mrf.mxu3  ;;  %v4156_v37 = vpop.permute.xlu1 %1160 }
  0xed   : > { %3642 = vrsqrt.f32 %v1127_v44  ;;  %v1206_v30 = vrot.slane %v1205_v46, 4  ;;  %v770_v54 = vrot.slane %v769_v48, 2  ;;  %v4149_v17 = vadd.f32 %v1042_v49, %v4144_v6 }
  0xee   : > { %v1258_v56 = vrot.slane %v1257_v27, 2  ;;  %vm1135_vm4 = vweird.f32 %v1127_v44 }
  0xef   : > { %v1207_v0 = vadd.f32 %v1206_v30, %v1205_v46  ;;  %v771_v4 = vadd.f32 %v770_v54, %v769_v48 }
  0xf0   : > { %v1259_v5 = vadd.f32 %v1258_v56, %v1257_v27 }
  0xf1   : > { %v1208_v7 = vrot.slane %v1207_v0, 2  ;;  %v772_v9 = vrot.slane %v771_v4, 1 }
  0xf2   : > { %v1260_v11 = vrot.slane %v1259_v5, 1 }
  0xf3   : > { %v3643_v12 = vpop.eup %3642  ;;  %v1209_v15 = vadd.f32 %v1208_v7, %v1207_v0  ;;  %v773_v16 = vadd.f32 %v772_v9, %v771_v4 }
  0xf4   : > { %v1130_v18 = vmul.f32 %v3643_v12, %v1127_v44  ;;  %v1261_v23 = vadd.f32 %v1260_v11, %v1259_v5  ;;  %v1044_v25 = vpop.f32.mrf.mxu3  ;;  %vm1136_vm5 = vweird.f32 %v3643_v12 }
  0xf5   : > { %v1210_v26 = vrot.slane %v1209_v15, 1  ;;  %v781_v34 = vmul.f32 %v4146_v10, %v773_v16  ;;  %v4153_v35 = vadd.f32 %v1044_v25, %v4142_v63  ;;  %vm1137_vm6 = vmor %vm1135_vm4, %vm1136_vm5  ;;  %vm1403_vm4 = vcmask 523264  }
  0xf6   : > { %v1131_v36 = vmul.f32 %v3643_v12, %v1130_v18  ;;  %v1269_v53 = vmul.f32 %v1261_v23, %v4095_v22 }
  0xf7   : > { %v1211_v38 = vadd.f32 %v1210_v26, %v1209_v15  ;;  %v1329_v40 = vadd.f32 %v4153_v35, %v4149_v17  ;;  %v4161_v41 = vsub.f32 %v4112_v51, %v781_v34  ;;  %v4168_v27 = vsub.f32 %v4110_v45, %v781_v34 }
  0xf8   : > { %v1132_v43 = vmul.f32 0.5, %v1131_v36  ;;  %v4163_v46 = vsub.f32 %v1038_v14, %v1269_v53  ;;  %v4165_v48 = vsub.f32 %v1040_v21, %v1269_v53  ;;  %v4172_v30 = vsub.f32 %v4126_v13, %v781_v34  ;;  %v4198_v53 = vpop.permute.xlu1 %1174 }
  0xf9   : > { %v1219_v49 = vmul.f32 %v1211_v38, %v4095_v22  ;;  %v1330_v54 = vrot.slane %v1329_v40, 4  ;;  %v4175_v55 = vsub.f32 %v4114_v52, %v781_v34  ;;  %v786_v45 = vmul.f32 %v4161_v41, %v4161_v41 }
  0xfa   : > { %v1133_v56 = vsub.f32 1.5, %v1132_v43  ;;  %v1275_v51 = vmul.f32 %v4163_v46, %v4163_v46  ;;  %v1277_v14 = vmul.f32 %v4165_v48, %v4165_v48  ;;  %v787_v0 = vmul.f32 %v4168_v27, %v4168_v27 }
  0xfb   : > { %v1221_v21 = vadd.f32 1e-05, %v1219_v49  ;;  %v1331_v13 = vadd.f32 %v1330_v54, %v1329_v40  ;;  %v788_v5 = vmul.f32 %v4175_v55, %v4175_v55  ;;  %v790_v7 = vsel %vm760_vm2, %v786_v45, 0.0 }
  0xfc   : > { %v1134_v52 = vmul.f32 %v3643_v12, %v1133_v56  ;;  %v1279_v4 = vadd.f32 %v1277_v14, %v1275_v51  ;;  %v789_v9 = vmul.f32 %v4172_v30, %v4172_v30  ;;  %v791_v44 = vsel %vm760_vm2, %v787_v0, 0.0 }
  0xfd   : > { %3644 = vrsqrt.f32 %v1221_v21  ;;  %v1332_v11 = vrot.slane %v1331_v13, 2  ;;  %v792_v18 = vadd.f32 %v791_v44, %v790_v7  ;;  %v793_v34 = vsel %vm760_vm2, %v788_v5, 0.0 }
  0xfe   : > { %v1138_v15 = vsel %vm1137_vm6, %v3643_v12, %v1134_v52  ;;  %v1280_v16 = vrot.slane %v1279_v4, 4  ;;  %v795_v40 = vsel %vm760_vm2, %v789_v9, 0.0  ;;  %vm1229_vm7 = vweird.f32 %v1221_v21 }
  0xff   : > { %v4194_v23 = vmul.f32 %v1138_v15, %v4102_v31  ;;  %v1151_v25 = vmul.f32 %v1138_v15, %v4104_v33  ;;  %v1333_v26 = vadd.f32 %v1332_v11, %v1331_v13  ;;  %v794_v38 = vadd.f32 %v793_v34, %v792_v18 }
 0x100   : > { %v1281_v36 = vadd.f32 %v1280_v16, %v1279_v4  ;;  %v4208_v4 = vpop.permute.xlu0 %1155 }
 0x101   : > { %v1334_v43 = vrot.slane %v1333_v26, 1  ;;  %v1165_v49 = vmul.f32 %v4156_v37, %v1151_v25  ;;  %v796_v54 = vadd.f32 %v795_v40, %v794_v38 }
 0x102   : > { %v1282_v12 = vrot.slane %v1281_v36, 2 }
 0x103   : > { %v3645_v56 = vpop.eup %3644  ;;  %v1335_v51 = vadd.f32 %v1334_v43, %v1333_v26  ;;  %v4203_v31 = vadd.f32 %v4198_v53, %v1165_v49  ;;  %v797_v45 = vrot.slane %v796_v54, 4 }
 0x104   : > { %v1224_v33 = vmul.f32 %v3645_v56, %v1221_v21  ;;  %v1283_v14 = vadd.f32 %v1282_v12, %v1281_v36  ;;  %vm1230_vm8 = vweird.f32 %v3645_v56 }
 0x105   : > { %v1343_v13 = vmul.f32 %v1335_v51, %v4095_v22  ;;  %1636 = vrot.lane.b32.xlu0 %v4203_v31, %s3769_s29  ;;  %v798_v5 = vadd.f32 %v797_v45, %v796_v54  ;;  %vm1231_vm9 = vmor %vm1229_vm7, %vm1230_vm8 }
 0x106   : > { %v1225_v0 = vmul.f32 %v3645_v56, %v1224_v33  ;;  %v1284_v52 = vrot.slane %v1283_v14, 1 }
 0x107   : > { %v4211_v7 = vsub.f32 %v4149_v17, %v1343_v13  ;;  %v4214_v9 = vsub.f32 %v4153_v35, %v1343_v13  ;;  %v799_v15 = vrot.slane %v798_v5, 2 }
 0x108   : > { %v1226_v11 = vmul.f32 0.5, %v1225_v0  ;;  %v1285_v44 = vadd.f32 %v1284_v52, %v1283_v14  ;;  %v4223_v51 = vpop.permute.xlu0 %1169 }
 0x109   : > { %v1349_v16 = vmul.f32 %v4211_v7, %v4211_v7  ;;  %v1351_v18 = vmul.f32 %v4214_v9, %v4214_v9  ;;  %v800_v21 = vadd.f32 %v799_v15, %v798_v5 }
 0x10a   : > { %v1227_v25 = vsub.f32 1.5, %v1226_v11  ;;  %v1293_v26 = vmul.f32 %v1285_v44, %v4095_v22 }
 0x10b   : > { %v1353_v17 = vadd.f32 %v1351_v18, %v1349_v16  ;;  %v801_v35 = vrot.slane %v800_v21, 1 }
 0x10c   : > { %v1228_v34 = vmul.f32 %v3645_v56, %v1227_v25  ;;  %v1295_v36 = vadd.f32 1e-05, %v1293_v26 }
 0x10d   : > { %v1354_v38 = vrot.slane %v1353_v17, 4  ;;  %v802_v43 = vadd.f32 %v801_v35, %v800_v21 }
 0x10e   : > { %v1232_v40 = vsel %vm1231_vm9, %v3645_v56, %v1228_v34  ;;  %3646 = vrsqrt.f32 %v1295_v36  ;;  %vm1303_vm10 = vweird.f32 %v1295_v36 }
 0x10f   : > { %v1243_v49 = vmul.f32 %v1232_v40, %v4133_v28  ;;  %v1245_v12 = vmul.f32 %v1232_v40, %v4135_v29  ;;  %v1355_v54 = vadd.f32 %v1354_v38, %v1353_v17  ;;  %v803_v33 = vmul.f32 %v802_v43, %v4146_v10 }
 0x111   : > { %v1356_v14 = vrot.slane %v1355_v54, 2  ;;  %v1247_v45 = vmul.f32 %v1243_v49, %v4208_v4  ;;  %v1249_v13 = vmul.f32 %v1245_v12, %v4156_v37  ;;  %v804_v0 = vadd.f32 1e-06, %v803_v33 }
 0x113   : > { %v1357_v52 = vadd.f32 %v1356_v14, %v1355_v54  ;;  %v4229_v56 = vadd.f32 %v1247_v45, %v4223_v51  ;;  %v4232_v5 = vadd.f32 %v1249_v13, %v4198_v53  ;;  %3648 = vrsqrt.f32 %v804_v0 }
 0x114   : > { %v3647_v28 = vpop.eup %3646  ;;  %vm811_vm14 = vweird.f32 %v804_v0 }
 0x115   : > { %v1298_v29 = vmul.f32 %v3647_v28, %v1295_v36  ;;  %v1358_v11 = vrot.slane %v1357_v52, 1  ;;  %1658 = vrot.lane.b32.xlu1 %v4229_v56, %s3769_s29  ;;  %1660 = vrot.lane.b32.xlu0 %v4232_v5, %s3769_s29  ;;  %vm1304_vm11 = vweird.f32 %v3647_v28 }
 0x116   : > { %vm1305_vm12 = vmor %vm1303_vm10, %vm1304_vm11 }
 0x117   : > { %v1299_v10 = vmul.f32 %v3647_v28, %v1298_v29  ;;  %v1359_v44 = vadd.f32 %v1358_v11, %v1357_v52  ;;  %v836_v29 = vpop.permute.xlu2 %835 }
 0x119   : > { %v1300_v15 = vmul.f32 0.5, %v1299_v10  ;;  %v1367_v16 = vmul.f32 %v1359_v44, %v4095_v22  ;;  %v3649_v18 = vpop.eup %3648 }
 0x11a   : > { %v806_v21 = vmul.f32 %v3649_v18, %v804_v0  ;;  %vm812_vm13 = vweird.f32 %v3649_v18 }
 0x11b   : > { %v1301_v25 = vsub.f32 1.5, %v1300_v15  ;;  %v1369_v26 = vadd.f32 1e-05, %v1367_v16  ;;  %vm813_vm15 = vmor %vm811_vm14, %vm812_vm13 }
 0x11c   : > { %v807_v34 = vmul.f32 %v3649_v18, %v806_v21 }
 0x11d   : > { %v1302_v17 = vmul.f32 %v3647_v28, %v1301_v25  ;;  %3650 = vrsqrt.f32 %v1369_v26  ;;  %vm1377_vm1 = vweird.f32 %v1369_v26 }
 0x11e   : > { %v808_v38 = vmul.f32 0.5, %v807_v34 }
 0x11f   : > { %v1306_v35 = vsel %vm1305_vm12, %v3647_v28, %v1302_v17  ;;  %v841_v34 = vpop.permute.xlu2 %840 }
 0x120   : > { %v1317_v40 = vmul.f32 %v1306_v35, %v4163_v46  ;;  %v1319_v43 = vmul.f32 %v1306_v35, %v4165_v48  ;;  %v809_v49 = vsub.f32 1.5, %v808_v38  ;;  %v1163_v38 = vmul.f32 %v4208_v4, %v4194_v23 }
 0x122   : > { %v1321_v36 = vmul.f32 %v1317_v40, %v4208_v4  ;;  %v1323_v12 = vmul.f32 %v1319_v43, %v4156_v37  ;;  %v810_v33 = vmul.f32 %v3649_v18, %v809_v49  ;;  %v4280_v40 = vadd.f32 %v4223_v51, %v1163_v38 }
 0x123   : > { %v3651_v54 = vpop.eup %3650  ;;  %v1427_v43 = vsel %vm1403_vm4, %v4229_v56, 0.0  ;;  %v1428_v49 = vsel %vm1403_vm4, %v4232_v5, 0.0 }
 0x124   : > { %v1372_v14 = vmul.f32 %v3651_v54, %v1369_v26  ;;  %v4244_v45 = vadd.f32 %v1321_v36, %v4223_v51  ;;  %v4247_v13 = vadd.f32 %v1323_v12, %v4198_v53  ;;  %v814_v46 = vsel %vm813_vm15, %v3649_v18, %v810_v33 }
 0x125   : > { %v815_v48 = vmul.f32 %v814_v46, %v4161_v41  ;;  %v816_v0 = vmul.f32 %v814_v46, %v4168_v27  ;;  %vm1378_vm2 = vweird.f32 %v3651_v54  ;;  %v817_v26 = vmul.f32 %v814_v46, %v4175_v55 }
 0x126   : > { %v1373_v52 = vmul.f32 %v3651_v54, %v1372_v14  ;;  %1682 = vrot.lane.b32.xlu1 %v4244_v45, %s3769_s29  ;;  %1684 = vrot.lane.b32.xlu0 %v4247_v13, %s3769_s29  ;;  %vm1379_vm3 = vmor %vm1377_vm1, %vm1378_vm2  ;;  %v1429_v36 = vadd.f32 %v1428_v49, %v1427_v43  ;;  %v1443_v23 = vsel %vm1403_vm4, %v4244_v45, 0.0 }
 0x127   : > { %v843_v11 = vmul.f32 %v4077_v58, %v815_v48  ;;  %v844_v10 = vmul.f32 %v4081_v60, %v816_v0  ;;  %v818_v58 = vmul.f32 %v814_v46, %v4172_v30  ;;  %v845_v35 = vmul.f32 %v836_v29, %v817_v26  ;;  %v3487_v29 = vld [vmem:[%s4970_s4 + $0x8] sm:$0xff] }
 0x128   : > { %v1374_v28 = vmul.f32 0.5, %v1373_v52  ;;  %923 = vmatpush.bf16.msra.mxu2 %v3487_v29 }
 0x129   : > { %v871_v15 = vadd.f32 %v4075_v57, %v843_v11  ;;  %v872_v16 = vadd.f32 %v4079_v59, %v844_v10  ;;  %v873_v30 = vadd.f32 %v4083_v61, %v845_v35  ;;  %v1404_v61 = vsel %vm1403_vm4, %v4280_v40, 0.0  ;;  %v3486_v11 = vld [vmem:[%s4970_s4] sm:$0xff] }
 0x12a   : > { %v1375_v44 = vsub.f32 1.5, %v1374_v28 }
 0x12b   : > { %v875_v25 = vpack.c.bf16 %v872_v16, %v871_v15 }
 0x12c   : > { %v1376_v18 = vmul.f32 %v3651_v54, %v1375_v44  ;;  %924 = vmatpush.bf16.msra.mxu2 %v3486_v11 }
 0x12d   : > { %885 = vxpose.xlu2.c.b16.start [1/2] (short) (narrow) %v875_v25, 16 }
 0x12e   : > { %v1380_v21 = vsel %vm1379_vm3, %v3651_v54, %v1376_v18  ;;  %v1444_v54 = vsel %vm1403_vm4, %v4247_v13, 0.0  ;;  %vm1501_vm3 = vcmask 130048  }
 0x12f   : > { %v1391_v41 = vmul.f32 %v1380_v21, %v4211_v7  ;;  %v1393_v27 = vmul.f32 %v1380_v21, %v4214_v9  ;;  %v846_v7 = vmul.f32 %v841_v34, %v818_v58  ;;  %v1445_v33 = vadd.f32 %v1444_v54, %v1443_v23 }
 0x130   : > { %1053 = vmatpush.bf16.msrb.mxu2 %v4040_v47 }
 0x131   : > { %v1395_v60 = vmul.f32 %v1391_v41, %v4208_v4  ;;  %v1397_v17 = vmul.f32 %v1393_v27, %v4156_v37  ;;  %v874_v55 = vadd.f32 %v4085_v62, %v846_v7  ;;  %v1405_v62 = vsel %vm1403_vm4, %v4203_v31, 0.0 }
 0x132   : > { %v1406_v12 = vadd.f32 %v1405_v62, %v1404_v61 }
 0x133   : > { %v4266_v57 = vadd.f32 %v1395_v60, %v4223_v51  ;;  %v4269_v59 = vadd.f32 %v1397_v17, %v4198_v53  ;;  %v876_v9 = vpack.c.bf16 %v874_v55, %v873_v30 }
 0x134   : > { %1054 = vmatpush.bf16.msrb.mxu2 %v4016_v39 }
 0x135   : > { %1706 = vrot.lane.b32.xlu1 %v4266_v57, %s3769_s29  ;;  %1708 = vrot.lane.b32.xlu0 %v4269_v59, %s3769_s29  ;;  %v1459_v39 = vsel %vm1403_vm4, %v4266_v57, 0.0  ;;  %v1460_v47 = vsel %vm1403_vm4, %v4269_v59, 0.0 }
 0x136   : > { %v1461_v58 = vadd.f32 %v1460_v47, %v1459_v39 }
 0x13d   : > { %886 = vxpose.xlu2.c.b16.end [2/2] (short) (narrow) %v876_v9, 16 }
 0x15f   : > { %1430 = vadd.xlane.f32.xlu0 %v1429_v36  ;;  %1407 = vadd.xlane.f32.xlu1 %v1406_v12 }
 0x167   : > { %1446 = vadd.xlane.f32.xlu1 %v1445_v33 }
 0x177   : > { %v4294_v14 = vpop.permute.xlu0 %1636 }
 0x187   : > { %v1659_v46 = vpop.permute.xlu1 %1658  ;;  %v1661_v52 = vpop.permute.xlu0 %1660 }
 0x188   : > { %v1664_v48 = vsel %vm1403_vm4, %v1659_v46, 0.0  ;;  %v1665_v0 = vsel %vm1403_vm4, %v1661_v52, 0.0 }
 0x189   : > { %v1666_v28 = vadd.f32 %v1665_v0, %v1664_v48 }
 0x18b   : > { %1667 = vadd.xlane.f32.xlu1 %v1666_v28  ;;  %v3770_v28 = vmov 1024.0  }
 0x18c   : > { %3652 = vrcp.f32 %v3770_v28 }
 0x192   : > { %v3653_v29 = vpop.eup %3652 }
 0x193   : > { %v1418_v11 = vmul.f32 1024.0, %v3653_v29  ;;  %vm1422_vm5 = vweird.f32 %v3653_v29 }
 0x198   : > { %v1683_v10 = vpop.permute.xlu1 %1682  ;;  %v1685_v44 = vpop.permute.xlu0 %1684 }
 0x199   : > { %v1688_v15 = vsel %vm1403_vm4, %v1683_v10, 0.0  ;;  %v1689_v16 = vsel %vm1403_vm4, %v1685_v44, 0.0  ;;  %v1641_v44 = vsel %vm1403_vm4, %v4294_v14, 0.0 }
 0x19a   : > { %v1690_v18 = vadd.f32 %v1689_v16, %v1688_v15  ;;  %v1419_v16 = vsub.f32 1.0, %v1418_v11 }
 0x1a6   : > { %1634 = vrot.lane.b32.xlu2 %v4280_v40, %s3769_s29 }
 0x1a7   : > { %v1707_v25 = vpop.permute.xlu1 %1706  ;;  %v1709_v21 = vpop.permute.xlu0 %1708 }
 0x1a8   : > { %v1712_v41 = vsel %vm1403_vm4, %v1707_v25, 0.0  ;;  %v1713_v27 = vsel %vm1403_vm4, %v1709_v21, 0.0  ;;  %v1420_v25 = vmul.f32 %v3653_v29, %v1419_v16 }
 0x1a9   : > { %v1714_v26 = vadd.f32 %v1713_v27, %v1712_v41 }
 0x1aa   : > { %v1421_v21 = vadd.f32 %v3653_v29, %v1420_v25 }
 0x1ab   : > { %1715 = vadd.xlane.f32.xlu1 %v1714_v26 }
 0x1ce   : > { %v893_v60 = vpop.trf.xlu2 }
 0x1cf   : > { %1462 = vadd.xlane.f32.xlu2 %v1461_v58  ;;  %3293 = vmatmul.msk.bf16.vlgmr.msra.gmra.mxu2 %vm913_vm0, %v893_v60 }
 0x1d2   : > { %v1431_v17 = vpop.xlane.xlu0 %1430  ;;  %v1408_v34 = vpop.xlane.xlu1 %1407 }
 0x1d3   : > { %v1432_v35 = vrot.slane %v1431_v17, 4  ;;  %v1409_v7 = vrot.slane %v1408_v34, 4 }
 0x1d5   : > { %v1433_v30 = vadd.f32 %v1432_v35, %v1431_v17  ;;  %v1410_v55 = vadd.f32 %v1409_v7, %v1408_v34 }
 0x1d7   : > { %v1434_v9 = vrot.slane %v1433_v30, 2  ;;  %v1411_v38 = vrot.slane %v1410_v55, 2 }
 0x1d9   : > { %v1412_v43 = vadd.f32 %v1411_v38, %v1410_v55  ;;  %v1435_v49 = vadd.f32 %v1434_v9, %v1433_v30 }
 0x1da   : > { %v1447_v61 = vpop.xlane.xlu1 %1446 }
 0x1db   : > { %v1448_v62 = vrot.slane %v1447_v61, 4  ;;  %v1413_v36 = vrot.slane %v1412_v43, 1  ;;  %v1436_v12 = vrot.slane %v1435_v49, 1 }
 0x1dd   : > { %v1449_v23 = vadd.f32 %v1448_v62, %v1447_v61  ;;  %v1414_v54 = vadd.f32 %v1413_v36, %v1412_v43  ;;  %v1437_v33 = vadd.f32 %v1436_v12, %v1435_v49 }
 0x1df   : > { %v1450_v46 = vrot.slane %v1449_v23, 2  ;;  %3514 = vpush %v1414_v54  ;;  %3314 = vmatmul.msk.bf16.vlgmr.msrb.gmra.mxu2 %vm913_vm0, %v3955_v19 }
 0x1e0   : > { %3516 = vpush %v1437_v33 }
 0x1e1   : > { %v1451_v52 = vadd.f32 %v1450_v46, %v1449_v23 }
 0x1e3   : > { %v1452_v48 = vrot.slane %v1451_v52, 1 }
 0x1e5   : > { %v1453_v0 = vadd.f32 %v1452_v48, %v1451_v52 }
 0x1e7   : > { %3518 = vpush %v1453_v0 }
 0x1ef   : > { %3315 = vmatmul.msk.bf16.gmra.mxu2 %vm913_vm0, %v3998_v32  ;;  %v4326_v32 = vsel %vm1422_vm5, %v3653_v29, %v1421_v21 }
 0x1fe   : > { %v1668_v46 = vpop.xlane.xlu1 %1667 }
 0x1ff   : > { %3316 = vmatmul.msk.bf16.gmra.mxu2 %vm913_vm0, %v4028_v42  ;;  %v1669_v28 = vrot.slane %v1668_v46, 4 }
 0x200   : > { %v1635_v10 = vpop.permute.xlu2 %1634 }
 0x201   : > { %v1640_v19 = vsel %vm1403_vm4, %v1635_v10, 0.0 }
 0x202   : > { %v1642_v15 = vadd.f32 %v1641_v44, %v1640_v19  ;;  %v1670_v44 = vadd.f32 %v1669_v28, %v1668_v46 }
 0x204   : > { %1643 = vadd.xlane.f32.xlu0 %v1642_v15  ;;  %v1671_v21 = vrot.slane %v1670_v44, 2 }
 0x20c   : > { %1691 = vadd.xlane.f32.xlu0 %v1690_v18 }
 0x20f   : > { %3317 = vmatmul.msk.bf16.gmra.mxu2 %vm913_vm0, %v4053_v50 }
 0x210   : > { %s3515_s28 = spop %3514 }
 0x211   : > { %s3517_s25 = spop %3516  ;;  %v1416_v14 = vstv %s3515_s28 }
 0x212   : > { %v1439_v42 = vstv %s3517_s25  ;;  %v1424_v39 = vmul.f32 %v4326_v32, %v1416_v14 }
 0x213   : > { %v1440_v41 = vmul.f32 %v1439_v42, %v4326_v32 }
 0x214   : > { %v1425_v50 = vsub.f32 %v4280_v40, %v1424_v39  ;;  %v1426_v17 = vsub.f32 %v4203_v31, %v1424_v39 }
 0x215   : > { %v1441_v27 = vsub.f32 %v4229_v56, %v1440_v41  ;;  %v1442_v26 = vsub.f32 %v4232_v5, %v1440_v41 }
 0x216   : > { %v1475_v30 = vpack.c.bf16 %v1426_v17, %v1425_v50 }
 0x217   : > { %v1476_v47 = vpack.c.bf16 %v1442_v26, %v1441_v27 }
 0x218   : > { %s3519_s27 = spop %3518 }
 0x219   : > { %v1455_v18 = vstv %s3519_s27  ;;  %v1481_v58 = vsel %vm1403_vm4, %v1476_v47, 0 }
 0x21a   : > { %v1456_v60 = vmul.f32 %v1455_v18, %v4326_v32  ;;  %1490 = vmatpush.bf16.xpose.msrb.mxu0 %v1481_v58  ;;  %v1672_v58 = vadd.f32 %v1671_v21, %v1670_v44 }
 0x21c   : > { %v1457_v34 = vsub.f32 %v4244_v45, %v1456_v60  ;;  %v1458_v35 = vsub.f32 %v4247_v13, %v1456_v60 }
 0x21e   : > { %v4340_v7 = vpack.c.bf16 %v1458_v35, %v1457_v34  ;;  %v1716_v19 = vpop.xlane.xlu1 %1715 }
 0x21f   : > { %v1717_v25 = vrot.slane %v1716_v19, 4 }
 0x220   : > { %v1526_v55 = vsel %vm1403_vm4, %v4340_v7, 0 }
 0x221   : > { %3318 = vmatmul.msk.bf16.vlgmr.msrb.gmra.mxu0 %vm1403_vm4, %v1475_v30  ;;  %1535 = vmatpush.bf16.xpose.msrb.mxu1 %v1526_v55  ;;  %v1718_v26 = vadd.f32 %v1717_v25, %v1716_v19 }
 0x223   : > { %v1719_v35 = vrot.slane %v1718_v26, 2 }
 0x228   : > { %3319 = vmatmul.msk.bf16.vlgmr.msrb.gmra.mxu1 %vm1403_vm4, %v1476_v47 }
 0x242   : > { %v1463_v9 = vpop.xlane.xlu2 %1462 }
 0x243   : > { %v1464_v38 = vrot.slane %v1463_v9, 4 }
 0x245   : > { %v1465_v43 = vadd.f32 %v1464_v38, %v1463_v9 }
 0x247   : > { %v1466_v49 = vrot.slane %v1465_v43, 2 }
 0x249   : > { %v1467_v61 = vadd.f32 %v1466_v49, %v1465_v43 }
 0x24b   : > { %v1468_v62 = vrot.slane %v1467_v61, 1 }
 0x24d   : > { %v1469_v36 = vadd.f32 %v1468_v62, %v1467_v61 }
 0x24f   : > { %3520 = vpush %v1469_v36 }
 0x252   : > { %v4346_v12 = vpop.f32.mrf.mxu2 }
 0x25a   : > { %v928_v23 = vpop.f32.mrf.mxu2 }
 0x262   : > { %v1056_v54 = vpop.f32.mrf.mxu2 }
 0x263   : > { %v1057_v52 = vadd.f32 %v1056_v54, %v4087_v2 }
 0x26a   : > { %v1058_v33 = vpop.f32.mrf.mxu2 }
 0x26b   : > { %v1059_v48 = vadd.f32 %v1058_v33, %v4089_v3 }
 0x26d   : > { %v1087_v0 = vadd.f32 %v1059_v48, %v1057_v52 }
 0x26f   : > { %v1088_v29 = vrot.slane %v1087_v0, 4 }
 0x271   : > { %v1089_v11 = vadd.f32 %v1088_v29, %v1087_v0 }
 0x272   : > { %v1061_v10 = vpop.f32.mrf.mxu2 }
 0x273   : > { %v1090_v15 = vrot.slane %v1089_v11, 2  ;;  %v1062_v47 = vadd.f32 %v1061_v10, %v4093_v20  ;;  %v1673_v20 = vrot.slane %v1672_v58, 1 }
 0x275   : > { %v1091_v16 = vadd.f32 %v1090_v15, %v1089_v11  ;;  %v1674_v28 = vadd.f32 %v1673_v20, %v1672_v58 }
 0x277   : > { %v1092_v42 = vrot.slane %v1091_v16, 1  ;;  %v1644_v41 = vpop.xlane.xlu0 %1643 }
 0x278   : > { %v1645_v14 = vrot.slane %v1644_v41, 4 }
 0x279   : > { %v1093_v27 = vadd.f32 %v1092_v42, %v1091_v16 }
 0x27a   : > { %v1646_v39 = vadd.f32 %v1645_v14, %v1644_v41  ;;  %v1063_v2 = vpop.f32.mrf.mxu2 }
 0x27b   : > { %v1102_v3 = vmul.f32 %v4095_v22, %v1093_v27  ;;  %v1064_v18 = vadd.f32 %v1063_v2, %v4097_v24 }
 0x27c   : > { %v1647_v60 = vrot.slane %v1646_v39, 2 }
 0x27d   : > { %v4353_v50 = vsub.f32 %v1057_v52, %v1102_v3  ;;  %v4355_v17 = vsub.f32 %v1059_v48, %v1102_v3  ;;  %v1188_v34 = vadd.f32 %v1064_v18, %v1062_v47  ;;  %v1720_v52 = vadd.f32 %v1719_v35, %v1718_v26 }
 0x27e   : > { %v1648_v30 = vadd.f32 %v1647_v60, %v1646_v39 }
 0x27f   : > { %v1108_v55 = vmul.f32 %v4353_v50, %v4353_v50  ;;  %v1110_v9 = vmul.f32 %v4355_v17, %v4355_v17  ;;  %v1189_v38 = vrot.slane %v1188_v34, 4  ;;  %v1692_v43 = vpop.xlane.xlu0 %1691  ;;  %v1721_v25 = vrot.slane %v1720_v52, 1 }
 0x280   : > { %v1693_v49 = vrot.slane %v1692_v43, 4  ;;  %s3521_s19 = spop %3520  ;;  %v1649_v24 = vrot.slane %v1648_v30, 1 }
 0x281   : > { %v1118_v61 = vadd.f32 %v1110_v9, %v1108_v55  ;;  %v1190_v62 = vadd.f32 %v1189_v38, %v1188_v34  ;;  %v1471_v36 = vstv %s3521_s19  ;;  %v1722_v3 = vadd.f32 %v1721_v25, %v1720_v52 }
 0x282   : > { %v1694_v23 = vadd.f32 %v1693_v49, %v1692_v43  ;;  %v1472_v54 = vmul.f32 %v1471_v36, %v4326_v32  ;;  %v1066_v33 = vpop.f32.mrf.mxu2  ;;  %v1650_v46 = vadd.f32 %v1649_v24, %v1648_v30 }
 0x283   : > { %v1119_v48 = vrot.slane %v1118_v61, 4  ;;  %v1191_v0 = vrot.slane %v1190_v62, 2  ;;  %v1067_v34 = vadd.f32 %v1066_v33, %v4118_v1 }
 0x284   : > { %v1695_v29 = vrot.slane %v1694_v23, 2  ;;  %v1473_v11 = vsub.f32 %v4266_v57, %v1472_v54  ;;  %v1474_v10 = vsub.f32 %v4269_v59, %v1472_v54  ;;  %3522 = vpush %v1650_v46 }
 0x285   : > { %v1120_v44 = vadd.f32 %v1119_v48, %v1118_v61  ;;  %v1192_v19 = vadd.f32 %v1191_v0, %v1190_v62  ;;  %3524 = vpush %v1674_v28 }
 0x286   : > { %v1568_v15 = vpack.c.bf16 %v1474_v10, %v1473_v11  ;;  %v1696_v16 = vadd.f32 %v1695_v29, %v1694_v23 }
 0x287   : > { %v1121_v21 = vrot.slane %v1120_v44, 2  ;;  %v1193_v42 = vrot.slane %v1192_v19, 1 }
 0x288   : > { %v1570_v41 = vsel %vm1403_vm4, %v1568_v15, 0  ;;  %v1697_v14 = vrot.slane %v1696_v16, 1 }
 0x289   : > { %v1122_v27 = vadd.f32 %v1121_v21, %v1120_v44  ;;  %v1194_v26 = vadd.f32 %v1193_v42, %v1192_v19  ;;  %1579 = vmatpush.bf16.xpose.msrb.mxu3 %v1570_v41 }
 0x28a   : > { %v1068_v39 = vpop.f32.mrf.mxu2  ;;  %v1698_v2 = vadd.f32 %v1697_v14, %v1696_v16 }
 0x28b   : > { %v1123_v58 = vrot.slane %v1122_v27, 1  ;;  %v1196_v60 = vmul.f32 %v1194_v26, %v4095_v22  ;;  %v1069_v35 = vadd.f32 %v1068_v39, %v4124_v8 }
 0x28c   : > { %3526 = vpush %v1698_v2 }
 0x28d   : > { %v1124_v30 = vadd.f32 %v1123_v58, %v1122_v27  ;;  %v4368_v55 = vsub.f32 %v1062_v47, %v1196_v60  ;;  %v4370_v9 = vsub.f32 %v1064_v18, %v1196_v60  ;;  %v1262_v38 = vadd.f32 %v1069_v35, %v1067_v34  ;;  %3528 = vpush %v1722_v3 }
 0x28f   : > { %v1126_v43 = vmul.f32 %v1124_v30, %v4095_v22  ;;  %v1202_v20 = vmul.f32 %v4368_v55, %v4368_v55  ;;  %v1204_v49 = vmul.f32 %v4370_v9, %v4370_v9  ;;  %v1263_v24 = vrot.slane %v1262_v38, 4 }
 0x290   : > { %3320 = vmatmul.msk.bf16.vlgmr.msrb.gmra.mxu3 %vm1403_vm4, %v4340_v7 }
 0x291   : > { %v1128_v1 = vadd.f32 1e-05, %v1126_v43  ;;  %v1212_v8 = vadd.f32 %v1204_v49, %v1202_v20  ;;  %v1264_v47 = vadd.f32 %v1263_v24, %v1262_v38 }
 0x292   : > { %v1071_v61 = vpop.f32.mrf.mxu2 }
 0x293   : > { %3654 = vrsqrt.f32 %v1128_v1  ;;  %v1213_v18 = vrot.slane %v1212_v8, 4  ;;  %v1265_v62 = vrot.slane %v1264_v47, 2  ;;  %v1072_v7 = vadd.f32 %v1071_v61, %v4144_v6 }
 0x294   : > { %vm1145_vm7 = vweird.f32 %v1128_v1 }
 0x295   : > { %v1214_v36 = vadd.f32 %v1213_v18, %v1212_v8  ;;  %v1266_v23 = vadd.f32 %v1265_v62, %v1264_v47 }
 0x297   : > { %v1215_v54 = vrot.slane %v1214_v36, 2  ;;  %v1267_v33 = vrot.slane %v1266_v23, 1 }
 0x299   : > { %v3655_v46 = vpop.eup %3654  ;;  %v1216_v52 = vadd.f32 %v1215_v54, %v1214_v36  ;;  %v1268_v48 = vadd.f32 %v1267_v33, %v1266_v23 }
 0x29a   : > { %v1140_v0 = vmul.f32 %v3655_v46, %v1128_v1  ;;  %v1073_v28 = vpop.f32.mrf.mxu2  ;;  %vm1146_vm6 = vweird.f32 %v3655_v46 }
 0x29b   : > { %v1217_v29 = vrot.slane %v1216_v52, 1  ;;  %v1270_v11 = vmul.f32 %v1268_v48, %v4095_v22  ;;  %v1074_v10 = vadd.f32 %v1073_v28, %v4142_v63  ;;  %vm1147_vm8 = vmor %vm1145_vm7, %vm1146_vm6 }
 0x29c   : > { %v1141_v44 = vmul.f32 %v3655_v46, %v1140_v0 }
 0x29d   : > { %v1218_v19 = vadd.f32 %v1217_v29, %v1216_v52  ;;  %v4382_v15 = vsub.f32 %v1067_v34, %v1270_v11  ;;  %v4384_v16 = vsub.f32 %v1069_v35, %v1270_v11  ;;  %v1336_v25 = vadd.f32 %v1074_v10, %v1072_v7 }
 0x29e   : > { %v1142_v21 = vmul.f32 0.5, %v1141_v44 }
 0x29f   : > { %v1220_v42 = vmul.f32 %v1218_v19, %v4095_v22  ;;  %v1276_v41 = vmul.f32 %v4382_v15, %v4382_v15  ;;  %v1278_v14 = vmul.f32 %v4384_v16, %v4384_v16  ;;  %v1337_v27 = vrot.slane %v1336_v25, 4 }
 0x2a0   : > { %v1143_v6 = vsub.f32 1.5, %v1142_v21 }
 0x2a1   : > { %v1222_v63 = vadd.f32 1e-05, %v1220_v42  ;;  %v1286_v26 = vadd.f32 %v1278_v14, %v1276_v41  ;;  %v1338_v39 = vadd.f32 %v1337_v27, %v1336_v25 }
 0x2a2   : > { %v1144_v2 = vmul.f32 %v3655_v46, %v1143_v6 }
 0x2a3   : > { %3656 = vrsqrt.f32 %v1222_v63  ;;  %v1287_v3 = vrot.slane %v1286_v26, 4  ;;  %v1339_v58 = vrot.slane %v1338_v39, 2  ;;  %vm1239_vm10 = vweird.f32 %v1222_v63 }
 0x2a4   : > { %v1148_v60 = vsel %vm1147_vm8, %v3655_v46, %v1144_v2 }
 0x2a5   : > { %v1150_v34 = vmul.f32 %v1148_v60, %v4353_v50  ;;  %v1152_v35 = vmul.f32 %v1148_v60, %v4355_v17  ;;  %v1288_v30 = vadd.f32 %v1287_v3, %v1286_v26  ;;  %v1340_v38 = vadd.f32 %v1339_v58, %v1338_v39 }
 0x2a7   : > { %v1164_v43 = vmul.f32 %v4208_v4, %v1150_v34  ;;  %v1166_v20 = vmul.f32 %v4156_v37, %v1152_v35  ;;  %v1289_v49 = vrot.slane %v1288_v30, 2  ;;  %v1341_v24 = vrot.slane %v1340_v38, 1 }
 0x2a9   : > { %v3657_v8 = vpop.eup %3656  ;;  %v1290_v47 = vadd.f32 %v1289_v49, %v1288_v30  ;;  %v1342_v1 = vadd.f32 %v1341_v24, %v1340_v38  ;;  %v4396_v61 = vadd.f32 %v4223_v51, %v1164_v43  ;;  %v4399_v18 = vadd.f32 %v4198_v53, %v1166_v20 }
 0x2aa   : > { %v1234_v50 = vmul.f32 %v3657_v8, %v1222_v63  ;;  %vm1240_vm9 = vweird.f32 %v3657_v8 }
 0x2ab   : > { %v1291_v62 = vrot.slane %v1290_v47, 1  ;;  %v1344_v17 = vmul.f32 %v1342_v1, %v4095_v22  ;;  %2118 = vrot.lane.b32.xlu1 %v4396_v61, %s3769_s29  ;;  %2120 = vrot.lane.b32.xlu0 %v4399_v18, %s3769_s29  ;;  %vm1241_vm11 = vmor %vm1239_vm10, %vm1240_vm9 }
 0x2ac   : > { %v1235_v36 = vmul.f32 %v3657_v8, %v1234_v50 }
 0x2ad   : > { %v1292_v23 = vadd.f32 %v1291_v62, %v1290_v47  ;;  %v1346_v54 = vsub.f32 %v1072_v7, %v1344_v17  ;;  %v1348_v33 = vsub.f32 %v1074_v10, %v1344_v17 }
 0x2ae   : > { %v1236_v46 = vmul.f32 0.5, %v1235_v36 }
 0x2af   : > { %v1294_v52 = vmul.f32 %v1292_v23, %v4095_v22  ;;  %v1350_v48 = vmul.f32 %v1346_v54, %v1346_v54  ;;  %v1352_v0 = vmul.f32 %v1348_v33, %v1348_v33 }
 0x2b0   : > { %v1237_v28 = vsub.f32 1.5, %v1236_v46 }
 0x2b1   : > { %v1296_v29 = vadd.f32 1e-05, %v1294_v52  ;;  %v1360_v11 = vadd.f32 %v1352_v0, %v1350_v48 }
 0x2b2   : > { %v1238_v44 = vmul.f32 %v3657_v8, %v1237_v28 }
 0x2b3   : > { %3658 = vrsqrt.f32 %v1296_v29  ;;  %v1361_v19 = vrot.slane %v1360_v11, 4  ;;  %vm1313_vm13 = vweird.f32 %v1296_v29 }
 0x2b4   : > { %v1242_v25 = vsel %vm1241_vm11, %v3657_v8, %v1238_v44 }
 0x2b5   : > { %v1244_v21 = vmul.f32 %v1242_v25, %v4368_v55  ;;  %v1246_v7 = vmul.f32 %v1242_v25, %v4370_v9  ;;  %v1362_v10 = vadd.f32 %v1361_v19, %v1360_v11  ;;  %s3523_s17 = spop %3522 }
 0x2b6   : > { %s3525_s20 = spop %3524 }
 0x2b7   : > { %v1248_v42 = vmul.f32 %v1244_v21, %v4208_v4  ;;  %v1363_v41 = vrot.slane %v1362_v10, 2  ;;  %v1250_v27 = vmul.f32 %v1246_v7, %v4156_v37 }
 0x2b9   : > { %v3659_v14 = vpop.eup %3658  ;;  %v1364_v6 = vadd.f32 %v1363_v41, %v1362_v10  ;;  %v4412_v26 = vadd.f32 %v1248_v42, %v4223_v51  ;;  %v4417_v9 = vadd.f32 %v1250_v27, %v4198_v53 }
 0x2ba   : > { %v1308_v63 = vmul.f32 %v3659_v14, %v1296_v29  ;;  %vm1314_vm12 = vweird.f32 %v3659_v14 }
 0x2bb   : > { %v1365_v39 = vrot.slane %v1364_v6, 1  ;;  %2142 = vrot.lane.b32.xlu1 %v4412_v26, %s3769_s29  ;;  %2144 = vrot.lane.b32.xlu0 %v4417_v9, %s3769_s29  ;;  %vm1315_vm14 = vmor %vm1313_vm13, %vm1314_vm12 }
 0x2bc   : > { %v1309_v2 = vmul.f32 %v3659_v14, %v1308_v63 }
 0x2bd   : > { %v1366_v55 = vadd.f32 %v1365_v39, %v1364_v6  ;;  %s3527_s26 = spop %3526 }
 0x2be   : > { %v1310_v3 = vmul.f32 0.5, %v1309_v2  ;;  %s4484_s18 = spop %3528 }
 0x2bf   : > { %v1368_v58 = vmul.f32 %v1366_v55, %v4095_v22 }
 0x2c0   : > { %v1311_v60 = vsub.f32 1.5, %v1310_v3 }
 0x2c1   : > { %v1370_v34 = vadd.f32 1e-05, %v1368_v58 }
 0x2c2   : > { %v1312_v35 = vmul.f32 %v3659_v14, %v1311_v60  ;;  %v1676_v60 = vstv %s3525_s20 }
 0x2c3   : > { %3660 = vrsqrt.f32 %v1370_v34  ;;  %vm1387_vm1 = vweird.f32 %v1370_v34 }
 0x2c4   : > { %v1316_v30 = vsel %vm1315_vm14, %v3659_v14, %v1312_v35 }
 0x2c5   : > { %v1318_v38 = vmul.f32 %v1316_v30, %v4382_v15  ;;  %v1320_v43 = vmul.f32 %v1316_v30, %v4384_v16 }
 0x2c7   : > { %v1322_v20 = vmul.f32 %v1318_v38, %v4208_v4  ;;  %v1324_v49 = vmul.f32 %v1320_v43, %v4156_v37  ;;  %v1652_v38 = vstv %s3523_s17 }
 0x2c9   : > { %v3661_v22 = vpop.eup %3660  ;;  %v4427_v24 = vadd.f32 %v1322_v20, %v4223_v51  ;;  %v4430_v8 = vadd.f32 %v1324_v49, %v4198_v53 }
 0x2ca   : > { %v1382_v47 = vmul.f32 %v3661_v22, %v1370_v34  ;;  %vm1388_vm15 = vweird.f32 %v3661_v22  ;;  %v1677_v34 = vmul.f32 %v1676_v60, %v4326_v32 }
 0x2cb   : > { %2166 = vrot.lane.b32.xlu1 %v4427_v24, %s3769_s29  ;;  %2168 = vrot.lane.b32.xlu0 %v4430_v8, %s3769_s29  ;;  %vm1389_vm2 = vmor %vm1387_vm1, %vm1388_vm15  ;;  %v1928_v29 = vsel %vm1403_vm4, %v4427_v24, 0.0  ;;  %v1929_v11 = vsel %vm1403_vm4, %v4430_v8, 0.0 }
 0x2cc   : > { %v1383_v15 = vmul.f32 %v3661_v22, %v1382_v47  ;;  %v1930_v19 = vadd.f32 %v1929_v11, %v1928_v29  ;;  %v1678_v35 = vsub.f32 %v4229_v56, %v1677_v34  ;;  %v1679_v30 = vsub.f32 %v4232_v5, %v1677_v34 }
 0x2ce   : > { %v1384_v16 = vmul.f32 0.5, %v1383_v15  ;;  %v1729_v43 = vpack.c.bf16 %v1679_v30, %v1678_v35  ;;  %v1653_v15 = vmul.f32 %v1652_v38, %v4326_v32 }
 0x2d0   : > { %v1385_v1 = vsub.f32 1.5, %v1384_v16  ;;  %v1655_v56 = vsub.f32 %v4203_v31, %v1653_v15 }
 0x2d2   : > { %v1386_v50 = vmul.f32 %v3661_v22, %v1385_v1  ;;  %v1654_v1 = vsub.f32 %v4280_v40, %v1653_v15 }
 0x2d4   : > { %v1390_v62 = vsel %vm1389_vm2, %v3661_v22, %v1386_v50  ;;  %v1728_v5 = vpack.c.bf16 %v1655_v56, %v1654_v1  ;;  %v1700_v50 = vstv %s3527_s26  ;;  %s3772_s26 = smov 32  }
 0x2d5   : > { %v1392_v17 = vmul.f32 %v1390_v62, %v1346_v54  ;;  %v1394_v36 = vmul.f32 %v1390_v62, %v1348_v33  ;;  %v1912_v54 = vsel %vm1403_vm4, %v4412_v26, 0.0  ;;  %v1701_v62 = vmul.f32 %v1700_v50, %v4326_v32 }
 0x2d7   : > { %v1396_v23 = vmul.f32 %v1392_v17, %v4208_v4  ;;  %v1398_v46 = vmul.f32 %v1394_v36, %v4156_v37  ;;  %v1913_v4 = vsel %vm1403_vm4, %v4417_v9, 0.0  ;;  %v1896_v37 = vsel %vm1403_vm4, %v4396_v61, 0.0 }
 0x2d8   : > { %v1702_v17 = vsub.f32 %v4244_v45, %v1701_v62  ;;  %v1703_v36 = vsub.f32 %v4247_v13, %v1701_v62 }
 0x2d9   : > { %v4439_v52 = vadd.f32 %v1396_v23, %v4223_v51  ;;  %v4442_v48 = vadd.f32 %v1398_v46, %v4198_v53  ;;  %v1897_v51 = vsel %vm1403_vm4, %v4399_v18, 0.0  ;;  %v1914_v53 = vadd.f32 %v1913_v4, %v1912_v54 }
 0x2da   : > { %v1898_v33 = vadd.f32 %v1897_v51, %v1896_v37  ;;  %v1782_v23 = vpack.c.bf16 %v1703_v36, %v1702_v17 }
 0x2db   : > { %2190 = vrot.lane.b32.xlu1 %v4439_v52, %s3769_s29  ;;  %2192 = vrot.lane.b32.xlu0 %v4442_v48, %s3769_s29  ;;  %v1944_v0 = vsel %vm1403_vm4, %v4439_v52, 0.0  ;;  %v1945_v28 = vsel %vm1403_vm4, %v4442_v48, 0.0 }
 0x2dc   : > { %v1946_v44 = vadd.f32 %v1945_v28, %v1944_v0 }
 0x305   : > { %1915 = vadd.xlane.f32.xlu1 %v1914_v53  ;;  %1899 = vadd.xlane.f32.xlu0 %v1898_v33 }
 0x30d   : > { %1947 = vadd.xlane.f32.xlu1 %v1946_v44  ;;  %1931 = vadd.xlane.f32.xlu0 %v1930_v19 }
 0x31d   : > { %v2119_v25 = vpop.permute.xlu1 %2118  ;;  %v2121_v21 = vpop.permute.xlu0 %2120 }
 0x31e   : > { %v2124_v7 = vsel %vm1403_vm4, %v2119_v25, 0.0  ;;  %v2125_v10 = vsel %vm1403_vm4, %v2121_v21, 0.0 }
 0x31f   : > { %v2126_v42 = vadd.f32 %v2125_v10, %v2124_v7 }
 0x321   : > { %2127 = vadd.xlane.f32.xlu0 %v2126_v42 }
 0x32d   : > { %v2143_v41 = vpop.permute.xlu1 %2142  ;;  %v2145_v27 = vpop.permute.xlu0 %2144 }
 0x32e   : > { %v2148_v14 = vsel %vm1403_vm4, %v2143_v41, 0.0  ;;  %v2149_v6 = vsel %vm1403_vm4, %v2145_v27, 0.0 }
 0x32f   : > { %v2150_v63 = vadd.f32 %v2149_v6, %v2148_v14 }
 0x331   : > { %2151 = vadd.xlane.f32.xlu1 %v2150_v63 }
 0x33d   : > { %v2167_v39 = vpop.permute.xlu1 %2166  ;;  %v2169_v2 = vpop.permute.xlu0 %2168 }
 0x33e   : > { %v2172_v55 = vsel %vm1403_vm4, %v2167_v39, 0.0  ;;  %v2173_v3 = vsel %vm1403_vm4, %v2169_v2, 0.0 }
 0x33f   : > { %v2174_v58 = vadd.f32 %v2173_v3, %v2172_v55 }
 0x341   : > { %2175 = vadd.xlane.f32.xlu2 %v2174_v58 }
 0x34a   : > { %1734 = vrot.lane.b32.xlu1 %v1729_v43, %s3769_s29 }
 0x34d   : > { %v2191_v20 = vpop.permute.xlu1 %2190  ;;  %v2193_v49 = vpop.permute.xlu0 %2192 }
 0x34e   : > { %v2196_v22 = vsel %vm1403_vm4, %v2191_v20, 0.0  ;;  %v2197_v47 = vsel %vm1403_vm4, %v2193_v49, 0.0 }
 0x34f   : > { %v2198_v16 = vadd.f32 %v2197_v47, %v2196_v22 }
 0x351   : > { %2199 = vadd.xlane.f32.xlu0 %v2198_v16 }
 0x359   : > { %1731 = vrot.lane.b32.xlu2 %v1728_v5, %s3769_s29 }
 0x365   : > { %1784 = vrot.lane.b32.xlu0 %v1782_v23, %s3769_s29 }
 0x378   : > { %v1916_v46 = vpop.xlane.xlu1 %1915  ;;  %v1900_v54 = vpop.xlane.xlu0 %1899 }
 0x379   : > { %v1917_v4 = vrot.slane %v1916_v46, 4  ;;  %v1901_v40 = vrot.slane %v1900_v54, 4 }
 0x37b   : > { %v1918_v37 = vadd.f32 %v1917_v4, %v1916_v46  ;;  %v1902_v31 = vadd.f32 %v1901_v40, %v1900_v54 }
 0x37d   : > { %v1919_v51 = vrot.slane %v1918_v37, 2  ;;  %v1903_v53 = vrot.slane %v1902_v31, 2 }
 0x37f   : > { %v1904_v33 = vadd.f32 %v1903_v53, %v1902_v31  ;;  %v1920_v0 = vadd.f32 %v1919_v51, %v1918_v37 }
 0x380   : > { %v1948_v28 = vpop.xlane.xlu1 %1947  ;;  %v1932_v29 = vpop.xlane.xlu0 %1931 }
 0x381   : > { %v1949_v11 = vrot.slane %v1948_v28, 4  ;;  %v1933_v44 = vrot.slane %v1932_v29, 4  ;;  %v1905_v45 = vrot.slane %v1904_v33, 1  ;;  %v1921_v19 = vrot.slane %v1920_v0, 1 }
 0x383   : > { %v1950_v13 = vadd.f32 %v1949_v11, %v1948_v28  ;;  %v1934_v25 = vadd.f32 %v1933_v44, %v1932_v29  ;;  %v1906_v21 = vadd.f32 %v1905_v45, %v1904_v33  ;;  %v1922_v7 = vadd.f32 %v1921_v19, %v1920_v0 }
 0x385   : > { %v1951_v10 = vrot.slane %v1950_v13, 2  ;;  %v1935_v42 = vrot.slane %v1934_v25, 2  ;;  %3530 = vpush %v1906_v21 }
 0x386   : > { %3532 = vpush %v1922_v7 }
 0x387   : > { %v1936_v41 = vadd.f32 %v1935_v42, %v1934_v25  ;;  %v1952_v14 = vadd.f32 %v1951_v10, %v1950_v13 }
 0x389   : > { %v1937_v27 = vrot.slane %v1936_v41, 1  ;;  %v1953_v6 = vrot.slane %v1952_v14, 1 }
 0x38b   : > { %v1938_v63 = vadd.f32 %v1937_v27, %v1936_v41  ;;  %v1954_v39 = vadd.f32 %v1953_v6, %v1952_v14 }
 0x38d   : > { %3534 = vpush %v1938_v63 }
 0x38e   : > { %3536 = vpush %v1954_v39 }
 0x394   : > { %v2128_v2 = vpop.xlane.xlu0 %2127 }
 0x395   : > { %v2129_v55 = vrot.slane %v2128_v2, 4 }
 0x397   : > { %v2130_v3 = vadd.f32 %v2129_v55, %v2128_v2 }
 0x399   : > { %v2131_v58 = vrot.slane %v2130_v3, 2 }
 0x39b   : > { %v2132_v60 = vadd.f32 %v2131_v58, %v2130_v3 }
 0x39d   : > { %v2133_v34 = vrot.slane %v2132_v60, 1 }
 0x39f   : > { %v2134_v35 = vadd.f32 %v2133_v34, %v2132_v60 }
 0x3a1   : > { %3538 = vpush %v2134_v35 }
 0x3a4   : > { %v2152_v30 = vpop.xlane.xlu1 %2151 }
 0x3a5   : > { %v2153_v38 = vrot.slane %v2152_v30, 4 }
 0x3a7   : > { %v2154_v43 = vadd.f32 %v2153_v38, %v2152_v30 }
 0x3a9   : > { %v2155_v20 = vrot.slane %v2154_v43, 2 }
 0x3ab   : > { %v2156_v49 = vadd.f32 %v2155_v20, %v2154_v43 }
 0x3ad   : > { %v2157_v22 = vrot.slane %v2156_v49, 1 }
 0x3af   : > { %v2158_v47 = vadd.f32 %v2157_v22, %v2156_v49  ;;  %v1724_v49 = vstv %s4484_s18 }
 0x3b1   : > { %3540 = vpush %v2158_v47 }
 0x3b4   : > { %v2176_v15 = vpop.xlane.xlu2 %2175 }
 0x3b5   : > { %v2177_v16 = vrot.slane %v2176_v15, 4 }
 0x3b6   : > { %s3531_s22 = spop %3530 }
 0x3b7   : > { %v2178_v1 = vadd.f32 %v2177_v16, %v2176_v15  ;;  %s3533_s23 = spop %3532  ;;  %v1908_v62 = vstv %s3531_s22  ;;  %v1725_v15 = vmul.f32 %v1724_v49, %v4326_v32 }
 0x3b8   : > { %v1924_v56 = vstv %s3533_s23  ;;  %v1909_v46 = vmul.f32 %v1908_v62, %v4326_v32 }
 0x3b9   : > { %v2179_v5 = vrot.slane %v2178_v1, 2  ;;  %v1925_v50 = vmul.f32 %v1924_v56, %v4326_v32 }
 0x3ba   : > { %v1910_v33 = vsub.f32 %v4396_v61, %v1909_v46  ;;  %v1911_v0 = vsub.f32 %v4399_v18, %v1909_v46 }
 0x3bb   : > { %v1926_v17 = vsub.f32 %v4412_v26, %v1925_v50  ;;  %v1927_v36 = vsub.f32 %v4417_v9, %v1925_v50  ;;  %v2180_v23 = vadd.f32 %v2179_v5, %v2178_v1 }
 0x3bc   : > { %v1735_v51 = vpop.permute.xlu1 %1734  ;;  %v1960_v19 = vpack.c.bf16 %v1911_v0, %v1910_v33  ;;  %v1732_v7 = vpop.permute.xlu2 %1731 }
 0x3bd   : > { %v1961_v54 = vpack.c.bf16 %v1927_v36, %v1926_v17  ;;  %v2181_v4 = vrot.slane %v2180_v23, 1  ;;  %v1740_v28 = vsel %vm1403_vm4, %v1735_v51, 0 }
 0x3be   : > { %s3535_s28 = spop %3534  ;;  %1749 = vmatpush.bf16.xpose.msra.mxu0 %v1740_v28 }
 0x3bf   : > { %v1940_v40 = vstv %s3535_s28  ;;  %v1966_v37 = vsel %vm1403_vm4, %v1961_v54, 0  ;;  %v2182_v31 = vadd.f32 %v2181_v4, %v2180_v23  ;;  %s3537_s25 = spop %3536  ;;  %v4532_v23 = vpop.f32.mrf.mxu0 }
 0x3c0   : > { %v1941_v53 = vmul.f32 %v1940_v40, %v4326_v32  ;;  %1975 = vmatpush.bf16.xpose.msra.mxu3 %v1966_v37  ;;  %v1956_v42 = vstv %s3537_s25 }
 0x3c1   : > { %3542 = vpush %v2182_v31  ;;  %v1957_v14 = vmul.f32 %v1956_v42, %v4326_v32 }
 0x3c2   : > { %v1942_v29 = vsub.f32 %v4427_v24, %v1941_v53  ;;  %v1943_v11 = vsub.f32 %v4430_v8, %v1941_v53 }
 0x3c3   : > { %v1958_v63 = vsub.f32 %v4439_v52, %v1957_v14  ;;  %v1959_v39 = vsub.f32 %v4442_v48, %v1957_v14 }
 0x3c4   : > { %v2200_v44 = vpop.xlane.xlu0 %2199  ;;  %v2008_v45 = vpack.c.bf16 %v1943_v11, %v1942_v29 }
 0x3c5   : > { %v2201_v13 = vrot.slane %v2200_v44, 4  ;;  %3321 = vmatmul.msk.bf16.vlgmr.msra.gmra.mxu0 %vm1403_vm4, %v1732_v7  ;;  %v2052_v2 = vpack.c.bf16 %v1959_v39, %v1958_v63 }
 0x3c6   : > { %v2010_v25 = vsel %vm1403_vm4, %v2008_v45, 0 }
 0x3c7   : > { %v2202_v21 = vadd.f32 %v2201_v13, %v2200_v44  ;;  %3324 = vmatmul.msk.bf16.vlgmr.msra.gmra.mxu3 %vm1403_vm4, %v1960_v19  ;;  %2019 = vmatpush.bf16.xpose.msrb.mxu0 %v2010_v25  ;;  %v2054_v58 = vsel %vm1403_vm4, %v2052_v2, 0  ;;  %v4534_v46 = vpop.f32.mrf.mxu0 }
 0x3c9   : > { %v2203_v10 = vrot.slane %v2202_v21, 2 }
 0x3cb   : > { %v2204_v41 = vadd.f32 %v2203_v10, %v2202_v21 }
 0x3cd   : > { %v2205_v27 = vrot.slane %v2204_v41, 1 }
 0x3cf   : > { %v2206_v6 = vadd.f32 %v2205_v27, %v2204_v41 }
 0x3d1   : > { %3544 = vpush %v2206_v6 }
 0x3d2   : > { %s3539_s27 = spop %3538 }
 0x3d3   : > { %v2136_v50 = vstv %s3539_s27  ;;  %s3204_s27 = sshll.u32 %s3922_s30, 2 }
 0x3d4   : > { %v2137_v62 = vmul.f32 %v2136_v50, %v4326_v32  ;;  %s567_s25 = scalar_lea.vmem [#allocation3], %s3204_s27  ;;  %s3722_s27 = scalar_lea.hbm %s4982_s16, 8 }
 0x3d5   : > { %3325 = vmatmul.msk.bf16.vlgmr.msrb.gmra.mxu0 %vm1403_vm4, %v1961_v54 }
 0x3d7   : > { %v4503_v55 = vpop.permute.xlu0 %1784 }
 0x3d8   : > { %v1787_v3 = vsel %vm1403_vm4, %v4503_v55, 0 }
 0x3d9   : > { %1796 = vmatpush.bf16.xpose.msra.mxu1 %v1787_v3 }
 0x3e0   : > { %3322 = vmatmul.msk.bf16.vlgmr.msra.gmra.mxu1 %vm1403_vm4, %v1735_v51 }
 0x3e1   : > { %2063 = vmatpush.bf16.xpose.msrb.mxu1 %v2054_v58 }
 0x3e2   : > { %s3541_s19 = spop %3540 }
 0x3e3   : > { %v2160_v60 = vstv %s3541_s19  ;;  %s4998_s19 = sadd.s32 4294967295, %s3764_s24  }
 0x3e4   : > { %v2161_v34 = vmul.f32 %v2160_v60, %v4326_v32 }
 0x3e6   : > { %v2162_v35 = vsub.f32 %v4412_v26, %v2161_v34  ;;  %v2163_v30 = vsub.f32 %v4417_v9, %v2161_v34  ;;  %v1726_v26 = vsub.f32 %v4266_v57, %v1725_v15  ;;  %v1727_v9 = vsub.f32 %v4269_v59, %v1725_v15 }
 0x3e7   : > { %v2138_v57 = vsub.f32 %v4396_v61, %v2137_v62  ;;  %v2139_v59 = vsub.f32 %v4399_v18, %v2137_v62 }
 0x3e8   : > { %v2213_v38 = vpack.c.bf16 %v2163_v30, %v2162_v35  ;;  %v1829_v1 = vpack.c.bf16 %v1727_v9, %v1726_v26 }
 0x3e9   : > { %v2212_v36 = vpack.c.bf16 %v2139_v59, %v2138_v57 }
 0x3ea   : > { %2218 = vrot.lane.b32.xlu2 %v2213_v38, %s3769_s29 }
 0x3f0   : > { %3326 = vmatmul.msk.bf16.vlgmr.msrb.gmra.mxu1 %vm1403_vm4, %v2008_v45 }
 0x3f2   : > { %s3543_s17 = spop %3542 }
 0x3f3   : > { %v2184_v43 = vstv %s3543_s17  ;;  %s3462_s17 = sshll.u32 %s4998_s19, 2  ;;  %s3128_s19 = sshll.u32 %s567_s25, 4  ;;  %s3129_s19 = int_to_ptr.vmem [resolvable:$true] %s3128_s19 }
 0x3f4   : > { %v2185_v20 = vmul.f32 %v2184_v43, %v4326_v32  ;;  %s3126_s28 = scalar_lea.hbm %s4982_s16, %s3462_s17 }
 0x3f6   : > { %v2186_v22 = vsub.f32 %v4427_v24, %v2185_v20  ;;  %v2187_v47 = vsub.f32 %v4430_v8, %v2185_v20 }
 0x3f8   : > { %v2266_v16 = vpack.c.bf16 %v2187_v47, %v2186_v22 }
 0x3fa   : > { %2268 = vrot.lane.b32.xlu1 %v2266_v16, %s3769_s29 }
 0x402   : > { %s3545_s20 = spop %3544  ;;  %1831 = vrot.lane.b32.xlu1 %v1829_v1, %s3769_s29 }
 0x403   : > { %v2208_v56 = vstv %s3545_s20  ;;  %s3130_s20 = sshll.u32 %s3126_s28, 4  ;;  %s3131_s20 = int_to_ptr.hbm [resolvable:$true] %s3130_s20 }
 0x404   : > { %v2209_v5 = vmul.f32 %v2208_v56, %v4326_v32 }
 0x406   : > { %v2210_v24 = vsub.f32 %v4439_v52, %v2209_v5  ;;  %v2211_v8 = vsub.f32 %v4442_v48, %v2209_v5 }
 0x408   : > { %v2313_v17 = vpack.c.bf16 %v2211_v8, %v2210_v24 }
 0x40a   : > { %2315 = vrot.lane.b32.xlu0 %v2313_v17, %s3769_s29 }
 0x412   : > { %2215 = vrot.lane.b32.xlu0 %v2212_v36, %s3769_s29  ;;  %s3771_s29 = smov 16  }
 0x442   : > { %v1751_v54 = vpop.f32.mrf.mxu0 }
 0x443   : > { %v1756_v52 = vmul.f32 0.015625, %v1751_v54 }
 0x444   : > { %v2219_v38 = vpop.permute.xlu2 %2218 }
 0x445   : > { %v1758_v48 = vmul.f32 %v1756_v52, %v1756_v52  ;;  %v2224_v47 = vsel %vm1403_vm4, %v2219_v38, 0 }
 0x447   : > { %v1760_v37 = vsel %vm1501_vm3, %v1758_v48, 0.0  ;;  %v1581_v48 = vpop.f32.mrf.mxu3 }
 0x44a   : > { %v1753_v4 = vpop.f32.mrf.mxu0 }
 0x44b   : > { %v1757_v40 = vmul.f32 0.015625, %v1753_v4 }
 0x44d   : > { %v1759_v32 = vmul.f32 %v1757_v40, %v1757_v40 }
 0x44f   : > { %v1761_v61 = vsel %vm1501_vm3, %v1759_v32, 0.0  ;;  %v1583_v32 = vpop.f32.mrf.mxu3 }
 0x450   : > { %v1762_v31 = vadd.f32 %v1761_v61, %v1760_v37 }
 0x452   : > { %v1763_v18 = vrot.slane %v1762_v31, 4  ;;  %v2021_v51 = vpop.f32.mrf.mxu0 }
 0x453   : > { %v2026_v0 = vmul.f32 0.015625, %v2021_v51 }
 0x454   : > { %v1764_v53 = vadd.f32 %v1763_v18, %v1762_v31 }
 0x455   : > { %v2028_v44 = vmul.f32 %v2026_v0, %v2026_v0 }
 0x456   : > { %v1765_v33 = vrot.slane %v1764_v53, 2 }
 0x457   : > { %v2030_v21 = vsel %vm1501_vm3, %v2028_v44, 0.0  ;;  %v4558_v18 = vpop.f32.mrf.mxu3 }
 0x458   : > { %v1766_v28 = vadd.f32 %v1765_v33, %v1764_v53 }
 0x45a   : > { %v1767_v29 = vrot.slane %v1766_v28, 1  ;;  %v2023_v11 = vpop.f32.mrf.mxu0 }
 0x45b   : > { %v2027_v45 = vmul.f32 0.015625, %v2023_v11 }
 0x45c   : > { %v1768_v19 = vadd.f32 %v1767_v29, %v1766_v28 }
 0x45d   : > { %v2029_v13 = vmul.f32 %v2027_v45, %v2027_v45 }
 0x45e   : > { %v1769_v25 = vmax.f32 %v1768_v19, 1e-24 }
 0x45f   : > { %v2031_v7 = vsel %vm1501_vm3, %v2029_v13, 0.0 }
 0x460   : > { %3662 = vrsqrt.f32 %v1769_v25  ;;  %v2032_v10 = vadd.f32 %v2031_v7, %v2030_v21  ;;  %vm1776_vm6 = vweird.f32 %v1769_v25 }
 0x462   : > { %v2033_v42 = vrot.slane %v2032_v10, 4 }
 0x464   : > { %v2034_v41 = vadd.f32 %v2033_v42, %v2032_v10 }
 0x466   : > { %v3663_v14 = vpop.eup %3662  ;;  %v2035_v27 = vrot.slane %v2034_v41, 2 }
 0x467   : > { %v1771_v6 = vmul.f32 %v3663_v14, %v1769_v25  ;;  %vm1777_vm5 = vweird.f32 %v3663_v14  ;;  %v4578_v25 = vpop.f32.mrf.mxu3 }
 0x468   : > { %v2036_v63 = vadd.f32 %v2035_v27, %v2034_v41  ;;  %vm1778_vm7 = vmor %vm1776_vm6, %vm1777_vm5  ;;  %v4585_v41 = vmul.f32 0.015625, %v1583_v32 }
 0x469   : > { %v1772_v2 = vmul.f32 %v3663_v14, %v1771_v6 }
 0x46a   : > { %v2037_v58 = vrot.slane %v2036_v63, 1 }
 0x46b   : > { %v1773_v60 = vmul.f32 0.5, %v1772_v2 }
 0x46c   : > { %v2269_v39 = vpop.permute.xlu1 %2268  ;;  %v2038_v34 = vadd.f32 %v2037_v58, %v2036_v63  ;;  %v4589_v63 = vmul.f32 0.015625, %v1581_v48 }
 0x46d   : > { %v2271_v3 = vsel %vm1403_vm4, %v2269_v39, 0  ;;  %v1774_v35 = vsub.f32 1.5, %v1773_v60 }
 0x46e   : > { %2280 = vmatpush.bf16.xpose.msrb.mxu3 %v2271_v3  ;;  %v2039_v30 = vmax.f32 %v2038_v34, 1e-24  ;;  %v1589_v3 = vmul.f32 %v4585_v41, %v4585_v41 }
 0x46f   : > { %v1775_v43 = vmul.f32 %v3663_v14, %v1774_v35  ;;  %v1588_v35 = vmul.f32 %v4589_v63, %v4589_v63 }
 0x470   : > { %3664 = vrsqrt.f32 %v2039_v30  ;;  %vm2046_vm9 = vweird.f32 %v2039_v30 }
 0x471   : > { %v1779_v49 = vsel %vm1778_vm7, %v3663_v14, %v1775_v43 }
 0x472   : > { %v4544_v15 = vmul.f32 %v1779_v49, %v1756_v52  ;;  %v4546_v16 = vmul.f32 %v1779_v49, %v1757_v40  ;;  %v1590_v49 = vsel %vm1501_vm3, %v1588_v35, 0.0 }
 0x474   : > { %v1832_v20 = vpop.permute.xlu1 %1831 }
 0x475   : > { %v1834_v22 = vsel %vm1403_vm4, %v1832_v20, 0  ;;  %3328 = vmatmul.msk.bf16.vlgmr.msrb.gmra.mxu3 %vm1403_vm4, %v2219_v38  ;;  %v1591_v38 = vsel %vm1501_vm3, %v1589_v3, 0.0 }
 0x476   : > { %1843 = vmatpush.bf16.xpose.msra.mxu2 %v1834_v22  ;;  %v3665_v26 = vpop.eup %3664 }
 0x477   : > { %v2041_v9 = vmul.f32 %v3665_v26, %v2039_v30  ;;  %vm2047_vm8 = vweird.f32 %v3665_v26 }
 0x478   : > { %vm2048_vm10 = vmor %vm2046_vm9, %vm2047_vm8 }
 0x479   : > { %v2042_v56 = vmul.f32 %v3665_v26, %v2041_v9 }
 0x47b   : > { %v2043_v50 = vmul.f32 0.5, %v2042_v56 }
 0x47c   : > { %v2316_v1 = vpop.permute.xlu0 %2315 }
 0x47d   : > { %v2318_v5 = vsel %vm1403_vm4, %v2316_v1, 0  ;;  %3323 = vmatmul.msk.bf16.vlgmr.msra.gmra.mxu2 %vm1403_vm4, %v4503_v55  ;;  %v2044_v24 = vsub.f32 1.5, %v2043_v50  ;;  %v1537_v55 = vpop.f32.mrf.mxu1 }
 0x47e   : > { %2233 = vmatpush.bf16.xpose.msrb.mxu2 %v2224_v47  ;;  %2327 = vmatpush.bf16.xpose.msra.mxu0 %v2318_v5  ;;  %v4567_v28 = vmul.f32 0.015625, %v1537_v55  ;;  %v1592_v47 = vadd.f32 %v1591_v38, %v1590_v49 }
 0x47f   : > { %v2045_v8 = vmul.f32 %v3665_v26, %v2044_v24 }
 0x480   : > { %v1544_v13 = vmul.f32 %v4567_v28, %v4567_v28 }
 0x481   : > { %v2049_v62 = vsel %vm2048_vm10, %v3665_v26, %v2045_v8  ;;  %v1593_v8 = vrot.slane %v1592_v47, 4 }
 0x482   : > { %v2050_v17 = vmul.f32 %v2049_v62, %v2026_v0  ;;  %v2051_v57 = vmul.f32 %v2049_v62, %v2027_v45  ;;  %v1546_v14 = vsel %vm1501_vm3, %v1544_v13, 0.0 }
 0x484   : > { %v3596_v59 = vpack.i.bf16 %v2051_v57, %v2050_v17  ;;  %v2216_v36 = vpop.permute.xlu0 %2215 }
 0x485   : > { %3329 = vmatmul.msk.bf16.vlgmr.msra.gmra.mxu0 %vm1403_vm4, %v2269_v39  ;;  %v1539_v54 = vpop.f32.mrf.mxu1 }
 0x486   : > { %3597 = vrot.lane.b32.xlu0 %v3596_v59, %s3771_s29  ;;  %v4564_v33 = vmul.f32 0.015625, %v1539_v54 }
 0x488   : > { %v1545_v44 = vmul.f32 %v4564_v33, %v4564_v33 }
 0x48a   : > { %v1547_v7 = vsel %vm1501_vm3, %v1545_v44, 0.0 }
 0x48b   : > { %v1548_v6 = vadd.f32 %v1547_v7, %v1546_v14 }
 0x48d   : > { %3327 = vmatmul.msk.bf16.vlgmr.msrb.gmra.mxu2 %vm1403_vm4, %v2216_v36  ;;  %v1798_v52 = vpop.f32.mrf.mxu1  ;;  %v1549_v34 = vrot.slane %v1548_v6, 4 }
 0x48e   : > { %v4574_v45 = vmul.f32 0.015625, %v1798_v52 }
 0x48f   : > { %v1550_v20 = vadd.f32 %v1549_v34, %v1548_v6 }
 0x490   : > { %v1805_v10 = vmul.f32 %v4574_v45, %v4574_v45 }
 0x491   : > { %v1551_v5 = vrot.slane %v1550_v20, 2 }
 0x492   : > { %v1807_v39 = vsel %vm1501_vm3, %v1805_v10, 0.0 }
 0x493   : > { %v1552_v36 = vadd.f32 %v1551_v5, %v1550_v20 }
 0x495   : > { %v1800_v4 = vpop.f32.mrf.mxu1 }
 0x496   : > { %v4569_v29 = vmul.f32 0.015625, %v1800_v4  ;;  %v1594_v4 = vadd.f32 %v1593_v8, %v1592_v47 }
 0x498   : > { %v1806_v21 = vmul.f32 %v4569_v29, %v4569_v29 }
 0x49a   : > { %v1808_v27 = vsel %vm1501_vm3, %v1806_v21, 0.0 }
 0x49b   : > { %v1809_v58 = vadd.f32 %v1808_v27, %v1807_v39 }
 0x49d   : > { %v2065_v40 = vpop.f32.mrf.mxu1  ;;  %v1810_v43 = vrot.slane %v1809_v58, 4 }
 0x49e   : > { %v4556_v31 = vmul.f32 0.015625, %v2065_v40 }
 0x49f   : > { %v1811_v9 = vadd.f32 %v1810_v43, %v1809_v58 }
 0x4a0   : > { %v2072_v53 = vmul.f32 %v4556_v31, %v4556_v31 }
 0x4a1   : > { %v1812_v57 = vrot.slane %v1811_v9, 2 }
 0x4a2   : > { %v2074_v11 = vsel %vm1501_vm3, %v2072_v53, 0.0 }
 0x4a3   : > { %v1813_v32 = vadd.f32 %v1812_v57, %v1811_v9 }
 0x4a5   : > { %v2067_v37 = vpop.f32.mrf.mxu1  ;;  %v1814_v10 = vrot.slane %v1813_v32, 1 }
 0x4a6   : > { %v4554_v61 = vmul.f32 0.015625, %v2067_v37 }
 0x4a8   : > { %v2073_v51 = vmul.f32 %v4554_v61, %v4554_v61 }
 0x4aa   : > { %v2075_v0 = vsel %vm1501_vm3, %v2073_v51, 0.0 }
 0x4ab   : > { %v2076_v19 = vadd.f32 %v2075_v0, %v2074_v11  ;;  %v1553_v0 = vrot.slane %v1552_v36, 1 }
 0x4ad   : > { %v2077_v42 = vrot.slane %v2076_v19, 4  ;;  %v1554_v39 = vadd.f32 %v1553_v0, %v1552_v36 }
 0x4af   : > { %v2078_v2 = vadd.f32 %v2077_v42, %v2076_v19  ;;  %v1595_v19 = vrot.slane %v1594_v4, 2 }
 0x4b1   : > { %v2079_v30 = vrot.slane %v2078_v2, 2  ;;  %v1596_v35 = vadd.f32 %v1595_v19, %v1594_v4 }
 0x4b3   : > { %v2080_v26 = vadd.f32 %v2079_v30, %v2078_v2  ;;  %v1815_v30 = vadd.f32 %v1814_v10, %v1813_v32  ;;  %v1597_v5 = vrot.slane %v1596_v35, 1 }
 0x4b5   : > { %v2081_v62 = vrot.slane %v2080_v26, 1 }
 0x4b7   : > { %v2082_v48 = vadd.f32 %v2081_v62, %v2080_v26  ;;  %v4631_v26 = vmax.f32 %v1554_v39, 1e-24 }
 0x4b9   : > { %v4616_v13 = vmax.f32 %v2082_v48, 1e-24  ;;  %vm1562_vm10 = vweird.f32 %v4631_v26 }
 0x4bb   : > { %3666 = vrsqrt.f32 %v4616_v13  ;;  %vm2090_vm15 = vweird.f32 %v4616_v13 }
 0x4bc   : > { %3668 = vrsqrt.f32 %v4631_v26 }
 0x4c1   : > { %v3667_v8 = vpop.eup %3666 }
 0x4c2   : > { %vm2091_vm13 = vweird.f32 %v3667_v8 }
 0x4c3   : > { %vm2092_vm1 = vmor %vm2090_vm15, %vm2091_vm13 }
 0x4f8   : > { %v2282_v60 = vpop.f32.mrf.mxu3 }
 0x4f9   : > { %v4598_v22 = vmul.f32 0.015625, %v2282_v60 }
 0x4fb   : > { %v2289_v50 = vmul.f32 %v4598_v22, %v4598_v22 }
 0x4fd   : > { %v2291_v55 = vsel %vm1501_vm3, %v2289_v50, 0.0  ;;  %v4633_v50 = vmax.f32 %v1815_v30, 1e-24 }
 0x500   : > { %v1845_v1 = vpop.f32.mrf.mxu2  ;;  %v2284_v56 = vpop.f32.mrf.mxu3 }
 0x501   : > { %v4602_v24 = vmul.f32 0.015625, %v2284_v56  ;;  %v4607_v54 = vmul.f32 0.015625, %v1845_v1 }
 0x502   : > { %v2329_v17 = vpop.f32.mrf.mxu0 }
 0x503   : > { %v2290_v59 = vmul.f32 %v4602_v24, %v4602_v24  ;;  %v4610_v37 = vmul.f32 0.015625, %v2329_v17  ;;  %v1852_v11 = vmul.f32 %v4607_v54, %v4607_v54 }
 0x505   : > { %v2292_v52 = vsel %vm1501_vm3, %v2290_v59, 0.0  ;;  %v2336_v42 = vmul.f32 %v4610_v37, %v4610_v37  ;;  %v1854_v2 = vsel %vm1501_vm3, %v1852_v11, 0.0 }
 0x506   : > { %v2293_v40 = vadd.f32 %v2292_v52, %v2291_v55  ;;  %v1598_v55 = vadd.f32 %v1597_v5, %v1596_v35  ;;  %v2085_v52 = vmul.f32 %v3667_v8, %v4616_v13 }
 0x507   : > { %v2338_v38 = vsel %vm1501_vm3, %v2336_v42, 0.0 }
 0x508   : > { %v2294_v51 = vrot.slane %v2293_v40, 4  ;;  %v1847_v53 = vpop.f32.mrf.mxu2  ;;  %v2086_v0 = vmul.f32 %v3667_v8, %v2085_v52 }
 0x509   : > { %v4614_v44 = vmul.f32 0.015625, %v1847_v53  ;;  %v4640_v53 = vmax.f32 %v1598_v55, 1e-24 }
 0x50a   : > { %v2295_v21 = vadd.f32 %v2294_v51, %v2293_v40  ;;  %v2331_v7 = vpop.f32.mrf.mxu0  ;;  %v4638_v51 = vpop.eup %3668 }
 0x50b   : > { %v1853_v14 = vmul.f32 %v4614_v44, %v4614_v44  ;;  %v4622_v27 = vmul.f32 0.015625, %v2331_v7  ;;  %v1557_v42 = vmul.f32 %v4638_v51, %v4631_v26  ;;  %vm1563_vm7 = vweird.f32 %v4638_v51 }
 0x50c   : > { %v2296_v6 = vrot.slane %v2295_v21, 2  ;;  %vm1564_vm13 = vmor %vm1562_vm10, %vm1563_vm7 }
 0x50d   : > { %v1855_v3 = vsel %vm1501_vm3, %v1853_v14, 0.0  ;;  %v2337_v58 = vmul.f32 %v4622_v27, %v4622_v27 }
 0x50e   : > { %v2297_v60 = vadd.f32 %v2296_v6, %v2295_v21  ;;  %v1856_v34 = vadd.f32 %v1855_v3, %v1854_v2  ;;  %v2087_v6 = vmul.f32 0.5, %v2086_v0 }
 0x50f   : > { %v2339_v43 = vsel %vm1501_vm3, %v2337_v58, 0.0  ;;  %v1558_v58 = vmul.f32 %v4638_v51, %v1557_v42 }
 0x510   : > { %v2298_v20 = vrot.slane %v2297_v60, 1  ;;  %v1857_v49 = vrot.slane %v1856_v34, 4  ;;  %v2340_v47 = vadd.f32 %v2339_v43, %v2338_v38 }
 0x512   : > { %v2299_v9 = vadd.f32 %v2298_v20, %v2297_v60  ;;  %v1858_v1 = vadd.f32 %v1857_v49, %v1856_v34  ;;  %v2341_v56 = vrot.slane %v2340_v47, 4  ;;  %v2088_v60 = vsub.f32 1.5, %v2087_v6 }
 0x514   : > { %v2300_v62 = vmax.f32 %v2299_v9, 1e-24  ;;  %v1859_v17 = vrot.slane %v1858_v1, 2  ;;  %v2342_v57 = vadd.f32 %v2341_v56, %v2340_v47  ;;  %v1559_v47 = vmul.f32 0.5, %v1558_v58 }
 0x515   : > { %v2089_v9 = vmul.f32 %v3667_v8, %v2088_v60 }
 0x516   : > { %3670 = vrsqrt.f32 %v2300_v62  ;;  %v1860_v59 = vadd.f32 %v1859_v17, %v1858_v1  ;;  %v2343_v36 = vrot.slane %v2342_v57, 2  ;;  %vm2307_vm12 = vweird.f32 %v2300_v62 }
 0x517   : > { %3672 = vrsqrt.f32 %v4633_v50  ;;  %v1560_v52 = vsub.f32 1.5, %v1559_v47  ;;  %v4696_v47 = vmul.f32 0.015625, %v4558_v18 }
 0x518   : > { %v1861_v4 = vrot.slane %v1860_v59, 1  ;;  %v2344_v48 = vadd.f32 %v2343_v36, %v2342_v57 }
 0x51a   : > { %v1862_v40 = vadd.f32 %v1861_v4, %v1860_v59  ;;  %v2345_v32 = vrot.slane %v2344_v48, 1 }
 0x51c   : > { %v3671_v11 = vpop.eup %3670  ;;  %v1863_v19 = vmax.f32 %v1862_v40, 1e-24  ;;  %v2346_v21 = vadd.f32 %v2345_v32, %v2344_v48  ;;  %v2093_v48 = vsel %vm2092_vm1, %v3667_v8, %v2089_v9  ;;  %v1561_v8 = vmul.f32 %v4638_v51, %v1560_v52 }
 0x51d   : > { %v4642_v7 = vpop.eup %3672  ;;  %v2302_v10 = vmul.f32 %v3671_v11, %v2300_v62  ;;  %vm2308_vm11 = vweird.f32 %v3671_v11  ;;  %v2095_v13 = vmul.f32 %v2093_v48, %v4554_v61  ;;  %v1984_v9 = vmul.f32 %v4696_v47, %v4696_v47 }
 0x51e   : > { %3674 = vrsqrt.f32 %v1863_v19  ;;  %v2347_v14 = vmax.f32 %v2346_v21, 1e-24  ;;  %v1818_v2 = vmul.f32 %v4642_v7, %v4633_v50  ;;  %vm2309_vm14 = vmor %vm2307_vm12, %vm2308_vm11  ;;  %vm1870_vm5 = vweird.f32 %v1863_v19 }
 0x51f   : > { %3676 = vrsqrt.f32 %v4640_v53  ;;  %v2303_v39 = vmul.f32 %v3671_v11, %v2302_v10  ;;  %vm1824_vm12 = vweird.f32 %v4642_v7 }
 0x520   : > { %3678 = vrsqrt.f32 %v2347_v14  ;;  %v1819_v30 = vmul.f32 %v4642_v7, %v1818_v2  ;;  %vm2354_vm9 = vweird.f32 %v2347_v14 }
 0x521   : > { %v2304_v3 = vmul.f32 0.5, %v2303_v39 }
 0x522   : > { %v1820_v57 = vmul.f32 0.5, %v1819_v30  ;;  %v2235_v30 = vpop.f32.mrf.mxu2 }
 0x523   : > { %v2305_v34 = vsub.f32 1.5, %v2304_v3 }
 0x524   : > { %v3675_v35 = vpop.eup %3674 }
 0x525   : > { %v4651_v38 = vpop.eup %3676  ;;  %v2306_v43 = vmul.f32 %v3671_v11, %v2305_v34  ;;  %v1865_v20 = vmul.f32 %v3675_v35, %v1863_v19  ;;  %vm1871_vm2 = vweird.f32 %v3675_v35 }
 0x526   : > { %v3679_v49 = vpop.eup %3678  ;;  %v1601_v17 = vmul.f32 %v4651_v38, %v4640_v53  ;;  %vm1872_vm8 = vmor %vm1870_vm5, %vm1871_vm2  ;;  %vm1607_vm1 = vweird.f32 %v4651_v38  ;;  %vm1606_vm2 = vweird.f32 %v4640_v53  ;;  %v4691_v53 = vmul.f32 0.015625, %v4578_v25 }
 0x527   : > { %v2310_v1 = vsel %vm2309_vm14, %v3671_v11, %v2306_v43  ;;  %v1866_v56 = vmul.f32 %v3675_v35, %v1865_v20  ;;  %v2349_v5 = vmul.f32 %v3679_v49, %v2347_v14  ;;  %v1821_v11 = vsub.f32 1.5, %v1820_v57  ;;  %vm1608_vm5 = vmor %vm1606_vm2, %vm1607_vm1 }
 0x528   : > { %v2311_v59 = vmul.f32 %v2310_v1, %v4598_v22  ;;  %v2312_v36 = vmul.f32 %v2310_v1, %v4602_v24  ;;  %v1602_v0 = vmul.f32 %v4651_v38, %v1601_v17  ;;  %vm2355_vm6 = vweird.f32 %v3679_v49 }
 0x529   : > { %v1867_v62 = vmul.f32 0.5, %v1866_v56  ;;  %v2350_v55 = vmul.f32 %v3679_v49, %v2349_v5  ;;  %v2094_v24 = vmul.f32 %v2093_v48, %v4556_v31  ;;  %vm2356_vm11 = vmor %vm2354_vm9, %vm2355_vm6  ;;  %v1822_v2 = vmul.f32 %v4642_v7, %v1821_v11 }
 0x52a   : > { %v3601_v4 = vpack.i.bf16 %v2312_v36, %v2311_v59  ;;  %v1603_v39 = vmul.f32 0.5, %v1602_v0  ;;  %vm1823_vm14 = vweird.f32 %v4633_v50  ;;  %v2237_v43 = vpop.f32.mrf.mxu2  ;;  %v1986_v5 = vsel %vm1501_vm3, %v1984_v9, 0.0 }
 0x52b   : > { %v1868_v40 = vsub.f32 1.5, %v1867_v62  ;;  %v2351_v32 = vmul.f32 0.5, %v2350_v55  ;;  %v3606_v26 = vpack.i.bf16 %v2095_v13, %v2094_v24  ;;  %vm1825_vm15 = vmor %vm1823_vm14, %vm1824_vm12  ;;  %v4688_v20 = vmul.f32 0.015625, %v2237_v43 }
 0x52c   : > { %3602 = vrot.lane.b32.xlu2 %v3601_v4, %s3771_s29  ;;  %v1604_v58 = vsub.f32 1.5, %v1603_v39  ;;  %v1826_v60 = vsel %vm1825_vm15, %v4642_v7, %v1822_v2  ;;  %v4711_v57 = vmul.f32 0.015625, %v4534_v46  ;;  %v4714_v36 = vmul.f32 0.015625, %v4532_v23 }
 0x52d   : > { %v1869_v21 = vmul.f32 %v3675_v35, %v1868_v40  ;;  %v2352_v22 = vsub.f32 1.5, %v2351_v32 }
 0x52e   : > { %v1500_v55 = vmul.f32 %v4711_v57, %v4711_v57  ;;  %v1499_v4 = vmul.f32 %v4714_v36, %v4714_v36 }
 0x52f   : > { %v1873_v10 = vsel %vm1872_vm8, %v3675_v35, %v1869_v21  ;;  %v2353_v42 = vmul.f32 %v3679_v49, %v2352_v22  ;;  %v1828_v35 = vmul.f32 %v1826_v60, %v4569_v29 }
 0x530   : > { %v1874_v6 = vmul.f32 %v1873_v10, %v4607_v54  ;;  %v1875_v19 = vmul.f32 %v1873_v10, %v4614_v44  ;;  %v1565_v54 = vsel %vm1564_vm13, %v4638_v51, %v1561_v8  ;;  %v1605_v51 = vmul.f32 %v4651_v38, %v1604_v58 }
 0x531   : > { %v2357_v31 = vsel %vm2356_vm11, %v3679_v49, %v2353_v42  ;;  %v1566_v34 = vmul.f32 %v1565_v54, %v4567_v28  ;;  %v4693_v49 = vmul.f32 0.015625, %v2235_v30  ;;  %v1503_v40 = vsel %vm1501_vm3, %v1500_v55, 0.0 }
 0x532   : > { %v2358_v61 = vmul.f32 %v2357_v31, %v4610_v37  ;;  %v2359_v14 = vmul.f32 %v2357_v31, %v4622_v27  ;;  %v3621_v3 = vpack.i.bf16 %v1875_v19, %v1874_v6  ;;  %v1567_v37 = vmul.f32 %v1565_v54, %v4564_v33 }
 0x533   : > { %v1827_v27 = vmul.f32 %v1826_v60, %v4574_v45  ;;  %v1609_v28 = vsel %vm1608_vm5, %v4651_v38, %v1605_v51  ;;  %v2243_v38 = vmul.f32 %v4688_v20, %v4688_v20  ;;  %v1502_v0 = vsel %vm1501_vm3, %v1499_v4, 0.0 }
 0x534   : > { %3622 = vrot.lane.b32.xlu0 %v3621_v3, %s3772_s26  ;;  %3607 = vrot.lane.b32.xlu2 %v3606_v26, %s3772_s26  ;;  %v3611_v44 = vpack.i.bf16 %v2359_v14, %v2358_v61  ;;  %v3626_v50 = vpack.i.bf16 %v1567_v37, %v1566_v34  ;;  %v1610_v33 = vmul.f32 %v1609_v28, %v4589_v63 }
 0x535   : > { %v3616_v7 = vpack.i.bf16 %v1828_v35, %v1827_v27  ;;  %v1611_v45 = vmul.f32 %v1609_v28, %v4585_v41  ;;  %v1985_v41 = vmul.f32 %v4691_v53, %v4691_v53  ;;  %v2242_v63 = vmul.f32 %v4693_v49, %v4693_v49 }
 0x536   : > { %3612 = vrot.lane.b32.xlu1 %v3611_v44, %s3772_s26  ;;  %v2245_v25 = vsel %vm1501_vm3, %v2243_v38, 0.0  ;;  %v1504_v46 = vadd.f32 %v1503_v40, %v1502_v0 }
 0x537   : > { %v3631_v29 = vpack.i.bf16 %v1611_v45, %v1610_v33  ;;  %v1987_v1 = vsel %vm1501_vm3, %v1985_v41, 0.0  ;;  %v2244_v56 = vsel %vm1501_vm3, %v2242_v63, 0.0 }
 0x538   : > { %v2246_v18 = vadd.f32 %v2245_v25, %v2244_v56  ;;  %v1988_v17 = vadd.f32 %v1987_v1, %v1986_v5  ;;  %v1505_v22 = vrot.slane %v1504_v46, 4 }
 0x53a   : > { %v2247_v59 = vrot.slane %v2246_v18, 4  ;;  %v1989_v62 = vrot.slane %v1988_v17, 4  ;;  %v1506_v13 = vadd.f32 %v1505_v22, %v1504_v46 }
 0x53c   : > { %3627 = vrot.lane.b32.xlu2 %v3626_v50, %s3771_s29  ;;  %v2248_v52 = vadd.f32 %v2247_v59, %v2246_v18  ;;  %v1990_v48 = vadd.f32 %v1989_v62, %v1988_v17  ;;  %v1507_v42 = vrot.slane %v1506_v13, 2 }
 0x53e   : > { %3617 = vrot.lane.b32.xlu1 %v3616_v7, %s3771_s29  ;;  %v2249_v32 = vrot.slane %v2248_v52, 2  ;;  %v1991_v11 = vrot.slane %v1990_v48, 2  ;;  %v1508_v39 = vadd.f32 %v1507_v42, %v1506_v13  ;;  %s3116_s29 = scalar_lea.sflag [#allocation4], %s3922_s30 }
 0x540   : > { %v2250_v21 = vadd.f32 %v2249_v32, %v2248_v52  ;;  %v1992_v23 = vadd.f32 %v1991_v11, %v1990_v48  ;;  %v1509_v31 = vrot.slane %v1508_v39, 1 }
 0x542   : > { %v2251_v24 = vrot.slane %v2250_v21, 1  ;;  %v1993_v8 = vrot.slane %v1992_v23, 1  ;;  %v1510_v14 = vadd.f32 %v1509_v31, %v1508_v39 }
 0x544   : > { %v2252_v10 = vadd.f32 %v2251_v24, %v2250_v21  ;;  %v1994_v6 = vadd.f32 %v1993_v8, %v1992_v23  ;;  %v4722_v54 = vmax.f32 %v1510_v14, 1e-24 }
 0x546   : > { %3632 = vrot.lane.b32.xlu1 %v3631_v29, %s3772_s26  ;;  %v2253_v19 = vmax.f32 %v2252_v10, 1e-24  ;;  %v1995_v2 = vmax.f32 %v1994_v6, 1e-24  ;;  %v3598_v29 = vpop.permute.xlu0 %3597  ;;  %vm1518_vm13 = vweird.f32 %v4722_v54  ;;  %s3716_s26 = sshra.s32 %s3131_s20, 4  ;;  %s3717_s26 = int_to_ptr.hbm [resolvable:$true] %s3716_s26 }
 0x547   : > { %v3600_v25 = vunpack.i.h.bf16 %v3598_v29  ;;  %v3599_v1 = vunpack.i.l.bf16 %v3598_v29  ;;  %v3499_v29 = vld [vmem:[%s4977_s11 + $0x10] sm:$0xff]  ;;  %s3718_s18 = scalar_lea.hbm %s3717_s26, 4  ;;  %p3723_p2 = scmp.lt.s32.totalorder %s3717_s26, %s4982_s16 }
 0x548   : > { %3680 = vrsqrt.f32 %v2253_v19  ;;  %vm2260_vm8 = vweird.f32 %v2253_v19  ;;  %vm2002_vm10 = vweird.f32 %v1995_v2  ;;  %2598 = vmatpush.bf16.msra.mxu3 %v3499_v29  ;;  %p3719_p13 = scmp.ne.s32.totalorder %s3717_s26, %s3718_s18  ;;  %p3724_p3 = scmp.lt.s32.totalorder %s3722_s27, %s3718_s18 }
 0x549   : > { %3682 = vrsqrt.f32 %v1995_v2 }
 0x54a   : > { %3684 = vrsqrt.f32 %v4722_v54  ;;  %p3720_p0 = pnand %p3719_p13, %p3897_p6  ;;  %p3725_p4 = por %p3724_p3, %p3723_p2 }
 0x54c   : > { %p3721_p1 = pneg %p3720_p0 }
 0x54e   : > { %v3681_v61 = vpop.eup %3680  ;;  %p3726_p5 = pnand %p3725_p4, %p3721_p1 }
 0x54f   : > { %v3683_v3 = vpop.eup %3682  ;;  %v2255_v26 = vmul.f32 %v3681_v61, %v2253_v19  ;;  %vm2261_vm6 = vweird.f32 %v3681_v61 }
 0x550   : > { %v1997_v44 = vmul.f32 %v3683_v3, %v1995_v2  ;;  %v3685_v27 = vpop.eup %3684  ;;  %vm2003_vm7 = vweird.f32 %v3683_v3  ;;  %vm2262_vm9 = vmor %vm2260_vm8, %vm2261_vm6 }
 0x551   : > { %v2256_v58 = vmul.f32 %v3681_v61, %v2255_v26  ;;  %v1513_v50 = vmul.f32 %v3685_v27, %v4722_v54  ;;  %vm2004_vm11 = vmor %vm2002_vm10, %vm2003_vm7  ;;  %vm1519_vm12 = vweird.f32 %v3685_v27 }
 0x552   : > { %v1998_v60 = vmul.f32 %v3683_v3, %v1997_v44  ;;  %vm1520_vm14 = vmor %vm1518_vm13, %vm1519_vm12 }
 0x553   : > { %v2257_v34 = vmul.f32 0.5, %v2256_v58  ;;  %v1514_v33 = vmul.f32 %v3685_v27, %v1513_v50  ;;  %v3495_v50 = vld [vmem:[%s4976_s10 + $0x18] sm:$0xff] }
 0x554   : > { %v1999_v37 = vmul.f32 0.5, %v1998_v60 }
 0x555   : > { %v2258_v51 = vsub.f32 1.5, %v2257_v34  ;;  %v1515_v63 = vmul.f32 0.5, %v1514_v33 }
 0x556   : > { %v2000_v7 = vsub.f32 1.5, %v1999_v37 }
 0x557   : > { %v2259_v28 = vmul.f32 %v3681_v61, %v2258_v51  ;;  %v1516_v11 = vsub.f32 1.5, %v1515_v63  ;;  %v3492_v51 = vld [vmem:[%s4976_s10] sm:$0xff] }
 0x558   : > { %v2001_v45 = vmul.f32 %v3683_v3, %v2000_v7  ;;  %v3496_v7 = vld [vmem:[%s4976_s10 + $0x20] sm:$0xff] }
 0x559   : > { %v2263_v30 = vsel %vm2262_vm9, %v3681_v61, %v2259_v28  ;;  %v1517_v24 = vmul.f32 %v3685_v27, %v1516_v11  ;;  %v2394_v28 = vld [vmem:[%s4976_s10 + $0x28] sm:$0x3] }
 0x55a   : > { %v2005_v9 = vsel %vm2004_vm11, %v3683_v3, %v2001_v45  ;;  %v2264_v56 = vmul.f32 %v2263_v30, %v4693_v49  ;;  %v2265_v18 = vmul.f32 %v2263_v30, %v4688_v20  ;;  %v2416_v33 = vunpack.c.l.b16 %v2394_v28  ;;  %v3498_v30 = vld [vmem:[%s4977_s11 + $0x8] sm:$0xff] }
 0x55b   : > { %v2006_v52 = vmul.f32 %v2005_v9, %v4696_v47  ;;  %v2007_v4 = vmul.f32 %v2005_v9, %v4691_v53  ;;  %v1521_v61 = vsel %vm1520_vm14, %v3685_v27, %v1517_v24  ;;  %2599 = vmatpush.bf16.msra.mxu3 %v3498_v30 }
 0x55c   : > { %v1522_v44 = vmul.f32 %v1521_v61, %v4714_v36  ;;  %v1523_v54 = vmul.f32 %v1521_v61, %v4711_v57  ;;  %v3493_v57 = vld [vmem:[%s4976_s10 + $0x8] sm:$0xff]  ;;  %v3494_v36 = vld [vmem:[%s4976_s10 + $0x10] sm:$0xff]  ;;  %v2422_v45 = vpack.c.b16 %v2416_v33, %v2416_v33 }
 0x55d   : > { %v2113_v49 = vsel %vm1501_vm3, %v2007_v4, %v3600_v25  ;;  %v2112_v20 = vsel %vm1501_vm3, %v2006_v52, %v3599_v1 }
 0x586   : > { %v3603_v35 = vpop.permute.xlu2 %3602 }
 0x587   : > { %v3605_v43 = vunpack.i.h.bf16 %v3603_v35  ;;  %v3604_v38 = vunpack.i.l.bf16 %v3603_v35 }
 0x589   : > { %v2376_v48 = vsel %vm1501_vm3, %v2264_v56, %v3604_v38  ;;  %v2377_v40 = vsel %vm1501_vm3, %v2265_v18, %v3605_v43  ;;  %v3497_v43 = vld [vmem:[%s4977_s11] sm:$0xff]  ;;  %v3502_v56 = vld [vmem:[%s4977_s11 + $0x28] sm:$0xff] }
 0x58a   : > { %2600 = vmatpush.bf16.msra.mxu3 %v3497_v43  ;;  %2547 = vmatpush.bf16.msra.mxu2 %v3502_v56 }
 0x58e   : > { %v3608_v41 = vpop.permute.xlu2 %3607 }
 0x58f   : > { %v3610_v17 = vunpack.i.h.bf16 %v3608_v41  ;;  %v3609_v59 = vunpack.i.l.bf16 %v3608_v41 }
 0x591   : > { %v2114_v21 = vsel %vm913_vm0, %v2112_v20, %v3609_v59  ;;  %v2115_v47 = vsel %vm913_vm0, %v2113_v49, %v3610_v17  ;;  %v3501_v17 = vld [vmem:[%s4977_s11 + $0x20] sm:$0xff]  ;;  %v3504_v49 = vld [vmem:[%s4977_s11 + $0x38] sm:$0xff]  ;;  %v3503_v20 = vld [vmem:[%s4977_s11 + $0x30] sm:$0xff] }
 0x592   : > { %v2382_v23 = vpack.c.bf16 %v2115_v47, %v2114_v21  ;;  %2548 = vmatpush.bf16.msra.mxu2 %v3501_v17 }
 0x596   : > { %v3628_v6 = vpop.permute.xlu2 %3627 }
 0x597   : > { %v3630_v3 = vunpack.i.h.bf16 %v3628_v6  ;;  %v3629_v26 = vunpack.i.l.bf16 %v3628_v6 }
 0x599   : > { %v1629_v34 = vsel %vm1501_vm3, %v1523_v54, %v3630_v3 }
 0x5a6   : > { %v3623_v53 = vpop.permute.xlu0 %3622 }
 0x5a7   : > { %v3625_v10 = vunpack.i.h.bf16 %v3623_v53  ;;  %v3624_v42 = vunpack.i.l.bf16 %v3623_v53 }
 0x5a8   : > { %v3613_v5 = vpop.permute.xlu1 %3612 }
 0x5a9   : > { %v3615_v62 = vunpack.i.h.bf16 %v3613_v5  ;;  %v3614_v55 = vunpack.i.l.bf16 %v3613_v5 }
 0x5ab   : > { %v2378_v32 = vsel %vm913_vm0, %v2376_v48, %v3614_v55  ;;  %v2379_v0 = vsel %vm913_vm0, %v2377_v40, %v3615_v62  ;;  %v3500_v62 = vld [vmem:[%s4977_s11 + $0x18] sm:$0xff]  ;;  %v3505_v40 = vld [vmem:[%s4977_s11 + $0x40] sm:$0xff] }
 0x5ac   : > { %v2383_v46 = vpack.c.bf16 %v2379_v0, %v2378_v32  ;;  %2549 = vmatpush.bf16.msra.mxu2 %v3500_v62  ;;  %2658 = vmatpush.bf16.msrb.mxu0 %v3505_v40 }
 0x5ae   : > { %2445 = vmatpush.bf16.msra.mxu1 %v2383_v46 }
 0x5b0   : > { %v3618_v22 = vpop.permute.xlu1 %3617  ;;  %2659 = vmatpush.bf16.msrb.mxu0 %v3504_v49 }
 0x5b1   : > { %v3620_v13 = vunpack.i.h.bf16 %v3618_v22  ;;  %v3619_v8 = vunpack.i.l.bf16 %v3618_v22 }
 0x5b2   : > { %2446 = vmatpush.bf16.msra.mxu1 %v2382_v23 }
 0x5b3   : > { %v1892_v19 = vsel %vm1501_vm3, %v4544_v15, %v3619_v8  ;;  %v1893_v39 = vsel %vm1501_vm3, %v4546_v16, %v3620_v13  ;;  %v1628_v16 = vsel %vm1501_vm3, %v1522_v44, %v3629_v26 }
 0x5b4   : > { %v1894_v2 = vsel %vm913_vm0, %v1892_v19, %v3624_v42  ;;  %v1895_v31 = vsel %vm913_vm0, %v1893_v39, %v3625_v10  ;;  %2660 = vmatpush.bf16.msrb.mxu0 %v3503_v20 }
 0x5b5   : > { %v2381_v14 = vpack.c.bf16 %v1895_v31, %v1894_v2 }
 0x5b7   : > { %2447 = vmatpush.bf16.msra.mxu1 %v2381_v14 }
 0x5b8   : > { %v3633_v58 = vpop.permute.xlu1 %3632 }
 0x5b9   : > { %v3635_v60 = vunpack.i.h.bf16 %v3633_v58  ;;  %v3634_v15 = vunpack.i.l.bf16 %v3633_v58 }
 0x5bb   : > { %v1630_v37 = vsel %vm913_vm0, %v1628_v16, %v3634_v15  ;;  %v1631_v35 = vsel %vm913_vm0, %v1629_v34, %v3635_v60  ;;  %vm2535_vm0 = vcmask 392192  }
 0x5bc   : > { %v2380_v27 = vpack.c.bf16 %v1631_v35, %v1630_v37 }
 0x5be   : > { %2448 = vmatpush.bf16.msra.mxu1 %v2380_v27 }
 0x5c1   : > { %3350 = vmatmul.msk.bf16.vlgmr.msra.gmra.mxu1 %vm1403_vm4, %v3492_v51 }
 0x5d1   : > { %3351 = vmatmul.msk.bf16.gmra.mxu1 %vm1403_vm4, %v3493_v57 }
 0x5e1   : > { %3352 = vmatmul.msk.bf16.gmra.mxu1 %vm1403_vm4, %v3494_v36 }
 0x5f1   : > { %3353 = vmatmul.msk.bf16.gmra.mxu1 %vm1403_vm4, %v3495_v50 }
 0x601   : > { %3354 = vmatmul.msk.bf16.gmra.mxu1 %vm1403_vm4, %v3496_v7 }
 0x611   : > { %3355 = vmatmul.msk.bf16.gmra.mxu1 %vm1403_vm4, %v2422_v45  ;;  %vm2513_vm4 = vcmask 1045504  }
 0x63e   : > { %v2450_v38 = vpop.f32.mrf.mxu1 }
 0x63f   : > { %v2479_v41 = vpack.c.bf16 %v2450_v38, %v2450_v38 }
 0x641   : > { %v2564_v25 = vunpack.c.l.b16 %v2479_v41 }
 0x646   : > { %v2452_v63 = vpop.f32.mrf.mxu1 }
 0x647   : > { %v2480_v9 = vpack.c.bf16 %v2452_v63, %v2452_v63 }
 0x649   : > { %v2565_v1 = vunpack.c.l.b16 %v2480_v9 }
 0x64b   : > { %v2567_v18 = vpack.c.b16 %v2565_v1, %v2564_v25 }
 0x64d   : > { %3388 = vmatmul.msk.bf16.vlgmr.msra.gmra.mxu3 %vm2535_vm0, %v2567_v18 }
 0x64e   : > { %v2455_v5 = vpop.f32.mrf.mxu1 }
 0x64f   : > { %v2481_v59 = vpack.c.bf16 %v2455_v5, %v2455_v5 }
 0x651   : > { %v2566_v4 = vunpack.c.l.b16 %v2481_v59 }
 0x656   : > { %v2457_v55 = vpop.f32.mrf.mxu1 }
 0x657   : > { %v2482_v52 = vpack.c.bf16 %v2457_v55, %v2457_v55 }
 0x659   : > { %v2507_v48 = vunpack.c.l.b16 %v2482_v52 }
 0x65b   : > { %v2568_v32 = vpack.c.b16 %v2507_v48, %v2566_v4 }
 0x65d   : > { %3389 = vmatmul.msk.bf16.gmra.mxu3 %vm2535_vm0, %v2568_v32 }
 0x65e   : > { %v2460_v0 = vpop.f32.mrf.mxu1 }
 0x65f   : > { %v2483_v11 = vpack.c.bf16 %v2460_v0, %v2460_v0 }
 0x661   : > { %v2508_v21 = vunpack.c.l.b16 %v2483_v11 }
 0x663   : > { %v2511_v23 = vpack.c.b16 %v2508_v21, %v2507_v48 }
 0x665   : > { %v2514_v10 = vrot.slane %v2511_v23, 2 }
 0x666   : > { %v2462_v46 = vpop.f32.mrf.mxu1 }
 0x667   : > { %v2484_v47 = vpack.c.bf16 %v2462_v46, %v2462_v46 }
 0x669   : > { %v2509_v24 = vunpack.c.l.b16 %v2484_v47 }
 0x66e   : > { %v2465_v53 = vpop.f32.mrf.mxu1 }
 0x66f   : > { %v2485_v22 = vpack.c.bf16 %v2465_v53, %v2465_v53 }
 0x671   : > { %v2510_v13 = vunpack.c.l.b16 %v2485_v22 }
 0x673   : > { %v2512_v8 = vpack.c.b16 %v2510_v13, %v2509_v24 }
 0x675   : > { %v2515_v42 = vrot.slane %v2512_v8, 2 }
 0x676   : > { %v2467_v6 = vpop.f32.mrf.mxu1 }
 0x677   : > { %v2516_v19 = vsel %vm2513_vm4, %v2514_v10, %v2515_v42  ;;  %v2486_v39 = vpack.c.bf16 %v2467_v6, %v2467_v6 }
 0x678   : > { %3374 = vmatmul.msk.bf16.vlgmr.msra.gmra.mxu2 %vm2535_vm0, %v2516_v19 }
 0x679   : > { %v2623_v61 = vunpack.c.l.b16 %v2486_v39 }
 0x67e   : > { %v2470_v2 = vpop.f32.mrf.mxu1 }
 0x67f   : > { %v2487_v31 = vpack.c.bf16 %v2470_v2, %v2470_v2 }
 0x681   : > { %v2624_v14 = vunpack.c.l.b16 %v2487_v31 }
 0x683   : > { %v2627_v3 = vpack.c.b16 %v2624_v14, %v2623_v61 }
 0x685   : > { %3408 = vmatmul.msk.bf16.vlgmr.msrb.gmra.mxu0 %vm2535_vm0, %v2627_v3 }
 0x686   : > { %v2472_v26 = vpop.f32.mrf.mxu1 }
 0x687   : > { %v2488_v44 = vpack.c.bf16 %v2472_v26, %v2472_v26 }
 0x688   : > { %3375 = vmatmul.msk.bf16.gmra.mxu2 %vm2535_vm0, %v2515_v42 }
 0x689   : > { %v2625_v60 = vunpack.c.l.b16 %v2488_v44 }
 0x68e   : > { %v2475_v54 = vpop.f32.mrf.mxu1 }
 0x68f   : > { %v2489_v58 = vpack.c.bf16 %v2475_v54, %v2475_v54 }
 0x691   : > { %v2626_v15 = vunpack.c.l.b16 %v2489_v58 }
 0x693   : > { %v2628_v34 = vpack.c.b16 %v2626_v15, %v2625_v60 }
 0x695   : > { %3409 = vmatmul.msk.bf16.gmra.mxu0 %vm2535_vm0, %v2628_v34 }
 0x696   : > { %v2477_v16 = vpop.f32.mrf.mxu1 }
 0x6d0   : > { %v2602_v37 = vpop.f32.mrf.mxu3 }
 0x6d8   : > { %v2604_v50 = vpop.f32.mrf.mxu3 }
 0x6e0   : > { %v2607_v41 = vpop.f32.mrf.mxu3 }
 0x6e8   : > { %v2609_v48 = vpop.f32.mrf.mxu3 }
 0x6fb   : > { %v2551_v35 = vpop.f32.mrf.mxu2 }
 0x6fc   : > { %v2603_v27 = vadd.f32 %v2602_v37, %v2551_v35 }
 0x702   : > { %v2662_v51 = vpop.f32.mrf.mxu0 }
 0x703   : > { %v4809_v57 = vadd.f32 %v2662_v51, %v2603_v27  ;;  %v2553_v36 = vpop.f32.mrf.mxu2 }
 0x704   : > { %v2605_v45 = vadd.f32 %v2604_v50, %v2553_v36 }
 0x705   : > { %v4812_v7 = vmul.f32 0.70710677, %v4809_v57 }
 0x707   : > { %v4815_v28 = vand.u32 2147483647, %v4812_v7 }
 0x709   : > { %v2688_v33 = vmul.f32 0.3275911, %v4815_v28 }
 0x70a   : > { %v2664_v29 = vpop.f32.mrf.mxu0 }
 0x70b   : > { %v2692_v30 = vadd.f32 1.0, %v2688_v33  ;;  %v4818_v43 = vadd.f32 %v2664_v29, %v2605_v45  ;;  %v2556_v38 = vpop.f32.mrf.mxu2 }
 0x70c   : > { %v2608_v25 = vadd.f32 %v2607_v41, %v2556_v38 }
 0x70d   : > { %3686 = vrcp.f32 %v2692_v30  ;;  %v4821_v63 = vmul.f32 0.70710677, %v4818_v43  ;;  %v2707_v32 = vand.u32 2147483648, %v2692_v30  ;;  %v2705_v0 = vand.u32 2147483647, %v2692_v30 }
 0x70e   : > { %vm2701_vm15 = vweird.f32 %v2692_v30 }
 0x70f   : > { %v4824_v9 = vand.u32 2147483647, %v4821_v63  ;;  %v2708_v23 = vor.u32 1.1754944e-38, %v2707_v32  ;;  %vm2706_vm2 = vcmp.eq.f32.partialorder %v2705_v0, 8.507059e+37 }
 0x711   : > { %v2689_v1 = vmul.f32 0.3275911, %v4824_v9 }
 0x712   : > { %v2667_v56 = vpop.f32.mrf.mxu0 }
 0x713   : > { %v3687_v18 = vpop.eup %3686  ;;  %v4827_v5 = vadd.f32 %v2667_v56, %v2608_v25  ;;  %v2693_v59 = vadd.f32 1.0, %v2689_v1  ;;  %v2558_v52 = vpop.f32.mrf.mxu2 }
 0x714   : > { %v2697_v17 = vmul.f32 %v3687_v18, %v2692_v30  ;;  %vm2702_vm3 = vweird.f32 %v3687_v18  ;;  %v2610_v20 = vadd.f32 %v2609_v48, %v2558_v52  ;;  %v2792_v48 = vsub.f32 0.0, %v4815_v28 }
 0x715   : > { %v4830_v62 = vmul.f32 0.70710677, %v4827_v5  ;;  %3688 = vrcp.f32 %v2693_v59  ;;  %vm2703_vm1 = vmor %vm2701_vm15, %vm2702_vm3  ;;  %v2720_v42 = vand.u32 2147483647, %v2693_v59  ;;  %v2722_v6 = vand.u32 2147483648, %v2693_v59 }
 0x716   : > { %v2698_v55 = vsub.f32 1.0, %v2697_v17  ;;  %vm2716_vm6 = vweird.f32 %v2693_v59  ;;  %v2793_v17 = vsub.f32 0.0, %v4824_v9 }
 0x717   : > { %v4833_v4 = vand.u32 2147483647, %v4830_v62  ;;  %v2723_v3 = vor.u32 1.1754944e-38, %v2722_v6  ;;  %vm2721_vm8 = vcmp.eq.f32.partialorder %v2720_v42, 8.507059e+37  ;;  %vm2818_vm15 = vcmp.ge.f32.partialorder %v4830_v62, 0.0 }
 0x718   : > { %v2699_v40 = vmul.f32 %v3687_v18, %v2698_v55 }
 0x719   : > { %v2690_v49 = vmul.f32 0.3275911, %v4833_v4  ;;  %v2794_v25 = vsub.f32 0.0, %v4833_v4 }
 0x71a   : > { %v2700_v46 = vadd.f32 %v3687_v18, %v2699_v40  ;;  %v2669_v11 = vpop.f32.mrf.mxu0 }
 0x71b   : > { %v2694_v21 = vadd.f32 1.0, %v2690_v49  ;;  %v4836_v47 = vadd.f32 %v2669_v11, %v2610_v20  ;;  %v3689_v53 = vpop.eup %3688  ;;  %v2798_v40 = vmul.f32 %v2794_v25, %v4833_v4  ;;  %v2797_v11 = vmul.f32 %v2793_v17, %v4824_v9 }
 0x71c   : > { %v2704_v22 = vsel %vm2703_vm1, %v3687_v18, %v2700_v46  ;;  %v2712_v24 = vmul.f32 %v3689_v53, %v2693_v59  ;;  %vm2717_vm5 = vweird.f32 %v3689_v53  ;;  %vm2817_vm1 = vcmp.ge.f32.partialorder %v4821_v63, 0.0 }
 0x71d   : > { %3690 = vrcp.f32 %v2694_v21  ;;  %v4838_v13 = vsel %vm2706_vm2, %v2708_v23, %v2704_v22  ;;  %v4841_v10 = vmul.f32 0.70710677, %v4836_v47  ;;  %vm2718_vm7 = vmor %vm2716_vm6, %vm2717_vm5  ;;  %v2737_v16 = vand.u32 2147483648, %v2694_v21 }
 0x71e   : > { %v2713_v8 = vsub.f32 1.0, %v2712_v24  ;;  %v2756_v19 = vmul.f32 1.0614054, %v4838_v13  ;;  %v2735_v35 = vand.u32 2147483647, %v2694_v21  ;;  %vm2731_vm10 = vweird.f32 %v2694_v21 }
 0x71f   : > { %v4845_v2 = vand.u32 2147483647, %v4841_v10  ;;  %v2738_v33 = vor.u32 1.1754944e-38, %v2737_v16  ;;  %v2804_v23 = vmul.f32 1.442695, %v2798_v40  ;;  %vm2819_vm2 = vcmp.ge.f32.partialorder %v4841_v10, 0.0 }
 0x720   : > { %v2714_v39 = vmul.f32 %v3689_v53, %v2713_v8  ;;  %v2760_v44 = vadd.f32 -1.4531521, %v2756_v19  ;;  %vm2736_vm12 = vcmp.eq.f32.partialorder %v2735_v35, 8.507059e+37  ;;  %v2796_v8 = vmul.f32 %v2792_v48, %v4815_v28 }
 0x721   : > { %v2691_v14 = vmul.f32 0.3275911, %v4845_v2  ;;  %vm2816_vm5 = vcmp.ge.f32.partialorder %v4812_v7, 0.0  ;;  %v2677_v63 = vmul.f32 0.5, %v4818_v43  ;;  %vm2856_vm6 = vcmask 228352   ;;  %v3507_v43 = vld [vmem:[%s4978_s12 + $0x8] sm:$0xff] }
 0x722   : > { %v2715_v61 = vadd.f32 %v3689_v53, %v2714_v39  ;;  %v2764_v27 = vmul.f32 %v2760_v44, %v4838_v13  ;;  %v2795_v39 = vsub.f32 0.0, %v4845_v2 }
 0x723   : > { %v3691_v31 = vpop.eup %3690  ;;  %v2695_v58 = vadd.f32 1.0, %v2691_v14 }
 0x724   : > { %v2727_v26 = vmul.f32 %v3691_v31, %v2694_v21  ;;  %v2719_v54 = vsel %vm2718_vm7, %v3689_v53, %v2715_v61  ;;  %vm2732_vm9 = vweird.f32 %v3691_v31  ;;  %v2768_v30 = vadd.f32 1.4214138, %v2764_v27 }
 0x725   : > { %v4848_v60 = vsel %vm2721_vm8, %v2723_v3, %v2719_v54  ;;  %3692 = vrcp.f32 %v2695_v58  ;;  %vm2733_vm11 = vmor %vm2731_vm10, %vm2732_vm9  ;;  %v2752_v32 = vand.u32 2147483648, %v2695_v58  ;;  %v2750_v20 = vand.u32 2147483647, %v2695_v58 }
 0x726   : > { %v2728_v15 = vsub.f32 1.0, %v2727_v26  ;;  %v2757_v34 = vmul.f32 1.0614054, %v4848_v60  ;;  %v2772_v52 = vmul.f32 %v2768_v30, %v4838_v13  ;;  %vm2746_vm14 = vweird.f32 %v2695_v58 }
 0x727   : > { %v2753_v24 = vor.u32 1.1754944e-38, %v2752_v32  ;;  %vm2751_vm3 = vcmp.eq.f32.partialorder %v2750_v20, 8.507059e+37  ;;  %3694 = vpow2.f32 %v2804_v23  ;;  %v2800_v3 = vmul.f32 1.442695, %v2796_v8 }
 0x728   : > { %v2729_v37 = vmul.f32 %v3691_v31, %v2728_v15  ;;  %v2761_v51 = vadd.f32 -1.4531521, %v2757_v34  ;;  %v2776_v22 = vadd.f32 -0.28449672, %v2772_v52  ;;  %v2799_v28 = vmul.f32 %v2795_v39, %v4845_v2  ;;  %v2900_v39 = vld [vmem:[%s4979_s13 + $0x8] sm:$0x7] }
 0x729   : > { %vm2925_vm7 = vcmask 1042432   ;;  %vm2920_vm8 = vcmask 171008   ;;  %vm3034_vm9 = vcmask 1043456   ;;  %vm3035_vm10 = vcmask 1044480  }
 0x72a   : > { %v2730_v36 = vadd.f32 %v3691_v31, %v2729_v37  ;;  %v2765_v50 = vmul.f32 %v2761_v51, %v4848_v60  ;;  %v2780_v14 = vmul.f32 %v2776_v22, %v4838_v13  ;;  %v2806_v51 = vmul.f32 1.442695, %v2799_v28 }
 0x72b   : > { %v3693_v29 = vpop.eup %3692 }
 0x72c   : > { %v2734_v45 = vsel %vm2733_vm11, %v3691_v31, %v2730_v36  ;;  %v2769_v38 = vadd.f32 1.4214138, %v2765_v50  ;;  %v2742_v56 = vmul.f32 %v3693_v29, %v2695_v58  ;;  %vm2747_vm13 = vweird.f32 %v3693_v29 }
 0x72d   : > { %v2739_v41 = vsel %vm2736_vm12, %v2738_v33, %v2734_v45  ;;  %vm2748_vm0 = vmor %vm2746_vm14, %vm2747_vm13  ;;  %v2802_v31 = vmul.f32 1.442695, %v2797_v11  ;;  %v2784_v34 = vadd.f32 0.2548296, %v2780_v14  ;;  %v3695_v35 = vpop.eup %3694  ;;  %v2678_v11 = vmul.f32 0.5, %v4827_v5  ;;  %v3506_v5 = vld [vmem:[%s4978_s12] sm:$0xff] }
 0x72e   : > { %v2758_v1 = vmul.f32 1.0614054, %v2739_v41  ;;  %v2773_v18 = vmul.f32 %v2769_v38, %v4848_v60  ;;  %v2743_v55 = vsub.f32 1.0, %v2742_v56  ;;  %vm3030_vm11 = vcmask 72704  }
 0x72f   : > { %3696 = vpow2.f32 %v2802_v31  ;;  %v2788_v33 = vmul.f32 %v2784_v34, %v4838_v13  ;;  %v2953_v31 = vunpack.c.l.b16 %v2900_v39  ;;  %v3509_v34 = vld [vmem:[%s4979_s13 + $0xc] sm:$0xff] }
 0x730   : > { %v2762_v59 = vadd.f32 -1.4531521, %v2758_v1  ;;  %v2744_v49 = vmul.f32 %v3693_v29, %v2743_v55  ;;  %v2777_v46 = vadd.f32 -0.28449672, %v2773_v18  ;;  %3698 = vpow2.f32 %v2800_v3 }
 0x731   : > { %3700 = vpow2.f32 %v2806_v51  ;;  %v2955_v14 = vpack.c.b16 %v2953_v31, %v2953_v31 }
 0x732   : > { %v2766_v0 = vmul.f32 %v2762_v59, %v2739_v41  ;;  %v2745_v53 = vadd.f32 %v3693_v29, %v2744_v49  ;;  %v2781_v4 = vmul.f32 %v2777_v46, %v4848_v60 }
 0x734   : > { %v2770_v21 = vadd.f32 1.4214138, %v2766_v0  ;;  %v2749_v6 = vsel %vm2748_vm0, %v3693_v29, %v2745_v53  ;;  %v2785_v54 = vadd.f32 0.2548296, %v2781_v4 }
 0x735   : > { %v2754_v19 = vsel %vm2751_vm3, %v2753_v24, %v2749_v6  ;;  %v3697_v45 = vpop.eup %3696 }
 0x736   : > { %v2774_v42 = vmul.f32 %v2770_v21, %v2739_v41  ;;  %v2759_v9 = vmul.f32 1.0614054, %v2754_v19  ;;  %v2789_v27 = vmul.f32 %v2785_v54, %v4848_v60  ;;  %v3699_v2 = vpop.eup %3698  ;;  %v2679_v21 = vmul.f32 0.5, %v4836_v47  ;;  %v3423_v54 = vld [vmem:[%s4979_s13 + $0x14] sm:$0x7] }
 0x737   : > { %v2808_v1 = vmul.f32 %v3699_v2, %v2788_v33  ;;  %v3701_v59 = vpop.eup %3700  ;;  %v2916_v28 = vunpack.c.l.b16 %v3423_v54  ;;  %v3637_v54 = vld [vmem:[%s4981_s15] ss:$0 sm:$0xff] }
 0x738   : > { %v2778_v61 = vadd.f32 -0.28449672, %v2774_v42  ;;  %v2763_v44 = vadd.f32 -1.4531521, %v2759_v9  ;;  %v2809_v30 = vmul.f32 %v3697_v45, %v2789_v27  ;;  %v2676_v42 = vmul.f32 0.5, %v4809_v57 }
 0x739   : > { %v2812_v55 = vsub.f32 1.0, %v2808_v1  ;;  %v2840_v57 = vld [vmem:[%s4978_s12 + $0x10] sm:$0x3] }
 0x73a   : > { %v2782_v26 = vmul.f32 %v2778_v61, %v2739_v41  ;;  %v2767_v15 = vmul.f32 %v2763_v44, %v2754_v19  ;;  %v2813_v18 = vsub.f32 1.0, %v2809_v30  ;;  %v2852_v47 = vunpack.c.l.b16 %v2840_v57  ;;  %v3508_v44 = vld [vmem:[%s4979_s13] sm:$0xff] }
 0x73b   : > { %v2820_v40 = vsub.f32 0.0, %v2812_v55  ;;  %v3773_v61 = vmov 65535  }
 0x73c   : > { %v2786_v58 = vadd.f32 0.2548296, %v2782_v26  ;;  %v2771_v37 = vadd.f32 1.4214138, %v2767_v15  ;;  %v2821_v52 = vsub.f32 0.0, %v2813_v18 }
 0x73d   : > { %v2824_v46 = vsel %vm2816_vm5, %v2812_v55, %v2820_v40  ;;  %v3451_v40 = vld [vmem:[%s4980_s14] sm:$0xf] }
 0x73e   : > { %v2790_v16 = vmul.f32 %v2786_v58, %v2739_v41  ;;  %v2775_v50 = vmul.f32 %v2771_v37, %v2754_v19  ;;  %v2825_v0 = vsel %vm2817_vm1, %v2813_v18, %v2821_v52  ;;  %v2828_v24 = vadd.f32 1.0, %v2824_v46  ;;  %v3446_v46 = vld [vmem:[%s4980_s14 + $0x8] sm:$0xf] }
 0x73f   : > { %v2829_v62 = vadd.f32 1.0, %v2825_v0  ;;  %v2918_v58 = vpack.c.b16 %v2916_v28, %v2916_v28  ;;  %v3036_v0 = vsel %vm3034_vm9, 4294967295, %v3773_v61 }
 0x740   : > { %v2810_v36 = vmul.f32 %v3695_v35, %v2790_v16  ;;  %v2779_v29 = vadd.f32 -0.28449672, %v2775_v50  ;;  %v2832_v7 = vmul.f32 %v2828_v24, %v2676_v42  ;;  %v3436_v16 = vld [vmem:[%s4979_s13 + $0x20] sm:$0x7] }
 0x741   : > { %v2833_v6 = vmul.f32 %v2829_v62, %v2677_v63  ;;  %v2991_v37 = vunpack.c.l.b16 %v3436_v16 }
 0x742   : > { %v2814_v38 = vsub.f32 1.0, %v2810_v36  ;;  %v2783_v25 = vmul.f32 %v2779_v29, %v2754_v19  ;;  %v3510_v36 = vld [vmem:[%s4979_s13 + $0x18] sm:$0xff] }
 0x743   : > { %v2841_v4 = vpack.c.bf16 %v2833_v6, %v2832_v7  ;;  %v2993_v27 = vpack.c.b16 %v2991_v37, %v2991_v37 }
 0x744   : > { %v2787_v56 = vadd.f32 0.2548296, %v2783_v25  ;;  %v2822_v41 = vsub.f32 0.0, %v2814_v38 }
 0x746   : > { %v2791_v17 = vmul.f32 %v2787_v56, %v2754_v19  ;;  %v2826_v48 = vsel %vm2818_vm15, %v2814_v38, %v2822_v41  ;;  %v2855_v19 = vpack.c.b16 %v2852_v47, %v2852_v47 }
 0x747   : > { %v2830_v49 = vadd.f32 1.0, %v2826_v48 }
 0x748   : > { %v2811_v60 = vmul.f32 %v3701_v59, %v2791_v17 }
 0x749   : > { %v2834_v22 = vmul.f32 %v2830_v49, %v2678_v11  ;;  %v3512_v11 = vld [vmem:[%s4980_s14 + $0x8] sm:$0x10] }
 0x74a   : > { %v2815_v13 = vsub.f32 1.0, %v2811_v60 }
 0x74c   : > { %v2823_v32 = vsub.f32 0.0, %v2815_v13 }
 0x74e   : > { %v2827_v20 = vsel %vm2819_vm2, %v2815_v13, %v2823_v32  ;;  %v3511_v32 = vld [vmem:[%s4980_s14] sm:$0x10] }
 0x74f   : > { %v2831_v53 = vadd.f32 1.0, %v2827_v20  ;;  %v3452_v49 = vor.u32 %v3511_v32, %v3451_v40  ;;  %v3037_v20 = vsel %vm3035_vm10, %v3036_v0, 0 }
 0x751   : > { %v2835_v23 = vmul.f32 %v2831_v53, %v2679_v21  ;;  %v3063_v21 = vand.u32 %v3452_v49, %v3037_v20  ;;  %v3447_v53 = vor.u32 %v3512_v11, %v3446_v46 }
 0x753   : > { %v2842_v8 = vpack.c.bf16 %v2835_v23, %v2834_v22  ;;  %v3039_v62 = vand.u32 %v3447_v53, %v3037_v20  ;;  %v3458_v22 = vld [vmem:[%s4980_s14 + $0x10] sm:$0xf]  ;;  %v3513_v23 = vld [vmem:[%s4980_s14 + $0x10] sm:$0x10] }
 0x754   : > { %v3459_v24 = vor.u32 %v3513_v23, %v3458_v22 }
 0x755   : > { %v2868_v10 = vsel %vm2513_vm4, %v2842_v8, 0  ;;  %vm2924_vm4 = vcmask 1041408  }
 0x756   : > { %2876 = vmatpush.bf16.msrb.mxu2 %v2868_v10  ;;  %v2926_v9 = vsel %vm2924_vm4, 4294967295, %v3773_v61  ;;  %v3091_v63 = vand.u32 %v3459_v24, %v3037_v20 }
 0x757   : > { %v2927_v3 = vsel %vm2925_vm7, %v2926_v9, 0 }
 0x758   : > { %v2961_v26 = vand.u32 %v2955_v14, %v2927_v3  ;;  %v2929_v15 = vand.u32 %v2927_v3, %v2918_v58  ;;  %v2999_v51 = vand.u32 %v2993_v27, %v2927_v3 }
 0x75a   : > { %2877 = vmatpush.bf16.msrb.mxu2 %v2841_v4  ;;  %2969 = vmatpush.bf16.msra.mxu0 %v2961_v26  ;;  %v3636_v26 = vld [vmem:[%s4971_s5] ss:$0 sm:$0xff] }
 0x75b   : > { %2937 = vmatpush.bf16.msrb.mxu3 %v2929_v15  ;;  %v927_v15 = vadd.f32 %v3636_v26, %v4346_v12 }
 0x75d   : > { %3418 = vmatmul.msk.bf16.vlgmr.msrb.gmra.mxu2 %vm2856_vm6, %v3506_v5 }
 0x75e   : > { %2970 = vmatpush.bf16.msra.mxu0 %v3508_v44 }
 0x75f   : > { %2938 = vmatpush.bf16.msrb.mxu3 %v3509_v34 }
 0x762   : > { %3048 = vmatpush.bf16.msrb.mxu0 %v3039_v62 }
 0x763   : > { %3007 = vmatpush.bf16.msra.mxu3 %v2999_v51 }
 0x767   : > { %3008 = vmatpush.bf16.msra.mxu3 %v3510_v36 }
 0x76d   : > { %3419 = vmatmul.msk.bf16.gmra.mxu2 %vm2856_vm6, %v3507_v43 }
 0x77d   : > { %3420 = vmatmul.msk.bf16.gmra.mxu2 %vm2856_vm6, %v2855_v19 }
 0x7e0   : > { %v2879_v35 = vpop.f32.mrf.mxu2 }
 0x7e1   : > { %v2893_v50 = vpack.c.bf16 %v2879_v35, %v2879_v35 }
 0x7e3   : > { %v2946_v29 = vunpack.c.l.b16 %v2893_v50 }
 0x7e8   : > { %v2881_v33 = vpop.f32.mrf.mxu2 }
 0x7e9   : > { %v2894_v45 = vpack.c.bf16 %v2881_v33, %v2881_v33 }
 0x7eb   : > { %v2907_v30 = vunpack.c.l.b16 %v2894_v45 }
 0x7ed   : > { %v2947_v2 = vpack.c.b16 %v2907_v30, %v2946_v29 }
 0x7ef   : > { %3433 = vmatmul.msk.bf16.vlgmr.msra.gmra.mxu0 %vm2920_vm8, %v2947_v2 }
 0x7f0   : > { %v2884_v38 = vpop.f32.mrf.mxu2  ;;  %3100 = vmatpush.bf16.msra.mxu0 %v3091_v63 }
 0x7f1   : > { %v2895_v25 = vpack.c.bf16 %v2884_v38, %v2884_v38 }
 0x7f3   : > { %v2908_v1 = vunpack.c.l.b16 %v2895_v25 }
 0x7f5   : > { %v2909_v56 = vpack.c.b16 %v2908_v1, %v2907_v30 }
 0x7f7   : > { %v2910_v18 = vrot.slane %v2909_v56, 2 }
 0x7f8   : > { %v2886_v41 = vpop.f32.mrf.mxu2 }
 0x7f9   : > { %3428 = vmatmul.msk.bf16.vlgmr.msrb.gmra.mxu3 %vm2920_vm8, %v2910_v18  ;;  %v2896_v59 = vpack.c.bf16 %v2886_v41, %v2886_v41 }
 0x7fa   : > { %3072 = vmatpush.bf16.msrb.mxu3 %v3063_v21 }
 0x7fb   : > { %v2983_v52 = vunpack.c.l.b16 %v2896_v59 }
 0x800   : > { %v2889_v17 = vpop.f32.mrf.mxu2 }
 0x801   : > { %v2897_v55 = vpack.c.bf16 %v2889_v17, %v2889_v17 }
 0x803   : > { %v2984_v60 = vunpack.c.l.b16 %v2897_v55 }
 0x805   : > { %v2985_v48 = vpack.c.b16 %v2984_v60, %v2983_v52 }
 0x808   : > { %v2891_v13 = vpop.f32.mrf.mxu2 }
 0x809   : > { %3441 = vmatmul.msk.bf16.vlgmr.msra.gmra.mxu3 %vm2920_vm8, %v2985_v48 }
 0x86c   : > { %v2972_v6 = vpop.f32.mrf.mxu0 }
 0x874   : > { %v2974_v57 = vpop.f32.mrf.mxu0 }
 0x87c   : > { %v2940_v8 = vpop.f32.mrf.mxu3 }
 0x87d   : > { %v2973_v10 = vadd.f32 %v2972_v6, %v2940_v8 }
 0x884   : > { %v2942_v42 = vpop.f32.mrf.mxu3 }
 0x885   : > { %v2975_v19 = vadd.f32 %v2974_v57, %v2942_v42 }
 0x88c   : > { %v3010_v7 = vpop.f32.mrf.mxu3 }
 0x88d   : > { %v3015_v4 = vadd.f32 %v3010_v7, %v2973_v10 }
 0x88f   : > { %v3017_v5 = vpack.c.bf16 %v3015_v4, %v3015_v4 }
 0x891   : > { %v3024_v43 = vrot.slane %v3017_v5, 2  ;;  %3453 = vmatmul.msk.bf16.vlgmr.msrb.gmra.mxu3 %vm3030_vm11, %v3017_v5 }
 0x893   : > { %3448 = vmatmul.msk.bf16.vlgmr.msrb.gmra.mxu0 %vm3030_vm11, %v3024_v43 }
 0x894   : > { %v3012_v47 = vpop.f32.mrf.mxu3 }
 0x895   : > { %v3016_v39 = vadd.f32 %v3012_v47, %v2975_v19 }
 0x897   : > { %v3078_v31 = vpack.c.bf16 %v3016_v39, %v3016_v39 }
 0x8a3   : > { %3460 = vmatmul.msk.bf16.vlgmr.msra.gmra.mxu0 %vm3030_vm11, %v3078_v31 }
 0x910   : > { %v3050_v61 = vpop.f32.mrf.mxu0 }
 0x914   : > { %v3074_v9 = vpop.f32.mrf.mxu3 }
 0x915   : > { %v3075_v44 = vadd.f32 %v3074_v9, %v3050_v61 }
 0x918   : > { %v3052_v14 = vpop.f32.mrf.mxu0 }
 0x91c   : > { %v3076_v3 = vpop.f32.mrf.mxu3 }
 0x920   : > { %v3102_v28 = vpop.f32.mrf.mxu0 }
 0x921   : > { %v3106_v58 = vadd.f32 %v3102_v28, %v3075_v44 }
 0x923   : > { %v3111_v34 = vadd.f32 %v3637_v54, %v3106_v58 }
 0x925   : > { %v3112_v16 = vadd.f32 %v3111_v34, %v927_v15 }
 0x927   : > { %v3113_v37 = vmul.f32 0.5, %v3112_v16 }
 0x928   : > { %v3104_v35 = vpop.f32.mrf.mxu0 }
 0x929   : > { %3114 = vst [vmem:[%s567_s25] sm:$0xf] %v3113_v37 }
 0x92a   : > { %3729 = shalt.err (!%p3726_p5)
}
 0x92b   : > { %3546 = dma.vmem_to_hbm [thread:$0]  (%p3897_p6), %s3129_s19, 64, %s3131_s20, %s3116_s29  }
 0x92c PF: > { %s3142_s25 = sand.u32 1, %s3752_s21   ;;  %p3549_p7 = pnand %p3198_p9, %p3901_p8 }
 0x92d   : > { %s3143_s17 = scalar_lea.sflag [#allocation4], %s3142_s25 }
 0x92e   : > { %p3550_p10 = pneg %p3549_p7 }
 0x930   : > { %3747 = dma.done.wait (%p3550_p10), %s3143_s17, 64  }
 0x931   : > { %3749 = vsyncadd (%p3550_p10), %s3143_s17, 4294967232  ;;  %s5000_s24 = sld [smem:[#allocation8_spill]] }
 0x932   : > { %s5001_s21 = sld [smem:[#allocation6_spill]] }
 0x933   : > { %s5002_s22 = sld [smem:[#allocation7_spill]] }
 0x934   : > { %s5003_s23 = sld [smem:[#allocation9_spill]] }
 0x937   : > { %p26_p11 = scmp.ge.s32.totalorder %s5000_s24, 4  }
 0x939   :  { %28 = sbr.rel (!%p26_p11) target bundleno = 5 (0x5), region = 168 }
 0x93e   :  { %3149 = vsyncpa [#allocation4], 1 }
 0x93f   :  { %3151 = vsyncpa [#allocation4 + $0x1], 1 }

</bundles_post_ra>
